<compile_context>
chip_gen: v7x
topology: tpu7x:2x2x1
jax: 0.10.0
libtpu: 0.0.40
codegen_flags: <defaults>
</compile_context>

<pallas_src>
import functools
import math

import jax
import jax.numpy as jnp
from jax.experimental import pallas as pl
from jax.experimental.pallas import tpu as pltpu


def _layernorm_1pass(x, gamma, beta, eps=1e-5):
  """LayerNorm with one-pass moments (E[x^2] - E[x]^2): halves XLU reductions."""
  mu = jnp.mean(x, axis=-1, keepdims=True)
  ex2 = jnp.mean(x * x, axis=-1, keepdims=True)
  var = jnp.maximum(ex2 - mu * mu, 0.0)
  return (x - mu) * jax.lax.rsqrt(var + eps) * gamma + beta


# ---------------------------------------------------------------------------
# Fused kernel: one DotAttentionLayer per inner grid step; node features are
# carried in a persistent VMEM scratch across the layer axis.
# ---------------------------------------------------------------------------
def _gnn_fused_kernel(
    feats_ref, adj_ref,
    wqkv_ref, bqkv_ref, wo_ref, bo_ref,
    w1_ref, b1_ref, w2_ref, b2_ref,
    g1_ref, be1_ref, g2_ref, be2_ref,
    out_ref, x_scr,
    *, nhead, res1, res2, use_norm1, use_norm2, use_mlp):
  layer = pl.program_id(1)               # inner ("arbitrary") axis = layers

  @pl.when(layer == 0)
  def _():
    x_scr[...] = feats_ref[...]          # load this graph's features once

  x = x_scr[...]                         # [N, D] f32 running node features
  N, D = x.shape
  hd = D // nhead
  cdt = wqkv_ref.dtype                   # bf16 MXU-operand dtype

  # Fused QKV projection (Wq pre-scaled by 1/sqrt(hd) on the host).
  xc = x.astype(cdt)
  qkv = jnp.dot(xc, wqkv_ref[...],
                preferred_element_type=jnp.float32) + bqkv_ref[...]   # [N, 3D]
  q = qkv[:, :D]
  k = qkv[:, D:2 * D]
  v = qkv[:, 2 * D:]

  # Batched heads: [H, N, hd].
  qh = q.reshape(N, nhead, hd).transpose(1, 0, 2)
  kh = k.reshape(N, nhead, hd).transpose(1, 0, 2)
  vh = v.reshape(N, nhead, hd).transpose(1, 0, 2)

  # Masked dense attention.  adj[c, r] = 1 iff edge (r -> c).
  adj = adj_ref[...]                     # [N, N] f32 0/1 (resident)
  bias = (adj - 1.0) * 1e30              # 0 on-edge, -1e30 off-edge
  s = jnp.einsum('hcd,hrd->hcr', qh.astype(cdt), kh.astype(cdt),
                 preferred_element_type=jnp.float32)          # [H, N, N]
  s = s + bias[None]
  m = jnp.max(s, axis=-1, keepdims=True)
  p = jnp.exp(s - m) * adj[None]                              # exact 0 off-edge
  denom = jnp.sum(p, axis=-1, keepdims=True)                  # [H, N, 1]
  inv = jnp.where(denom > 0.0, pl.reciprocal(denom, approx=True), 0.0)
  probs = p * inv                          # rows with in-degree 0 stay all-zero

  # dropout on attention probs = identity (eval mode).
  o = jnp.einsum('hcr,hrd->hcd', probs.astype(cdt), vh.astype(cdt),
                 preferred_element_type=jnp.float32)          # [H, N, hd]

  # Output projection contracted per head (Wo pre-reshaped to [H, hd, D] on
  # the host) -> no un-transpose / head concat relayout.
  att_h = jnp.einsum('hcd,hde->hce', o.astype(cdt), wo_ref[...],
                     preferred_element_type=jnp.float32)      # [H, N, D]
  att = jnp.sum(att_h, axis=0) + bo_ref[...]                  # [N, D]

  # dropout1 = identity (eval).  Residual + LayerNorm in f32.
  h1 = x + att if res1 else att
  if use_norm1:
    h1 = _layernorm_1pass(h1, g1_ref[...], be1_ref[...])

  if use_mlp:
    hid = jnp.dot(h1.astype(cdt), w1_ref[...],
                  preferred_element_type=jnp.float32) + b1_ref[...]
    hid = jnp.maximum(hid, 0.0)          # ReLU (inner dropout = identity)
    ff = jnp.dot(hid.astype(cdt), w2_ref[...],
                 preferred_element_type=jnp.float32) + b2_ref[...]
  else:
    ff = h1

  h2 = h1 + ff if res2 else ff
  if use_norm2:
    h2 = _layernorm_1pass(h2, g2_ref[...], be2_ref[...])

  x_scr[...] = h2                        # carry to next layer
  out_ref[...] = h2.astype(out_ref.dtype)


# ---------------------------------------------------------------------------
# Wrapper: one pallas_call for the whole network over a batch of graphs.
#   feats : [B, N, D] f32
#   adj   : [B, N, N] f32 (0/1), adj[b, c, r] = 1 iff edge (r -> c) in graph b
# Returns [B, L, N, D] (per-layer outputs).
# ---------------------------------------------------------------------------
def gnn_forward_fused(feats, adj, params, *, nhead, res1, res2,
                      norm1, norm2, mlp):
  B, N, D = feats.shape
  L = params[0].shape[0]
  d_hid = params[4].shape[-1]

  kernel = functools.partial(
      _gnn_fused_kernel, nhead=nhead, res1=res1, res2=res2,
      use_norm1=norm1, use_norm2=norm2, use_mlp=mlp)

  def param_spec(arr):
    per_layer = tuple(arr.shape[1:])      # stacked params are (L, ...)
    pad = (0,) * len(per_layer)
    def imap(b, l, _pad=pad):
      return (l,) + _pad                  # index by layer only
    # TODO(synk): on v5e, pipeline_mode=pl.Buffered(3) here if weight DMA is
    # exposed behind the per-layer compute.
    return pl.BlockSpec((pl.Squeezed(),) + per_layer, imap)

  in_specs = (
      [pl.BlockSpec((pl.Squeezed(), N, D), lambda b, l: (b, 0, 0)),   # feats
       pl.BlockSpec((pl.Squeezed(), N, N), lambda b, l: (b, 0, 0))]   # adj
      + [param_spec(a) for a in params])
  out_spec = pl.BlockSpec((pl.Squeezed(), pl.Squeezed(), N, D),
                          lambda b, l: (b, l, 0, 0))

  hd = D // nhead
  flops_per_layer = (2 * N * D * 3 * D               # fused QKV projection
                     + 2 * N * D * D                 # output projection
                     + 2 * nhead * N * N * hd * 2    # scores + probs@V
                     + (2 * N * D * d_hid * 2 if mlp else 0))
  bytes_accessed = (feats.size * feats.dtype.itemsize
                    + adj.size * adj.dtype.itemsize
                    + B * sum(int(a.size) * a.dtype.itemsize for a in params)
                    + B * L * N * D * feats.dtype.itemsize)
  cost = pl.CostEstimate(flops=int(B * L * flops_per_layer),
                         transcendentals=int(B * L * (nhead * N * N + 3 * N)),
                         bytes_accessed=int(bytes_accessed))

  return pl.pallas_call(
      kernel,
      out_shape=jax.ShapeDtypeStruct((B, L, N, D), feats.dtype),
      grid_spec=pltpu.PrefetchScalarGridSpec(
          num_scalar_prefetch=0,
          grid=(B, L),
          in_specs=in_specs,
          out_specs=out_spec,
          scratch_shapes=[pltpu.VMEM((N, D), jnp.float32)]),
      compiler_params=pltpu.CompilerParams(
          # batch of graphs is independent ("parallel" -> 2nd TC on v7x);
          # layers are a sequential carry ("arbitrary").
          dimension_semantics=("parallel", "arbitrary"),
          vmem_limit_bytes=32 * 1024 * 1024),
      cost_estimate=cost,
  )(feats, adj, *params)


# ---------------------------------------------------------------------------
# Parameter construction (deterministic, mirrors the PyTorch __init__ shapes).
# Weights are stored pre-transposed ([in, out]) and pre-fused / pre-reshaped.
# ---------------------------------------------------------------------------
def _xavier_uniform(key, fan_in, fan_out):
  limit = math.sqrt(6.0 / (fan_in + fan_out))
  return jax.random.uniform(key, (fan_in, fan_out), jnp.float32, -limit, limit)


def init_layer_params(key, embed_dim, d_hid, nhead):
  ks = jax.random.split(key, 6)
  hd = embed_dim // nhead
  scale = 1.0 / math.sqrt(hd)
  # Fold the 1/sqrt(hd) softmax scale into Wq / bq (host-side, zero runtime).
  wq = _xavier_uniform(ks[0], embed_dim, embed_dim) * scale
  wk = _xavier_uniform(ks[1], embed_dim, embed_dim)
  wv = _xavier_uniform(ks[2], embed_dim, embed_dim)
  wo = _xavier_uniform(ks[3], embed_dim, embed_dim)      # [in, out] = Wo.T
  wqkv = jnp.concatenate([wq, wk, wv], axis=-1)          # [D, 3D]
  bqkv = jnp.zeros((1, 3 * embed_dim), jnp.float32)      # (bq*scale, bk, bv)=0
  wo_h = wo.reshape(nhead, hd, embed_dim)                # [H, hd, D]
  bo = jnp.zeros((1, embed_dim), jnp.float32)
  lim1 = 1.0 / math.sqrt(embed_dim)
  lim2 = 1.0 / math.sqrt(d_hid)
  w1 = jax.random.uniform(ks[4], (embed_dim, d_hid), jnp.float32, -lim1, lim1)
  b1 = jnp.zeros((1, d_hid), jnp.float32)
  w2 = jax.random.uniform(ks[5], (d_hid, embed_dim), jnp.float32, -lim2, lim2)
  b2 = jnp.zeros((1, embed_dim), jnp.float32)
  g1 = jnp.ones((1, embed_dim), jnp.float32)
  be1 = jnp.zeros((1, embed_dim), jnp.float32)
  g2 = jnp.ones((1, embed_dim), jnp.float32)
  be2 = jnp.zeros((1, embed_dim), jnp.float32)
  return (wqkv, bqkv, wo_h, bo, w1, b1, w2, b2, g1, be1, g2, be2)


class GNNNetworkPallas:
  """Pallas/JAX equivalent of GNNNetwork (aggr = scatter-sum, eval mode)."""

  _WEIGHT_IDX = frozenset({0, 2, 4, 6})   # wqkv, wo_h, w1, w2

  def __init__(self, embed_dim, gnn_params, num_layers, key):
    self.embed_dim = embed_dim
    self.gnn_params = gnn_params
    self.nhead = gnn_params['num_heads']
    d_hid = 4 * embed_dim
    keys = jax.random.split(key, num_layers)
    per_layer = [init_layer_params(k, embed_dim, d_hid, self.nhead)
                 for k in keys]
    stacked = [jnp.stack([lp[i] for lp in per_layer], axis=0)
               for i in range(len(per_layer[0]))]
    # Matmul weights in bf16 (halves weight DMA/VMEM; f32 accumulation in the
    # kernel).  Biases / LayerNorm params stay f32.
    self.params = tuple(
        a.astype(jnp.bfloat16) if i in self._WEIGHT_IDX else a
        for i, a in enumerate(stacked))

  @staticmethod
  def adj_from_edges(edge_index, n):
    r = edge_index[:, 0]
    c = edge_index[:, 1]
    # adj[c, r] = 1 iff edge (r -> c); duplicate (r, c) pairs are deduplicated.
    return jnp.zeros((n, n), jnp.float32).at[c, r].set(1.0)

  def forward_batched(self, feats_b, adj_b):
    """feats_b: [B, N, D], adj_b: [B, N, N] 0/1 -> [B, L, N, D]."""
    p = self.gnn_params
    return gnn_forward_fused(
        feats_b, adj_b, self.params,
        nhead=p['num_heads'], res1=p['res1'], res2=p['res2'],
        norm1=p['norm1'], norm2=p['norm2'], mlp=p['mlp'])

  def __call__(self, feats, edge_index, edge_attr):
    n = feats.shape[0]
    adj = self.adj_from_edges(edge_index, n)
    out_all = self.forward_batched(feats[None], adj[None])[0]   # [L, N, D]
    outs = [out_all[l] for l in range(out_all.shape[0])]
    return outs, edge_index, edge_attr


# ---------------------------------------------------------------------------
if __name__ == "__main__":
  key = jax.random.PRNGKey(0)
  k_feat, k_net, k_batch = jax.random.split(key, 3)

  N = 64            # graph nodes (sublane-aligned)
  embed_dim = 128   # lane-friendly embedding width
  num_layers = 2
  B = 2             # graph batch for the batched path
  gnn_params = dict(num_heads=4, res1=True, res2=True, mult_attr=0,
                    mlp=True, norm1=True, norm2=True,
                    dropout_mlp=0.1, dropout_1=0.1, dropout_2=0.1)

  net = GNNNetworkPallas(embed_dim, gnn_params, num_layers, k_net)

  # Simple edge list: self loops + ring in both directions (no duplicates).
  edges = []
  for i in range(N):
    j = (i + 1) % N
    edges.append((i, i))
    edges.append((i, j))
    edges.append((j, i))
  edge_index = jnp.array(edges, dtype=jnp.int32)               # [E, 2] (r, c)
  edge_attr = jnp.ones((edge_index.shape[0], 1), jnp.float32)  # unused (mult_attr=0)

  # Single-graph path (matches the PyTorch module API).
  feats = jax.random.normal(k_feat, (N, embed_dim), jnp.float32)
  outs, ei, ea = net(feats, edge_index, edge_attr)
  for o in outs:
    jax.block_until_ready(o)
  assert len(outs) == num_layers and outs[0].shape == (N, embed_dim)
  assert bool(jnp.all(jnp.isfinite(outs[-1])))

  # Batched multi-graph path (amortizes weight DMA / step overhead; the
  # "parallel" batch grid axis uses both TensorCores on v7x).
  feats_b = jax.random.normal(k_batch, (B, N, embed_dim), jnp.float32)
  adj_b = jnp.stack([GNNNetworkPallas.adj_from_edges(edge_index, N)] * B, 0)
  out_b = net.forward_batched(feats_b, adj_b)
  jax.block_until_ready(out_b)
  assert out_b.shape == (B, num_layers, N, embed_dim)
  assert bool(jnp.all(jnp.isfinite(out_b)))

  print("KERNEL_OK")
</pallas_src>

<mosaic_0001>
module attributes {stable_mosaic.version = 11 : i64} {
  func.func @_gnn_fused_kernel(%arg0: i32, %arg1: i32, %arg2: memref<1x64x128xf32, #tpu.memory_space<vmem>>, %arg3: memref<1x64x64xf32, #tpu.memory_space<vmem>>, %arg4: memref<1x128x384xbf16, #tpu.memory_space<vmem>>, %arg5: memref<1x1x384xf32, #tpu.memory_space<vmem>>, %arg6: memref<1x4x32x128xbf16, #tpu.memory_space<vmem>>, %arg7: memref<1x1x128xf32, #tpu.memory_space<vmem>>, %arg8: memref<1x128x512xbf16, #tpu.memory_space<vmem>>, %arg9: memref<1x1x512xf32, #tpu.memory_space<vmem>>, %arg10: memref<1x512x128xbf16, #tpu.memory_space<vmem>>, %arg11: memref<1x1x128xf32, #tpu.memory_space<vmem>>, %arg12: memref<1x1x128xf32, #tpu.memory_space<vmem>>, %arg13: memref<1x1x128xf32, #tpu.memory_space<vmem>>, %arg14: memref<1x1x128xf32, #tpu.memory_space<vmem>>, %arg15: memref<1x1x128xf32, #tpu.memory_space<vmem>>, %arg16: memref<1x1x64x128xf32, #tpu.memory_space<vmem>>, %arg17: memref<64x128xf32, #tpu.memory_space<vmem>>) attributes {dimension_semantics = [#tpu.dimension_semantics<parallel>, #tpu.dimension_semantics<arbitrary>], iteration_bounds = array<i64: 1, 2>, scalar_prefetch = 0 : i64, scratch_operands = 1 : i64, tpu.core_type = #tpu.core_type<tc>, window_params = [{transform_indices = @transform_0, window_bounds = array<i64: 1, 64, 128>}, {transform_indices = @transform_1, window_bounds = array<i64: 1, 64, 64>}, {transform_indices = @transform_2, window_bounds = array<i64: 1, 128, 384>}, {transform_indices = @transform_3, window_bounds = array<i64: 1, 1, 384>}, {transform_indices = @transform_4, window_bounds = array<i64: 1, 4, 32, 128>}, {transform_indices = @transform_5, window_bounds = array<i64: 1, 1, 128>}, {transform_indices = @transform_6, window_bounds = array<i64: 1, 128, 512>}, {transform_indices = @transform_7, window_bounds = array<i64: 1, 1, 512>}, {transform_indices = @transform_8, window_bounds = array<i64: 1, 512, 128>}, {transform_indices = @transform_9, window_bounds = array<i64: 1, 1, 128>}, {transform_indices = @transform_10, window_bounds = array<i64: 1, 1, 128>}, {transform_indices = @transform_11, window_bounds = array<i64: 1, 1, 128>}, {transform_indices = @transform_12, window_bounds = array<i64: 1, 1, 128>}, {transform_indices = @transform_13, window_bounds = array<i64: 1, 1, 128>}, {transform_indices = @transform_14, window_bounds = array<i64: 1, 1, 64, 128>}]} {
    %c0_i32 = arith.constant 0 : i32
    %0 = arith.cmpi eq, %arg1, %c0_i32 : i32
    %1 = arith.extui %0 : i1 to i32
    %c0_i32_0 = arith.constant 0 : i32
    %2 = arith.cmpi ne, %1, %c0_i32_0 : i32
    scf.if %2 {
      %c0_73 = arith.constant 0 : index
      %c0_74 = arith.constant 0 : index
      %c0_75 = arith.constant 0 : index
      %142 = vector.load %arg2[%c0_73, %c0_74, %c0_75] : memref<1x64x128xf32, #tpu.memory_space<vmem>>, vector<1x64x128xf32>
      %143 = vector.shape_cast %142 : vector<1x64x128xf32> to vector<64x128xf32>
      %c0_76 = arith.constant 0 : index
      %c0_77 = arith.constant 0 : index
      %144 = vector.load %arg17[%c0_76, %c0_77] : memref<64x128xf32, #tpu.memory_space<vmem>>, vector<64x128xf32>
      tpu.vector_store %arg17[%c0_76, %c0_77], %143 {strides = array<i32>} : memref<64x128xf32, #tpu.memory_space<vmem>>, vector<64x128xf32>,
    } else {
    }
    %c0 = arith.constant 0 : index
    %c0_1 = arith.constant 0 : index
    %3 = vector.load %arg17[%c0, %c0_1] : memref<64x128xf32, #tpu.memory_space<vmem>>, vector<64x128xf32>
    %4 = arith.truncf %3 : vector<64x128xf32> to vector<64x128xbf16>
    %c0_2 = arith.constant 0 : index
    %c0_3 = arith.constant 0 : index
    %c0_4 = arith.constant 0 : index
    %5 = vector.load %arg4[%c0_2, %c0_3, %c0_4] : memref<1x128x384xbf16, #tpu.memory_space<vmem>>, vector<1x128x384xbf16>
    %6 = vector.shape_cast %5 : vector<1x128x384xbf16> to vector<128x384xbf16>
    %cst = arith.constant dense<0.000000e+00> : vector<64x384xf32>
    %7 = tpu.matmul %4, %6, %cst {dimension_numbers = #tpu.dot_dimension_numbers<[1], [0], [0], [1], [0, 0, 1, 1], [], []>} : vector<64x128xbf16>, vector<128x384xbf16>, vector<64x384xf32> -> vector<64x384xf32>
    %c0_5 = arith.constant 0 : index
    %c0_6 = arith.constant 0 : index
    %c0_7 = arith.constant 0 : index
    %8 = vector.load %arg5[%c0_5, %c0_6, %c0_7] : memref<1x1x384xf32, #tpu.memory_space<vmem>>, vector<1x1x384xf32>
    %9 = vector.shape_cast %8 : vector<1x1x384xf32> to vector<1x384xf32>
    %10 = vector.broadcast %9 : vector<1x384xf32> to vector<64x384xf32>
    %11 = arith.addf %7, %10 : vector<64x384xf32>
    %12 = vector.extract_strided_slice %11 {offsets = [0, 0], sizes = [64, 128], strides = [1, 1]} : vector<64x384xf32> to vector<64x128xf32>
    %13 = vector.extract_strided_slice %11 {offsets = [0, 128], sizes = [64, 128], strides = [1, 1]} : vector<64x384xf32> to vector<64x128xf32>
    %14 = vector.extract_strided_slice %11 {offsets = [0, 256], sizes = [64, 128], strides = [1, 1]} : vector<64x384xf32> to vector<64x128xf32>
    %15 = vector.shape_cast %12 : vector<64x128xf32> to vector<64x4x32xf32>
    %16 = tpu.transpose %15, [1, 0, 2] : vector<64x4x32xf32> -> vector<4x64x32xf32>
    %17 = vector.shape_cast %13 : vector<64x128xf32> to vector<64x4x32xf32>
    %18 = tpu.transpose %17, [1, 0, 2] : vector<64x4x32xf32> -> vector<4x64x32xf32>
    %19 = vector.shape_cast %14 : vector<64x128xf32> to vector<64x4x32xf32>
    %20 = tpu.transpose %19, [1, 0, 2] : vector<64x4x32xf32> -> vector<4x64x32xf32>
    %c0_8 = arith.constant 0 : index
    %c0_9 = arith.constant 0 : index
    %c0_10 = arith.constant 0 : index
    %21 = vector.load %arg3[%c0_8, %c0_9, %c0_10] : memref<1x64x64xf32, #tpu.memory_space<vmem>>, vector<1x64x64xf32>
    %22 = vector.shape_cast %21 : vector<1x64x64xf32> to vector<64x64xf32>
    %cst_11 = arith.constant 1.000000e+00 : f32
    %23 = vector.broadcast %cst_11 : f32 to vector<64x64xf32>
    %24 = arith.subf %22, %23 : vector<64x64xf32>
    %cst_12 = arith.constant 1.000000e+30 : f32
    %25 = vector.broadcast %cst_12 : f32 to vector<64x64xf32>
    %26 = arith.mulf %24, %25 : vector<64x64xf32>
    %27 = arith.truncf %16 : vector<4x64x32xf32> to vector<4x64x32xbf16>
    %28 = arith.truncf %18 : vector<4x64x32xf32> to vector<4x64x32xbf16>
    "tpu.trace_start"() <{level = 10 : i32, message = "hcd,hrd->hcr"}> : () -> ()
    %cst_13 = arith.constant dense<0.000000e+00> : vector<4x64x64xf32>
    %29 = tpu.matmul %27, %28, %cst_13 {dimension_numbers = #tpu.dot_dimension_numbers<[2], [2], [1], [1], [0, 0, 0, 1, 1, 1], [0], [0]>} : vector<4x64x32xbf16>, vector<4x64x32xbf16>, vector<4x64x64xf32> -> vector<4x64x64xf32>
    "tpu.trace_stop"() : () -> ()
    %30 = vector.shape_cast %26 : vector<64x64xf32> to vector<1x64x64xf32>
    %31 = vector.broadcast %30 : vector<1x64x64xf32> to vector<4x64x64xf32>
    %32 = arith.addf %29, %31 : vector<4x64x64xf32>
    %cst_14 = arith.constant dense<0xFF800000> : vector<4x64xf32>
    %33 = vector.multi_reduction <maximumf>, %32, %cst_14 [2] : vector<4x64x64xf32> to vector<4x64xf32>
    %34 = vector.shape_cast %33 : vector<4x64xf32> to vector<4x64x1xf32>
    %35 = vector.broadcast %34 : vector<4x64x1xf32> to vector<4x64x64xf32>
    %36 = arith.subf %32, %35 : vector<4x64x64xf32>
    %37 = math.exp %36 : vector<4x64x64xf32>
    %38 = vector.shape_cast %22 : vector<64x64xf32> to vector<1x64x64xf32>
    %39 = vector.broadcast %38 : vector<1x64x64xf32> to vector<4x64x64xf32>
    %40 = arith.mulf %37, %39 : vector<4x64x64xf32>
    %cst_15 = arith.constant dense<0.000000e+00> : vector<4x64xf32>
    %41 = vector.multi_reduction <add>, %40, %cst_15 [2] : vector<4x64x64xf32> to vector<4x64xf32>
    %42 = vector.shape_cast %41 : vector<4x64xf32> to vector<4x64x1xf32>
    %cst_16 = arith.constant 0.000000e+00 : f32
    %43 = vector.broadcast %cst_16 : f32 to vector<4x64x1xf32>
    %44 = arith.cmpf ogt, %42, %43 : vector<4x64x1xf32>
    %45 = tpu.reciprocal %42 {approx = true} : vector<4x64x1xf32> -> vector<4x64x1xf32>
    %cst_17 = arith.constant 0.000000e+00 : f32
    %46 = vector.broadcast %cst_17 : f32 to vector<4x64x1xf32>
    %47 = arith.select %44, %45, %46 : vector<4x64x1xi1>, vector<4x64x1xf32>
    %48 = vector.broadcast %47 : vector<4x64x1xf32> to vector<4x64x64xf32>
    %49 = arith.mulf %40, %48 : vector<4x64x64xf32>
    %50 = arith.truncf %49 : vector<4x64x64xf32> to vector<4x64x64xbf16>
    %51 = arith.truncf %20 : vector<4x64x32xf32> to vector<4x64x32xbf16>
    "tpu.trace_start"() <{level = 10 : i32, message = "hcr,hrd->hcd"}> : () -> ()
    %cst_18 = arith.constant dense<0.000000e+00> : vector<4x64x32xf32>
    %52 = tpu.matmul %50, %51, %cst_18 {dimension_numbers = #tpu.dot_dimension_numbers<[2], [1], [1], [2], [0, 0, 0, 1, 1, 2], [0], [0]>} : vector<4x64x64xbf16>, vector<4x64x32xbf16>, vector<4x64x32xf32> -> vector<4x64x32xf32>
    "tpu.trace_stop"() : () -> ()
    %53 = arith.truncf %52 : vector<4x64x32xf32> to vector<4x64x32xbf16>
    %c0_19 = arith.constant 0 : index
    %c0_20 = arith.constant 0 : index
    %c0_21 = arith.constant 0 : index
    %c0_22 = arith.constant 0 : index
    %54 = vector.load %arg6[%c0_19, %c0_20, %c0_21, %c0_22] : memref<1x4x32x128xbf16, #tpu.memory_space<vmem>>, vector<1x4x32x128xbf16>
    %55 = vector.shape_cast %54 : vector<1x4x32x128xbf16> to vector<4x32x128xbf16>
    "tpu.trace_start"() <{level = 10 : i32, message = "hcd,hde->hce"}> : () -> ()
    %cst_23 = arith.constant dense<0.000000e+00> : vector<4x64x128xf32>
    %56 = tpu.matmul %53, %55, %cst_23 {dimension_numbers = #tpu.dot_dimension_numbers<[2], [1], [1], [2], [0, 0, 0, 1, 1, 2], [0], [0]>} : vector<4x64x32xbf16>, vector<4x32x128xbf16>, vector<4x64x128xf32> -> vector<4x64x128xf32>
    "tpu.trace_stop"() : () -> ()
    %cst_24 = arith.constant dense<0.000000e+00> : vector<64x128xf32>
    %57 = vector.multi_reduction <add>, %56, %cst_24 [0] : vector<4x64x128xf32> to vector<64x128xf32>
    %c0_25 = arith.constant 0 : index
    %c0_26 = arith.constant 0 : index
    %c0_27 = arith.constant 0 : index
    %58 = vector.load %arg7[%c0_25, %c0_26, %c0_27] : memref<1x1x128xf32, #tpu.memory_space<vmem>>, vector<1x1x128xf32>
    %59 = vector.shape_cast %58 : vector<1x1x128xf32> to vector<1x128xf32>
    %60 = vector.broadcast %59 : vector<1x128xf32> to vector<64x128xf32>
    %61 = arith.addf %57, %60 : vector<64x128xf32>
    %62 = arith.addf %3, %61 : vector<64x128xf32>
    %c0_28 = arith.constant 0 : index
    %c0_29 = arith.constant 0 : index
    %c0_30 = arith.constant 0 : index
    %63 = vector.load %arg12[%c0_28, %c0_29, %c0_30] : memref<1x1x128xf32, #tpu.memory_space<vmem>>, vector<1x1x128xf32>
    %64 = vector.shape_cast %63 : vector<1x1x128xf32> to vector<1x128xf32>
    %c0_31 = arith.constant 0 : index
    %c0_32 = arith.constant 0 : index
    %c0_33 = arith.constant 0 : index
    %65 = vector.load %arg13[%c0_31, %c0_32, %c0_33] : memref<1x1x128xf32, #tpu.memory_space<vmem>>, vector<1x1x128xf32>
    %66 = vector.shape_cast %65 : vector<1x1x128xf32> to vector<1x128xf32>
    %cst_34 = arith.constant dense<0.000000e+00> : vector<64xf32>
    %67 = vector.multi_reduction <add>, %62, %cst_34 [1] : vector<64x128xf32> to vector<64xf32>
    %68 = vector.shape_cast %67 : vector<64xf32> to vector<64x1xf32>
    %cst_35 = arith.constant 1.280000e+02 : f32
    %69 = vector.broadcast %cst_35 : f32 to vector<64x1xf32>
    %70 = arith.divf %68, %69 : vector<64x1xf32>
    %71 = arith.mulf %62, %62 : vector<64x128xf32>
    %cst_36 = arith.constant dense<0.000000e+00> : vector<64xf32>
    %72 = vector.multi_reduction <add>, %71, %cst_36 [1] : vector<64x128xf32> to vector<64xf32>
    %73 = vector.shape_cast %72 : vector<64xf32> to vector<64x1xf32>
    %cst_37 = arith.constant 1.280000e+02 : f32
    %74 = vector.broadcast %cst_37 : f32 to vector<64x1xf32>
    %75 = arith.divf %73, %74 : vector<64x1xf32>
    %76 = arith.mulf %70, %70 : vector<64x1xf32>
    %77 = arith.subf %75, %76 : vector<64x1xf32>
    %cst_38 = arith.constant 0.000000e+00 : f32
    %78 = vector.broadcast %cst_38 : f32 to vector<64x1xf32>
    %79 = arith.maximumf %77, %78 : vector<64x1xf32>
    %80 = vector.broadcast %70 : vector<64x1xf32> to vector<64x128xf32>
    %81 = arith.subf %62, %80 : vector<64x128xf32>
    %cst_39 = arith.constant 9.99999974E-6 : f32
    %82 = vector.broadcast %cst_39 : f32 to vector<64x1xf32>
    %83 = arith.addf %79, %82 : vector<64x1xf32>
    %84 = math.rsqrt %83 : vector<64x1xf32>
    %85 = vector.broadcast %84 : vector<64x1xf32> to vector<64x128xf32>
    %86 = arith.mulf %81, %85 : vector<64x128xf32>
    %87 = vector.broadcast %64 : vector<1x128xf32> to vector<64x128xf32>
    %88 = arith.mulf %86, %87 : vector<64x128xf32>
    %89 = vector.broadcast %66 : vector<1x128xf32> to vector<64x128xf32>
    %90 = arith.addf %88, %89 : vector<64x128xf32>
    %91 = arith.truncf %90 : vector<64x128xf32> to vector<64x128xbf16>
    %c0_40 = arith.constant 0 : index
    %c0_41 = arith.constant 0 : index
    %c0_42 = arith.constant 0 : index
    %92 = vector.load %arg8[%c0_40, %c0_41, %c0_42] : memref<1x128x512xbf16, #tpu.memory_space<vmem>>, vector<1x128x512xbf16>
    %93 = vector.shape_cast %92 : vector<1x128x512xbf16> to vector<128x512xbf16>
    %cst_43 = arith.constant dense<0.000000e+00> : vector<64x512xf32>
    %94 = tpu.matmul %91, %93, %cst_43 {dimension_numbers = #tpu.dot_dimension_numbers<[1], [0], [0], [1], [0, 0, 1, 1], [], []>} : vector<64x128xbf16>, vector<128x512xbf16>, vector<64x512xf32> -> vector<64x512xf32>
    %c0_44 = arith.constant 0 : index
    %c0_45 = arith.constant 0 : index
    %c0_46 = arith.constant 0 : index
    %95 = vector.load %arg9[%c0_44, %c0_45, %c0_46] : memref<1x1x512xf32, #tpu.memory_space<vmem>>, vector<1x1x512xf32>
    %96 = vector.shape_cast %95 : vector<1x1x512xf32> to vector<1x512xf32>
    %97 = vector.broadcast %96 : vector<1x512xf32> to vector<64x512xf32>
    %98 = arith.addf %94, %97 : vector<64x512xf32>
    %cst_47 = arith.constant 0.000000e+00 : f32
    %99 = vector.broadcast %cst_47 : f32 to vector<64x512xf32>
    %100 = arith.maximumf %98, %99 : vector<64x512xf32>
    %101 = arith.truncf %100 : vector<64x512xf32> to vector<64x512xbf16>
    %c0_48 = arith.constant 0 : index
    %c0_49 = arith.constant 0 : index
    %c0_50 = arith.constant 0 : index
    %102 = vector.load %arg10[%c0_48, %c0_49, %c0_50] : memref<1x512x128xbf16, #tpu.memory_space<vmem>>, vector<1x512x128xbf16>
    %103 = vector.shape_cast %102 : vector<1x512x128xbf16> to vector<512x128xbf16>
    %cst_51 = arith.constant dense<0.000000e+00> : vector<64x128xf32>
    %104 = tpu.matmul %101, %103, %cst_51 {dimension_numbers = #tpu.dot_dimension_numbers<[1], [0], [0], [1], [0, 0, 1, 1], [], []>} : vector<64x512xbf16>, vector<512x128xbf16>, vector<64x128xf32> -> vector<64x128xf32>
    %c0_52 = arith.constant 0 : index
    %c0_53 = arith.constant 0 : index
    %c0_54 = arith.constant 0 : index
    %105 = vector.load %arg11[%c0_52, %c0_53, %c0_54] : memref<1x1x128xf32, #tpu.memory_space<vmem>>, vector<1x1x128xf32>
    %106 = vector.shape_cast %105 : vector<1x1x128xf32> to vector<1x128xf32>
    %107 = vector.broadcast %106 : vector<1x128xf32> to vector<64x128xf32>
    %108 = arith.addf %104, %107 : vector<64x128xf32>
    %109 = arith.addf %90, %108 : vector<64x128xf32>
    %c0_55 = arith.constant 0 : index
    %c0_56 = arith.constant 0 : index
    %c0_57 = arith.constant 0 : index
    %110 = vector.load %arg14[%c0_55, %c0_56, %c0_57] : memref<1x1x128xf32, #tpu.memory_space<vmem>>, vector<1x1x128xf32>
    %111 = vector.shape_cast %110 : vector<1x1x128xf32> to vector<1x128xf32>
    %c0_58 = arith.constant 0 : index
    %c0_59 = arith.constant 0 : index
    %c0_60 = arith.constant 0 : index
    %112 = vector.load %arg15[%c0_58, %c0_59, %c0_60] : memref<1x1x128xf32, #tpu.memory_space<vmem>>, vector<1x1x128xf32>
    %113 = vector.shape_cast %112 : vector<1x1x128xf32> to vector<1x128xf32>
    %cst_61 = arith.constant dense<0.000000e+00> : vector<64xf32>
    %114 = vector.multi_reduction <add>, %109, %cst_61 [1] : vector<64x128xf32> to vector<64xf32>
    %115 = vector.shape_cast %114 : vector<64xf32> to vector<64x1xf32>
    %cst_62 = arith.constant 1.280000e+02 : f32
    %116 = vector.broadcast %cst_62 : f32 to vector<64x1xf32>
    %117 = arith.divf %115, %116 : vector<64x1xf32>
    %118 = arith.mulf %109, %109 : vector<64x128xf32>
    %cst_63 = arith.constant dense<0.000000e+00> : vector<64xf32>
    %119 = vector.multi_reduction <add>, %118, %cst_63 [1] : vector<64x128xf32> to vector<64xf32>
    %120 = vector.shape_cast %119 : vector<64xf32> to vector<64x1xf32>
    %cst_64 = arith.constant 1.280000e+02 : f32
    %121 = vector.broadcast %cst_64 : f32 to vector<64x1xf32>
    %122 = arith.divf %120, %121 : vector<64x1xf32>
    %123 = arith.mulf %117, %117 : vector<64x1xf32>
    %124 = arith.subf %122, %123 : vector<64x1xf32>
    %cst_65 = arith.constant 0.000000e+00 : f32
    %125 = vector.broadcast %cst_65 : f32 to vector<64x1xf32>
    %126 = arith.maximumf %124, %125 : vector<64x1xf32>
    %127 = vector.broadcast %117 : vector<64x1xf32> to vector<64x128xf32>
    %128 = arith.subf %109, %127 : vector<64x128xf32>
    %cst_66 = arith.constant 9.99999974E-6 : f32
    %129 = vector.broadcast %cst_66 : f32 to vector<64x1xf32>
    %130 = arith.addf %126, %129 : vector<64x1xf32>
    %131 = math.rsqrt %130 : vector<64x1xf32>
    %132 = vector.broadcast %131 : vector<64x1xf32> to vector<64x128xf32>
    %133 = arith.mulf %128, %132 : vector<64x128xf32>
    %134 = vector.broadcast %111 : vector<1x128xf32> to vector<64x128xf32>
    %135 = arith.mulf %133, %134 : vector<64x128xf32>
    %136 = vector.broadcast %113 : vector<1x128xf32> to vector<64x128xf32>
    %137 = arith.addf %135, %136 : vector<64x128xf32>
    %c0_67 = arith.constant 0 : index
    %c0_68 = arith.constant 0 : index
    %138 = vector.load %arg17[%c0_67, %c0_68] : memref<64x128xf32, #tpu.memory_space<vmem>>, vector<64x128xf32>
    tpu.vector_store %arg17[%c0_67, %c0_68], %137 {strides = array<i32>} : memref<64x128xf32, #tpu.memory_space<vmem>>, vector<64x128xf32>,
    %c0_69 = arith.constant 0 : index
    %c0_70 = arith.constant 0 : index
    %c0_71 = arith.constant 0 : index
    %c0_72 = arith.constant 0 : index
    %139 = vector.load %arg16[%c0_69, %c0_70, %c0_71, %c0_72] : memref<1x1x64x128xf32, #tpu.memory_space<vmem>>, vector<1x1x64x128xf32>
    %140 = vector.shape_cast %139 : vector<1x1x64x128xf32> to vector<64x128xf32>
    %141 = vector.shape_cast %137 : vector<64x128xf32> to vector<1x1x64x128xf32>
    tpu.vector_store %arg16[%c0_69, %c0_70, %c0_71, %c0_72], %141 {strides = array<i32>} : memref<1x1x64x128xf32, #tpu.memory_space<vmem>>, vector<1x1x64x128xf32>,
    return
  }
  func.func @transform_0(%arg0: i32, %arg1: i32) -> (i32, i32, i32) {
    %c0_i32 = arith.constant 0 : i32
    %c0_i32_0 = arith.constant 0 : i32
    %c0_i32_1 = arith.constant 0 : i32
    return %arg0, %c0_i32, %c0_i32_0 : i32, i32, i32
  }
  func.func @transform_1(%arg0: i32, %arg1: i32) -> (i32, i32, i32) {
    %c0_i32 = arith.constant 0 : i32
    %c0_i32_0 = arith.constant 0 : i32
    %c0_i32_1 = arith.constant 0 : i32
    return %arg0, %c0_i32, %c0_i32_0 : i32, i32, i32
  }
  func.func @transform_2(%arg0: i32, %arg1: i32) -> (i32, i32, i32) {
    %c0_i32 = arith.constant 0 : i32
    %c0_i32_0 = arith.constant 0 : i32
    %c0_i32_1 = arith.constant 0 : i32
    return %arg1, %c0_i32, %c0_i32_0 : i32, i32, i32
  }
  func.func @transform_3(%arg0: i32, %arg1: i32) -> (i32, i32, i32) {
    %c0_i32 = arith.constant 0 : i32
    %c0_i32_0 = arith.constant 0 : i32
    %c0_i32_1 = arith.constant 0 : i32
    return %arg1, %c0_i32, %c0_i32_0 : i32, i32, i32
  }
  func.func @transform_4(%arg0: i32, %arg1: i32) -> (i32, i32, i32, i32) {
    %c0_i32 = arith.constant 0 : i32
    %c0_i32_0 = arith.constant 0 : i32
    %c0_i32_1 = arith.constant 0 : i32
    %c0_i32_2 = arith.constant 0 : i32
    return %arg1, %c0_i32, %c0_i32_0, %c0_i32_1 : i32, i32, i32, i32
  }
  func.func @transform_5(%arg0: i32, %arg1: i32) -> (i32, i32, i32) {
    %c0_i32 = arith.constant 0 : i32
    %c0_i32_0 = arith.constant 0 : i32
    %c0_i32_1 = arith.constant 0 : i32
    return %arg1, %c0_i32, %c0_i32_0 : i32, i32, i32
  }
  func.func @transform_6(%arg0: i32, %arg1: i32) -> (i32, i32, i32) {
    %c0_i32 = arith.constant 0 : i32
    %c0_i32_0 = arith.constant 0 : i32
    %c0_i32_1 = arith.constant 0 : i32
    return %arg1, %c0_i32, %c0_i32_0 : i32, i32, i32
  }
  func.func @transform_7(%arg0: i32, %arg1: i32) -> (i32, i32, i32) {
    %c0_i32 = arith.constant 0 : i32
    %c0_i32_0 = arith.constant 0 : i32
    %c0_i32_1 = arith.constant 0 : i32
    return %arg1, %c0_i32, %c0_i32_0 : i32, i32, i32
  }
  func.func @transform_8(%arg0: i32, %arg1: i32) -> (i32, i32, i32) {
    %c0_i32 = arith.constant 0 : i32
    %c0_i32_0 = arith.constant 0 : i32
    %c0_i32_1 = arith.constant 0 : i32
    return %arg1, %c0_i32, %c0_i32_0 : i32, i32, i32
  }
  func.func @transform_9(%arg0: i32, %arg1: i32) -> (i32, i32, i32) {
    %c0_i32 = arith.constant 0 : i32
    %c0_i32_0 = arith.constant 0 : i32
    %c0_i32_1 = arith.constant 0 : i32
    return %arg1, %c0_i32, %c0_i32_0 : i32, i32, i32
  }
  func.func @transform_10(%arg0: i32, %arg1: i32) -> (i32, i32, i32) {
    %c0_i32 = arith.constant 0 : i32
    %c0_i32_0 = arith.constant 0 : i32
    %c0_i32_1 = arith.constant 0 : i32
    return %arg1, %c0_i32, %c0_i32_0 : i32, i32, i32
  }
  func.func @transform_11(%arg0: i32, %arg1: i32) -> (i32, i32, i32) {
    %c0_i32 = arith.constant 0 : i32
    %c0_i32_0 = arith.constant 0 : i32
    %c0_i32_1 = arith.constant 0 : i32
    return %arg1, %c0_i32, %c0_i32_0 : i32, i32, i32
  }
  func.func @transform_12(%arg0: i32, %arg1: i32) -> (i32, i32, i32) {
    %c0_i32 = arith.constant 0 : i32
    %c0_i32_0 = arith.constant 0 : i32
    %c0_i32_1 = arith.constant 0 : i32
    return %arg1, %c0_i32, %c0_i32_0 : i32, i32, i32
  }
  func.func @transform_13(%arg0: i32, %arg1: i32) -> (i32, i32, i32) {
    %c0_i32 = arith.constant 0 : i32
    %c0_i32_0 = arith.constant 0 : i32
    %c0_i32_1 = arith.constant 0 : i32
    return %arg1, %c0_i32, %c0_i32_0 : i32, i32, i32
  }
  func.func @transform_14(%arg0: i32, %arg1: i32) -> (i32, i32, i32, i32) {
    %c0_i32 = arith.constant 0 : i32
    %c0_i32_0 = arith.constant 0 : i32
    %c0_i32_1 = arith.constant 0 : i32
    return %arg0, %arg1, %c0_i32, %c0_i32_0 : i32, i32, i32, i32
  }
}

</mosaic_0001>

<bundles_post_ra>
// kernel: tpu_custom_call.1
= control target key start
LH: loop header
LB: loop body
LE: loop exit
PB: predicated region body
PF: predicated region fallthrough
CT: control target
= control target key end

     0   :  { %s11679_s0 = inlined_call_operand.hbm [shape: f32[1,64,128], index: 0, kind: input, shape index: {}]   ;;  %s11680_s1 = inlined_call_operand.hbm [shape: f32[1,64,64], index: 1, kind: input, shape index: {}]   ;;  %s11681_s2 = inlined_call_operand.hbm [shape: bf16[2,128,384], index: 2, kind: input, shape index: {}]   ;;  %s11682_s3 = inlined_call_operand.vmem [shape: f32[2,1,384], index: 3, kind: input, shape index: {}]   ;;  %s11683_s4 = inlined_call_operand.hbm [shape: bf16[2,4,32,128], index: 4, kind: input, shape index: {}]   ;;  %s11684_s5 = inlined_call_operand.vmem [shape: f32[2,1,128], index: 5, kind: input, shape index: {}]   ;;  %s11685_s6 = inlined_call_operand.hbm [shape: bf16[2,128,512], index: 6, kind: input, shape index: {}]   ;;  %s11686_s7 = inlined_call_operand.vmem [shape: f32[2,1,512], index: 7, kind: input, shape index: {}]   ;;  %s11687_s8 = inlined_call_operand.hbm [shape: bf16[2,512,128], index: 8, kind: input, shape index: {}]   ;;  %s11688_s9 = inlined_call_operand.vmem [shape: f32[2,1,128], index: 9, kind: input, shape index: {}]   ;;  %s11689_s10 = inlined_call_operand.vmem [shape: f32[2,1,128], index: 10, kind: input, shape index: {}]   ;;  %s11690_s11 = inlined_call_operand.vmem [shape: f32[2,1,128], index: 11, kind: input, shape index: {}]   ;;  %s11691_s12 = inlined_call_operand.vmem [shape: f32[2,1,128], index: 12, kind: input, shape index: {}]   ;;  %s11692_s13 = inlined_call_operand.vmem [shape: f32[2,1,128], index: 13, kind: input, shape index: {}]   ;;  %s11693_s14 = inlined_call_operand.hbm [shape: f32[1,2,64,128], index: 14, kind: output, shape index: {}]  }
   0x1   :  { %11764 = sst [smem:[#allocation56_spill]] %s11679_s0 }
   0x2   :  { %11765 = sst [smem:[#allocation57_spill]] %s11680_s1 }
   0x3   :  { %11766 = sst [smem:[#allocation58_spill]] %s11681_s2 }
   0x4   :  { %11767 = sst [smem:[#allocation59_spill]] %s11682_s3 }
   0x5   :  { %11768 = sst [smem:[#allocation60_spill]] %s11683_s4 }
   0x6   :  { %11769 = sst [smem:[#allocation61_spill]] %s11684_s5 }
   0x7   :  { %11770 = sst [smem:[#allocation62_spill]] %s11685_s6 }
   0x8   :  { %11771 = sst [smem:[#allocation63_spill]] %s11686_s7 }
   0x9   :  { %11772 = sst [smem:[#allocation64_spill]] %s11687_s8 }
   0xa   :  { %11773 = sst [smem:[#allocation65_spill]] %s11688_s9 }
   0xb   :  { %11774 = sst [smem:[#allocation66_spill]] %s11689_s10 }
   0xc   :  { %11775 = sst [smem:[#allocation67_spill]] %s11690_s11 }
   0xd   :  { %11776 = sst [smem:[#allocation68_spill]] %s11691_s12 }
   0xe   :  { %11777 = sst [smem:[#allocation69_spill]] %s11692_s13 }
   0xf   :  { %11778 = sst [smem:[#allocation70_spill]] %s11693_s14 }
  0x10   :  { %19 = vsyncpa [#allocation4], 0 }
  0x11   :  { %20 = vsyncpa [#allocation7], 0 }
  0x12   :  { %21 = vsyncpa [#allocation5], 0 }
  0x13   :  { %23 = vsyncpa [#allocation5 + $0x1], 0  ;;  %s9068_s29 = smov 0   ;;  %s9070_s30 = smov 0  }
  0x14   :  { %s9072_s15 = smov 0   ;;  %s9074_s16 = smov 0  }
  0x15   :  { %s9076_s17 = smov 0   ;;  %s9078_s18 = smov 0  }
  0x16 LB: > { %11779 = sst [smem:[#allocation17_spill]] %s8948_s29  ;;  %s9099_s19 = sadd.s32 4294967295, %s8968_s18   ;;  %s8968_s18 = sphi %s9078_s18, %s29_s18   ;;  %s8964_s17 = sphi %s9076_s17, %s11933_s17   ;;  %s8960_s16 = sphi %s9074_s16, %s11932_s16   ;;  %s8956_s15 = sphi %s9072_s15, %s11931_s15   ;;  %s8952_s30 = sphi %s9070_s30, %s11935_s30   ;;  %s8948_s29 = sphi %s9068_s29, %s11934_s29  }
  0x17   : > { %11780 = sst [smem:[#allocation18_spill]] %s8956_s15  ;;  %s7637_s20 = sadd.s32 4294967294, %s8968_s18  }
  0x18   : > { %11781 = sst [smem:[#allocation19_spill]] %s8960_s16  ;;  %p107_p0 = scmp.ne.s32.totalorder %s8956_s15, %s8952_s30 }
  0x19   : > { %11782 = sst [smem:[#allocation20_spill]] %s8964_s17  ;;  %p108_p1 = scmp.eq.s32.totalorder %s8968_s18, 0 }
  0x1a   : > { %p113_p2 = scmp.ne.s32.totalorder %s8952_s30, %s8948_s29  ;;  %p11699_p3 = scmp.eq.s32.totalorder %s9099_s19, 0 }
  0x1b   : > { %p425_p4 = scmp.eq.s32.totalorder %s9099_s19, 1  ;;  %p9110_p5 = por %p108_p1, %p107_p0 }
  0x1c   : > { %p431_p6 = scmp.eq.s32.totalorder %s7637_s20, 1  ;;  %p9116_p7 = por %p11699_p3, %p113_p2 }
  0x1d   : > { %p9120_p8 = por %p425_p4, %p107_p0  ;;  %p7638_p10 = scmp.ge.s32.totalorder %s8968_s18, 1 }
  0x1e   : > { %s11784_s23 = scalar_select %p9116_p7, 1, 0 }
  0x1f   : > { %s11785_s24 = scalar_select %p9120_p8, 1, 0 }
  0x20   : > { %p9124_p9 = por %p431_p6, %p113_p2  ;;  %p438_p11 = scmp.lt.s32.totalorder %s8968_s18, 3 }
  0x21   : > { %11786 = sst [smem:[#allocation21_spill]] %s11785_s24  ;;  %s8970_s27 = smov [#allocation3]  }
  0x22   : > { %s11787_s25 = scalar_select %p9124_p9, 1, 0 }
  0x23   : > { %p9130_p12 = pnand %p7638_p10, %p438_p11  ;;  %s453_s28 = sshll.u32 %s8970_s27, 4  ;;  %s9134_s28 = int_to_ptr.vmem [resolvable:$true] %s453_s28 }
  0x24   : > { %11788 = sst [smem:[#allocation22_spill]] %s11787_s25  ;;  %p8344_p1 = scmp.lt.s32.totalorder %s8968_s18, 2 }
  0x25   : > { %s11789_s26 = scalar_select %p9130_p12, 1, 0 }
  0x26   : > { %p8318_p13 = pneg %p9130_p12  ;;  %p9148_p4 = pnand %p8344_p1, %p9110_p5 }
  0x27   : > { %s38_s25 = sadd.s32 1, %s8964_s17  ;;  %s11793_s0 = sld [smem:[#allocation56_spill]] }
  0x28   : > { %p9142_p2 = pnand %p8318_p13, %p11699_p3  ;;  %p9153_p6 = scmp.ge.s32.totalorder %s38_s25, 2 }
  0x29   : > { %s11791_s21 = scalar_select %p9148_p4, 1, 0 }
  0x2a   : > { %s11790_s20 = scalar_select %p9142_p2, 1, 0 }
  0x2b   : > { %p11704_p11 = pneg %p9142_p2 }
  0x2d   : > { %s8702_s24 = scalar_lea.hbm %s11793_s0, 1024 }
  0x2e   : > { %p8703_p10 = scmp.ne.s32.totalorder %s11793_s0, %s8702_s24  ;;  %p8709_p1 = scmp.lt.u32.totalorder %s8702_s24, %s11793_s0 }
  0x30   : > { %p8705_p5 = pnand %p11704_p11, %p8703_p10 }
  0x32   : > { %p8706_p13 = pneg %p8705_p5 }
  0x34   : > { %p8711_p0 = pnand %p8709_p1, %p8706_p13 }
  0x36   : > { %8714 = shalt.err (!%p8711_p0)
}
  0x37   : > { %s8715_s14 = scalar_lea.vmem %s9134_s28, 1024  ;;  %p8723_p7 = scmp.lt.s32.totalorder %s9134_s28, %s9134_s28 }
  0x38   : > { %p8716_p3 = scmp.ne.s32.totalorder %s9134_s28, %s8715_s14  ;;  %p8724_p10 = scmp.lt.s32.totalorder %s8715_s14, %s8715_s14 }
  0x3a   : > { %p8718_p9 = pnand %p8716_p3, %p11704_p11  ;;  %p8725_p5 = por %p8724_p10, %p8723_p7 }
  0x3c   : > { %p8719_p8 = pneg %p8718_p9 }
  0x3e   : > { %p8726_p12 = pnand %p8725_p5, %p8719_p8 }
  0x40   : > { %8729 = shalt.err (!%p8726_p12)
}
  0x41   : > { %s11707_s11 = smov 128   ;;  %s11708_s12 = smov 8  }
  0x42   : > { %8321 = dma.hbm_to_vmem [thread:$0]  (!%p9142_p2), %s11793_s0, 1024, %s9134_s28, [#allocation4], %s11707_s11, %s11707_s11, %s11708_s12  }
  0x43   : > { %s483_s24 = sand.u32 1, %s8968_s18   ;;  %s11937_s25 = smov (%p9153_p6, %s38_s25), 0 }
  0x44   : > { %11794 = sst [smem:[#allocation23_spill]] %s11937_s25  ;;  %s9193_s22 = sand.u32 1, %s8956_s15  }
  0x45   : > { %s97_s14 = ssub.s32 %s8964_s17, %s11937_s25  ;;  %s8296_s10 = smul.u32 192, %s9193_s22 }
  0x46   : > { %p98_p3 = scmp.eq.s32.totalorder %s97_s14, 0  ;;  %s8297_s7 = smul.u32 3072, %s8964_s17 }
  0x47   : > { %s11795_s3 = sadd.s32 1, %s8956_s15  ;;  %s11797_s2 = sld [smem:[#allocation58_spill]] }
  0x48   : > { %s9202_s9 = scalar_select %p98_p3, %s8956_s15, %s11795_s3  }
  0x49   : > { %s487_s27 = scalar_lea.vmem [#allocation8], %s8296_s10  ;;  %s9211_s29 = scalar_lea.sflag [#allocation4], %s483_s24 }
  0x4a   : > { %11796 = sst [smem:[#allocation24_spill]] %s9202_s9  ;;  %s494_s13 = sshll.u32 %s487_s27, 4  ;;  %s9209_s13 = int_to_ptr.vmem [resolvable:$true] %s494_s13 }
  0x4b   : > { %p9217_p8 = pneg %p9148_p4 }
  0x4d   : > { %s9207_s28 = scalar_lea.hbm %s11797_s2, %s8297_s7  ;;  %s8735_s10 = scalar_lea.hbm %s11797_s2, 6144 }
  0x4e   : > { %s8730_s14 = scalar_lea.hbm %s9207_s28, 3072  ;;  %p8736_p0 = scmp.lt.u32.totalorder %s9207_s28, %s11797_s2 }
  0x4f   : > { %p8731_p7 = scmp.ne.s32.totalorder %s9207_s28, %s8730_s14  ;;  %p8737_p6 = scmp.lt.u32.totalorder %s8735_s10, %s8730_s14 }
  0x50   : > { %s11798_s3 = scalar_select %p9217_p8, 1, 0 }
  0x51   : > { %p8733_p9 = pnand %p9217_p8, %p8731_p7  ;;  %p8738_p13 = por %p8737_p6, %p8736_p0 }
  0x52   : > { %p8739_p1 = scmp.lt.u32.totalorder %s8730_s14, %s9207_s28 }
  0x53   : > { %p8734_p12 = pneg %p8733_p9 }
  0x54   : > { %p8740_p10 = por %p8739_p1, %p8738_p13 }
  0x56   : > { %p8741_p5 = pnand %p8740_p10, %p8734_p12 }
  0x58   : > { %8744 = shalt.err (!%p8741_p5)
}
  0x59   : > { %s8745_s24 = scalar_lea.vmem %s9209_s13, 3072  ;;  %s8973_s5 = smov [#allocation8]  }
  0x5a   : > { %p8746_p3 = scmp.ne.s32.totalorder %s9209_s13, %s8745_s24  ;;  %s8750_s7 = sshll.u32 %s8973_s5, 4  ;;  %s8751_s7 = int_to_ptr.vmem [resolvable:$false] %s8750_s7 }
  0x5b   : > { %s8752_s16 = scalar_lea.vmem %s8751_s7, 6144  ;;  %p8753_p11 = scmp.lt.s32.totalorder %s9209_s13, %s8751_s7 }
  0x5c   : > { %p8748_p7 = pnand %p8746_p3, %p9217_p8  ;;  %p8754_p2 = scmp.lt.s32.totalorder %s8752_s16, %s8745_s24 }
  0x5e   : > { %p8749_p9 = pneg %p8748_p7  ;;  %p8755_p0 = por %p8754_p2, %p8753_p11 }
  0x60   : > { %p8756_p6 = pnand %p8755_p0, %p8749_p9 }
  0x62   : > { %8759 = shalt.err (!%p8756_p6)
}
  0x63   : > { %s8974_s14 = smov 192   ;;  %s8975_s10 = smov 12  }
  0x64   : > { %8328 = dma.hbm_to_vmem [thread:$0]  (!%p9148_p4), %s9207_s28, 3072, %s9209_s13, %s9211_s29, %s8974_s14, %s8974_s14, %s8975_s10  }
  0x65   : > { %s7643_s27 = sshll.u32 %s9193_s22, 6  ;;  %s7872_s5 = sshll.u32 %s8964_s17, 10 }
  0x66   : > { %s11799_s4 = sld [smem:[#allocation60_spill]]  ;;  %s515_s7 = scalar_lea.vmem [#allocation9], %s7643_s27 }
  0x67   : > { %s522_s16 = sshll.u32 %s515_s7, 4  ;;  %s9248_s16 = int_to_ptr.vmem [resolvable:$true] %s522_s16 }
  0x6c   : > { %s9246_s24 = scalar_lea.hbm %s11799_s4, %s7872_s5  ;;  %s8765_s14 = scalar_lea.hbm %s11799_s4, 2048 }
  0x6d   : > { %s8760_s0 = scalar_lea.hbm %s9246_s24, 1024  ;;  %p8766_p13 = scmp.lt.u32.totalorder %s9246_s24, %s11799_s4 }
  0x6e   : > { %p8761_p2 = scmp.ne.s32.totalorder %s9246_s24, %s8760_s0  ;;  %p8767_p1 = scmp.lt.u32.totalorder %s8765_s14, %s8760_s0 }
  0x6f   : > { %p8769_p5 = scmp.lt.u32.totalorder %s8760_s0, %s9246_s24 }
  0x70   : > { %p8763_p11 = pnand %p8761_p2, %p9217_p8  ;;  %p8768_p10 = por %p8767_p1, %p8766_p13 }
  0x72   : > { %p8764_p12 = pneg %p8763_p11  ;;  %p8770_p3 = por %p8769_p5, %p8768_p10 }
  0x74   : > { %p8771_p7 = pnand %p8770_p3, %p8764_p12 }
  0x76   : > { %8774 = shalt.err (!%p8771_p7)
}
  0x77   : > { %s8775_s10 = scalar_lea.vmem %s9248_s16, 1024  ;;  %s8976_s27 = smov [#allocation9]  }
  0x78   : > { %p8776_p9 = scmp.ne.s32.totalorder %s9248_s16, %s8775_s10  ;;  %s8780_s5 = sshll.u32 %s8976_s27, 4  ;;  %s8781_s5 = int_to_ptr.vmem [resolvable:$false] %s8780_s5 }
  0x79   : > { %s8782_s7 = scalar_lea.vmem %s8781_s5, 2048  ;;  %p8783_p2 = scmp.lt.s32.totalorder %s9248_s16, %s8781_s5 }
  0x7a   : > { %p8778_p0 = pnand %p8776_p9, %p9217_p8  ;;  %p8784_p11 = scmp.lt.s32.totalorder %s8782_s7, %s8775_s10 }
  0x7c   : > { %p8779_p6 = pneg %p8778_p0  ;;  %p8785_p13 = por %p8784_p11, %p8783_p2 }
  0x7e   : > { %p8786_p1 = pnand %p8785_p13, %p8779_p6 }
  0x80   : > { %8789 = shalt.err (!%p8786_p1)
}
  0x81   : > { %s11709_s0 = smov 64   ;;  %s11710_s28 = smov 4  }
  0x82   : > { %8331 = dma.hbm_to_vmem [thread:$0]  (!%p9148_p4), %s9246_s24, 1024, %s9248_s16, %s9211_s29, %s11709_s0, %s11709_s0, %s11710_s28  }
  0x83   : > { %s7646_s13 = sshll.u32 %s9193_s22, 8  ;;  %s7873_s14 = sshll.u32 %s8964_s17, 12 }
  0x84   : > { %s11800_s6 = sld [smem:[#allocation62_spill]]  ;;  %s542_s27 = scalar_lea.vmem [#allocation10], %s7646_s13 }
  0x85   : > { %s549_s5 = sshll.u32 %s542_s27, 4  ;;  %s9286_s5 = int_to_ptr.vmem [resolvable:$true] %s549_s5 }
  0x8a   : > { %s9282_s10 = scalar_lea.hbm %s11800_s6, %s7873_s14  ;;  %s8795_s11 = scalar_lea.hbm %s11800_s6, 8192 }
  0x8b   : > { %s8790_s7 = scalar_lea.hbm %s9282_s10, 4096  ;;  %p8796_p3 = scmp.lt.u32.totalorder %s9282_s10, %s11800_s6 }
  0x8c   : > { %p8791_p12 = scmp.ne.s32.totalorder %s9282_s10, %s8790_s7  ;;  %p8797_p7 = scmp.lt.u32.totalorder %s8795_s11, %s8790_s7 }
  0x8d   : > { %p8799_p0 = scmp.lt.u32.totalorder %s8790_s7, %s9282_s10 }
  0x8e   : > { %p8793_p10 = pnand %p8791_p12, %p9217_p8  ;;  %p8798_p9 = por %p8797_p7, %p8796_p3 }
  0x90   : > { %p8794_p5 = pneg %p8793_p10  ;;  %p8800_p6 = por %p8799_p0, %p8798_p9 }
  0x92   : > { %p8801_p2 = pnand %p8800_p6, %p8794_p5 }
  0x94   : > { %8804 = shalt.err (!%p8801_p2)
}
  0x95   : > { %s8805_s27 = scalar_lea.vmem %s9286_s5, 4096  ;;  %s8979_s24 = smov [#allocation10]  }
  0x96   : > { %p8806_p11 = scmp.ne.s32.totalorder %s9286_s5, %s8805_s27  ;;  %s8810_s16 = sshll.u32 %s8979_s24, 4  ;;  %s8811_s16 = int_to_ptr.vmem [resolvable:$false] %s8810_s16 }
  0x97   : > { %s8812_s0 = scalar_lea.vmem %s8811_s16, 8192  ;;  %p8813_p12 = scmp.lt.s32.totalorder %s9286_s5, %s8811_s16 }
  0x98   : > { %p8808_p13 = pnand %p8806_p11, %p9217_p8  ;;  %p8814_p10 = scmp.lt.s32.totalorder %s8812_s0, %s8805_s27 }
  0x9a   : > { %p8809_p1 = pneg %p8808_p13  ;;  %p8815_p3 = por %p8814_p10, %p8813_p12 }
  0x9c   : > { %p8816_p7 = pnand %p8815_p3, %p8809_p1 }
  0x9e   : > { %8819 = shalt.err (!%p8816_p7)
}
  0x9f   : > { %s8980_s7 = smov 256   ;;  %s8981_s11 = smov 16  }
  0xa0   : > { %8334 = dma.hbm_to_vmem [thread:$0]  (!%p9148_p4), %s9282_s10, 4096, %s9286_s5, %s9211_s29, %s8980_s7, %s8980_s7, %s8981_s11  }
  0xa1   : > { %s8982_s12 = smov [#allocation6]   ;;  %s11801_s8 = sld [smem:[#allocation64_spill]] }
  0xa2   : > { %s469_s24 = sshll.u32 %s8982_s12, 4  ;;  %s570_s0 = scalar_lea.vmem [#allocation11], %s7646_s13  ;;  %s470_s24 = int_to_ptr.vmem [resolvable:$true] %s469_s24 }
  0xa3   : > { %s577_s2 = sshll.u32 %s570_s0, 4  ;;  %s11802_s1 = sld [smem:[#allocation57_spill]]  ;;  %s9342_s2 = int_to_ptr.vmem [resolvable:$true] %s577_s2 }
  0xa4   : > { %p11803_p9 = scmp.ne.s32.totalorder %s11790_s20, 0 }
  0xa6   : > { %p11804_p0 = pneg %p11803_p9 }
  0xa7   : > { %s9315_s27 = scalar_lea.hbm %s11801_s8, %s7873_s14 }
  0xa9   : > { %s8820_s25 = scalar_lea.hbm %s11802_s1, 1024 }
  0xaa   : > { %p8821_p5 = scmp.ne.s32.totalorder %s11802_s1, %s8820_s25  ;;  %p8827_p11 = scmp.lt.u32.totalorder %s8820_s25, %s11802_s1 }
  0xac   : > { %p8823_p6 = pnand %p8821_p5, %p11804_p0 }
  0xae   : > { %p8824_p2 = pneg %p8823_p6 }
  0xb0   : > { %p8829_p13 = pnand %p8827_p11, %p8824_p2 }
  0xb2   : > { %8832 = shalt.err (!%p8829_p13)
}
  0xb3   : > { %s8833_s22 = scalar_lea.vmem %s470_s24, 1024  ;;  %p11805_p12 = pmov %p11804_p0 }
  0xb4   : > { %p8834_p1 = scmp.ne.s32.totalorder %s470_s24, %s8833_s22  ;;  %p8841_p7 = scmp.lt.s32.totalorder %s470_s24, %s470_s24 }
  0xb5   : > { %p8842_p4 = scmp.lt.s32.totalorder %s8833_s22, %s8833_s22 }
  0xb6   : > { %p8836_p10 = pnand %p8834_p1, %p11805_p12 }
  0xb7   : > { %p8843_p8 = por %p8842_p4, %p8841_p7 }
  0xb8   : > { %p8837_p3 = pneg %p8836_p10 }
  0xba   : > { %p8844_p0 = pnand %p8843_p8, %p8837_p3 }
  0xbc   : > { %8847 = shalt.err (!%p8844_p0)
}
  0xbd   : > { %s11806_s4 = smov 8   ;;  %s11807_s6 = smov 128  }
  0xbe   : > { %8324 = dma.hbm_to_vmem [thread:$0]  (!%p11803_p9), %s11802_s1, 1024, %s470_s24, [#allocation7], %s11807_s6, %s11807_s6, %s11806_s4  }
  0xbf   : > { %s8848_s25 = scalar_lea.hbm %s9315_s27, 4096  ;;  %p11808_p8 = scmp.ne.s32.totalorder %s11798_s3, 0 }
  0xc0   : > { %p8849_p4 = scmp.ne.s32.totalorder %s9315_s27, %s8848_s25  ;;  %s8853_s14 = scalar_lea.hbm %s11801_s8, 8192 }
  0xc1   : > { %p8854_p2 = scmp.lt.u32.totalorder %s9315_s27, %s11801_s8  ;;  %p8855_p11 = scmp.lt.u32.totalorder %s8853_s14, %s8848_s25 }
  0xc2   : > { %p8851_p5 = pnand %p8849_p4, %p11808_p8  ;;  %p8857_p1 = scmp.lt.u32.totalorder %s8848_s25, %s9315_s27 }
  0xc3   : > { %p8856_p13 = por %p8855_p11, %p8854_p2 }
  0xc4   : > { %p8852_p6 = pneg %p8851_p5 }
  0xc5   : > { %p8858_p12 = por %p8857_p1, %p8856_p13 }
  0xc7   : > { %p8859_p9 = pnand %p8858_p12, %p8852_p6 }
  0xc9   : > { %8862 = shalt.err (!%p8859_p9)
}
  0xca   : > { %s8863_s11 = scalar_lea.vmem %s9342_s2, 4096  ;;  %s8983_s12 = smov [#allocation11]  }
  0xcb   : > { %p8864_p10 = scmp.ne.s32.totalorder %s9342_s2, %s8863_s11  ;;  %s8868_s24 = sshll.u32 %s8983_s12, 4  ;;  %s8869_s24 = int_to_ptr.vmem [resolvable:$false] %s8868_s24 }
  0xcc   : > { %s8870_s16 = scalar_lea.vmem %s8869_s24, 8192  ;;  %p8871_p0 = scmp.lt.s32.totalorder %s9342_s2, %s8869_s24 }
  0xcd   : > { %p8866_p3 = pnand %p8864_p10, %p11808_p8  ;;  %p8872_p4 = scmp.lt.s32.totalorder %s8870_s16, %s8863_s11 }
  0xcf   : > { %p8867_p7 = pneg %p8866_p3  ;;  %p8873_p5 = por %p8872_p4, %p8871_p0 }
  0xd1   : > { %p8874_p2 = pnand %p8873_p5, %p8867_p7 }
  0xd3   : > { %8877 = shalt.err (!%p8874_p2)
}
  0xd4   : > { %p11809_p6 = scmp.ne.s32.totalorder %s11791_s21, 0  ;;  %s11810_s0 = smov 4  }
  0xd5   : > { %s11811_s10 = smov 64   ;;  %p11812_p8 = scmp.ne.s32.totalorder %s11789_s26, 0 }
  0xd6   : > { %8337 = dma.hbm_to_vmem [thread:$0]  (!%p11809_p6), %s9315_s27, 4096, %s9342_s2, %s9211_s29, %s11811_s10, %s11811_s10, %s11810_s0  }
  0xd7   : > { %619 = sbr.rel (%p11812_p8) target bundleno = 2684 (0xa7c), region = 76 }
  0xde   : > { %p11813_p11 = scmp.eq.s32.totalorder %s9099_s19, 0 }
  0xe0   : > { %8931 = dma.done.wait (%p11813_p11), [#allocation4], 1024   ;;  %p11814_p13 = pmov %p11813_p11 }
  0xe1   : > { %p11815_p1 = pmov %p11813_p11 }
  0xe2   : > { %8933 = vsyncadd (%p11814_p13), [#allocation4], 4294966272 }
  0xe3   : > { %8935 = dma.done.wait (%p11815_p1), [#allocation7], 1024   ;;  %p11816_p12 = pmov %p11815_p1 }
  0xe4   : > { %s629_s21 = sand.u32 1, %s9099_s19   ;;  %s9381_s2 = sand.u32 1, %s8952_s30  }
  0xe5   : > { %8937 = vsyncadd (%p11816_p12), [#allocation7], 4294966272  ;;  %s8298_s26 = smul.u32 192, %s9381_s2  ;;  %s630_s29 = scalar_lea.sflag [#allocation4], %s629_s21 }
  0xe6   : > { %p11817_p9 = scmp.ne.s32.totalorder %s11784_s23, 0 }
  0xe7   : > { %s9384_s3 = scalar_lea.vmem [#allocation8], %s8298_s26 }
  0xe8   : > { %8939 = dma.done.wait (%p11817_p9), %s630_s29, 12288  }
  0xe9   : > { %8941 = vsyncadd (%p11817_p9), %s630_s29, 4294955008  ;;  %s11818_s27 = sld [smem:[#allocation19_spill]]  ;;  %s7655_s28 = sshll.u32 %s9381_s2, 6 }
  0xea   : > { %s7656_s22 = sshll.u32 %s9381_s2, 8  ;;  %s11821_s12 = sld [smem:[#allocation59_spill]] }
  0xeb   : > { %s11822_s10 = sld [smem:[#allocation63_spill]]  ;;  %s11823_s1 = sld [smem:[#allocation66_spill]] }
  0xec   : > { %s11824_s15 = sld [smem:[#allocation67_spill]]  ;;  %s11825_s14 = sld [smem:[#allocation68_spill]] }
  0xed   : > { %s11826_s11 = sld [smem:[#allocation69_spill]]  ;;  %s9432_s17 = scalar_lea.vmem [#allocation9], %s7655_s28 }
  0xee   : > { %s9436_s16 = scalar_lea.vmem [#allocation11], %s7656_s22  ;;  %s9438_s0 = scalar_lea.vmem [#allocation12], %s7655_s28 }
  0xef   : > { %p746_p10 = scmp.lt.s32.totalorder %s11818_s27, 1  ;;  %p7660_p3 = scmp.ne.s32.totalorder %s11818_s27, 0 }
  0xf0   : > { %v777_v0 = vld [vmem:[#allocation3] sm:$0xff] (!%p7660_p3)  ;;  %v778_v1 = vld [vmem:[#allocation3 + $0x8] sm:$0xff] (!%p7660_p3)  ;;  %v779_v2 = vld [vmem:[#allocation3 + $0x10] sm:$0xff] (!%p7660_p3) }
  0xf1   : > { %s9394_s19 = scalar_select %p746_p10, %s11818_s27, 1 }
  0xf2   : > { %776 = sbr.rel (%p7660_p3) target bundleno = 249 (0xf9), region = 104  ;;  %785 = vst [vmem:[#allocation2] sm:$0xff] (!%p7660_p3), %v777_v0  ;;  %786 = vst [vmem:[#allocation2 + $0x8] sm:$0xff] (!%p7660_p3), %v778_v1  ;;  %v780_v3 = vld [vmem:[#allocation3 + $0x18] sm:$0xff] (!%p7660_p3)  ;;  %v781_v4 = vld [vmem:[#allocation3 + $0x20] sm:$0xff] (!%p7660_p3) }
  0xf3   : > { %s8299_s4 = smul.u32 3, %s9394_s19  ;;  %s7659_s25 = sshll.u32 %s9394_s19, 2  ;;  %787 = vst [vmem:[#allocation2 + $0x10] sm:$0xff] (!%p7660_p3), %v779_v2  ;;  %v782_v5 = vld [vmem:[#allocation3 + $0x28] sm:$0xff] (!%p7660_p3)  ;;  %788 = vst [vmem:[#allocation2 + $0x18] sm:$0xff] (!%p7660_p3), %v780_v3  ;;  %v783_v6 = vld [vmem:[#allocation3 + $0x30] sm:$0xff] (!%p7660_p3) }
  0xf4   : > { %s9414_s21 = scalar_lea.vmem %s11822_s10, %s7659_s25  ;;  %s762_s23 = scalar_lea.vmem %s11823_s1, %s9394_s19  ;;  %789 = vst [vmem:[#allocation2 + $0x20] sm:$0xff] (!%p7660_p3), %v781_v4  ;;  %790 = vst [vmem:[#allocation2 + $0x28] sm:$0xff] (!%p7660_p3), %v782_v5  ;;  %v784_v7 = vld [vmem:[#allocation3 + $0x38] sm:$0xff] (!%p7660_p3) }
  0xf5   : > { %s9409_s24 = scalar_lea.vmem %s11821_s12, %s8299_s4  ;;  %s765_s8 = scalar_lea.vmem %s11824_s15, %s9394_s19  ;;  %791 = vst [vmem:[#allocation2 + $0x30] sm:$0xff] (!%p7660_p3), %v783_v6  ;;  %792 = vst [vmem:[#allocation2 + $0x38] sm:$0xff] (!%p7660_p3), %v784_v7 }
  0xf6   : > { %s768_s5 = scalar_lea.vmem %s11825_s14, %s9394_s19  ;;  %s771_s12 = scalar_lea.vmem %s11826_s11, %s9394_s19 }
  0xf7   : > { %s9434_s25 = scalar_lea.vmem [#allocation10], %s7656_s22 }
  0xf9 PF: > { %v8414_v8 = vld [vmem:[%s9384_s3 + $0x4] ss:$12 sps:$4 sm:$0xff]   ;;  %v8416_v9 = vld [vmem:[%s9384_s3] ss:$12 sps:$4 sm:$0xff]   ;;  %v11720_v10 = vmov 0   ;;  %v839_v45 = vlaneseq  ;;  %s8985_s1 = smov 96  }
  0xfa   : > { %1014 = vmatprep.mubr.bf16.mxu0 %v11720_v10  ;;  %982 = vmatprep.subr.bf16.mxu0 %v8414_v8  ;;  %v8417_v11 = vld [vmem:[%s9384_s3 + $0x1c] ss:$12 sps:$4 sm:$0xff]   ;;  %v8419_v12 = vld [vmem:[%s9384_s3 + $0x18] ss:$12 sps:$4 sm:$0xff]   ;;  %v8420_v13 = vld [vmem:[%s9384_s3 + $0x34] ss:$12 sps:$4 sm:$0xff]  }
  0xfb   : > { %983 = vmatpush1.bf16.msra.mxu0 %v8416_v9  ;;  %v8422_v14 = vld [vmem:[%s9384_s3 + $0x30] ss:$12 sps:$4 sm:$0xff]   ;;  %v8423_v15 = vld [vmem:[%s9384_s3 + $0x4c] ss:$12 sps:$4 sm:$0xff]   ;;  %v793_v16 = vld [vmem:[#allocation2] sm:$0xff]  ;;  %v9469_v46 = vshrl.u32 %v839_v45, 7 }
  0xfc   : > { %984 = vmatprep.subr.bf16.mxu0 %v8417_v11  ;;  %v8425_v17 = vld [vmem:[%s9384_s3 + $0x48] ss:$12 sps:$4 sm:$0xff]   ;;  %v8426_v19 = vld [vmem:[%s9384_s3 + $0x64] ss:$12 sps:$4 sm:$0xff]   ;;  %v8428_v21 = vld [vmem:[%s9384_s3 + $0x60] ss:$12 sps:$4 sm:$0xff]  }
  0xfd   : > { %v794_v18 = vld [vmem:[#allocation2 + $0x8] sm:$0xff]  ;;  %v8440_v25 = vld [vmem:[%s9384_s3 + $0x38] ss:$12 sps:$4 sm:$0xff]   ;;  %v8432_v27 = vld [vmem:[%s9384_s3 + $0x94] ss:$12 sps:$4 sm:$0xff]   ;;  %11827 = vst [vmem:[#allocation25_spill] sm:$0xff] %v9469_v46 }
  0xfe   : > { %v801_v20 = vpack.c.bf16 %v794_v18, %v793_v16  ;;  %v8438_v22 = vld [vmem:[%s9384_s3 + $0x8] ss:$12 sps:$4 sm:$0xff]   ;;  %v8439_v23 = vld [vmem:[%s9384_s3 + $0x20] ss:$12 sps:$4 sm:$0xff]   ;;  %v8431_v26 = vld [vmem:[%s9384_s3 + $0x78] ss:$12 sps:$4 sm:$0xff]  }
  0xff   : > { %985 = vmatpush1.bf16.msra.mxu0 %v8419_v12  ;;  %v8429_v24 = vld [vmem:[%s9384_s3 + $0x7c] ss:$12 sps:$4 sm:$0xff]   ;;  %8056 = vmatprep.subr.bf16.mxu1 %v8438_v22  ;;  %v8435_v30 = vld [vmem:[%s9384_s3 + $0xac] ss:$12 sps:$4 sm:$0xff]   ;;  %v795_v35 = vld [vmem:[#allocation2 + $0x10] sm:$0xff]  ;;  %v11719_v47 = vsub.s32 0, %v9469_v46 }
 0x100   : > { %986 = vmatprep.subr.bf16.mxu0 %v8420_v13  ;;  %8072 = vmatprep.mubr.bf16.mxu1 %v801_v20  ;;  %v8434_v28 = vld [vmem:[%s9384_s3 + $0x90] ss:$12 sps:$4 sm:$0xff]   ;;  %v8442_v31 = vld [vmem:[%s9384_s3 + $0x68] ss:$12 sps:$4 sm:$0xff]   ;;  %v8443_v33 = vld [vmem:[%s9384_s3 + $0x80] ss:$12 sps:$4 sm:$0xff]  }
 0x101   : > { %8057 = vmatpush3.bf16.msra.mxu1 %v8438_v22  ;;  %v8441_v29 = vld [vmem:[%s9384_s3 + $0x50] ss:$12 sps:$4 sm:$0xff]   ;;  %v8437_v32 = vld [vmem:[%s9384_s3 + $0xa8] ss:$12 sps:$4 sm:$0xff]   ;;  %v8444_v34 = vld [vmem:[%s9384_s3 + $0x98] ss:$12 sps:$4 sm:$0xff]  }
 0x102   : > { %8058 = vmatprep.subr.bf16.mxu1 %v8439_v23  ;;  %v796_v36 = vld [vmem:[#allocation2 + $0x18] sm:$0xff]  ;;  %v797_v39 = vld [vmem:[#allocation2 + $0x20] sm:$0xff]  ;;  %v798_v40 = vld [vmem:[#allocation2 + $0x28] sm:$0xff]  ;;  %v11718_v49 = vsub.s32 1, %v9469_v46  ;;  %s8987_s27 = smov 32   ;;  %vm4680_vm0 = vcmask 261120  }
 0x103   : > { %987 = vmatpush1.bf16.msra.mxu0 %v8422_v14  ;;  %v8445_v37 = vld [vmem:[%s9384_s3 + $0xb0] ss:$12 sps:$4 sm:$0xff]   ;;  %v802_v38 = vpack.c.bf16 %v796_v36, %v795_v35  ;;  %v803_v41 = vpack.c.bf16 %v798_v40, %v797_v39  ;;  %v9473_v48 = vld [vmem:[%s9409_s24] sm:$0x7]  ;;  %s8986_s3 = smov 64   ;;  %vm5037_vm1 = vcmask 523264  }
 0x104   : > { %988 = vmatprep.subr.bf16.mxu0 %v8423_v15  ;;  %v799_v42 = vld [vmem:[#allocation2 + $0x30] sm:$0xff]  ;;  %v800_v43 = vld [vmem:[#allocation2 + $0x38] sm:$0xff]  ;;  %v842_v50 = vrot.slane %v9473_v48, %v11719_v47  ;;  %v9482_v51 = vrot.slane %v9473_v48, %v11718_v49  ;;  %s11910_s22 = sld [smem:[#allocation61_spill]]  ;;  %s7376_s28 = scalar_lea.sflag [#allocation5], %s9381_s2 }
 0x105   : > { %8059 = vmatpush3.bf16.msra.mxu1 %v8439_v23  ;;  %v804_v44 = vpack.c.bf16 %v800_v43, %v799_v42 }
 0x106   : > { %8060 = vmatprep.subr.bf16.mxu1 %v8440_v25 }
 0x107   : > { %989 = vmatpush1.bf16.msra.mxu0 %v8425_v17 }
 0x108   : > { %990 = vmatprep.subr.bf16.mxu0 %v8426_v19 }
 0x109   : > { %8061 = vmatpush3.bf16.msra.mxu1 %v8440_v25 }
 0x10a   : > { %8062 = vmatprep.subr.bf16.mxu1 %v8441_v29  ;;  %s11911_s15 = scalar_lea.vmem %s11910_s22, %s9394_s19 }
 0x10b   : > { %991 = vmatpush1.bf16.msra.mxu0 %v8428_v21  ;;  %v11717_v21 = vsub.s32 2, %v9469_v46 }
 0x10c   : > { %992 = vmatprep.subr.bf16.mxu0 %v8429_v24 }
 0x10d   : > { %8063 = vmatpush3.bf16.msra.mxu1 %v8441_v29  ;;  %v9624_v23 = vrot.slane %v9473_v48, %v11717_v21 }
 0x10e   : > { %8064 = vmatprep.subr.bf16.mxu1 %v8442_v31 }
 0x10f   : > { %993 = vmatpush1.bf16.msra.mxu0 %v8431_v26  ;;  %11828 = vst [vmem:[#allocation26_spill] sm:$0xff] %v9624_v23  ;;  %v8988_v26 = vmov 1983009808  }
 0x110   : > { %994 = vmatprep.subr.bf16.mxu0 %v8432_v27  ;;  %v1203_v27 = vunpack.c.l.s4 %v8988_v26 }
 0x111   : > { %8065 = vmatpush3.bf16.msra.mxu1 %v8442_v31 }
 0x112   : > { %8066 = vmatprep.subr.bf16.mxu1 %v8443_v33 }
 0x113   : > { %995 = vmatpush1.bf16.msra.mxu0 %v8434_v28 }
 0x114   : > { %996 = vmatprep.subr.bf16.mxu0 %v8435_v30  ;;  %v8989_v30 = vmov 1934713408  }
 0x115   : > { %8067 = vmatpush3.bf16.msra.mxu1 %v8443_v33  ;;  %v1235_v31 = vunpack.c.l.s4 %v8989_v30 }
 0x116   : > { %8068 = vmatprep.subr.bf16.mxu1 %v8444_v34 }
 0x117   : > { %997 = vmatpush1.bf16.msra.mxu0 %v8437_v32  ;;  %v1204_v32 = vunpack.c.0.s8 %v1203_v27  ;;  %v1236_v35 = vunpack.c.0.s8 %v1235_v31 }
 0x119   : > { %8069 = vmatpush3.bf16.msra.mxu1 %v8444_v34 }
 0x11a   : > { %1015 = vmatmul.mubr.bf16.vlgmr.msra.gmra.mrb[0].mxu0 %v801_v20  ;;  %8070 = vmatprep.subr.bf16.mxu1 %v8445_v37 }
 0x11b   : > { %1024 = vmatprep.mubr.bf16.mxu0 %v11720_v10 }
 0x11d   : > { %8071 = vmatpush3.bf16.msra.mxu1 %v8445_v37 }
 0x120   : > { %8073 = vmatmul.mubr.bf16.vlgmr.msra.gmra.mrb[0].mxu1 %v802_v38 }
 0x121   : > { %8076 = vmatprep.mubr.bf16.mxu1 %v803_v41 }
 0x122   : > { %1025 = vmatmul.mubr.bf16.gmra.mrb[4].mxu0 %v802_v38  ;;  %v9636_v38 = vsub.s32 %v1204_v32, %v9469_v46 }
 0x123   : > { %1034 = vmatprep.mubr.bf16.mxu0 %v11720_v10 }
 0x128   : > { %8077 = vmatmul.mubr.bf16.gmra.mrb[4].mxu1 %v804_v44 }
 0x12a   : > { %1035 = vmatmul.mubr.bf16.gmra.mrb[8].mxu0 %v803_v41 }
 0x12b   : > { %1044 = vmatprep.mubr.bf16.mxu0 %v11720_v10 }
 0x132   : > { %1045 = vmatmul.mubr.bf16.gmra.mrb[12].mxu0 %v804_v44  ;;  %v9639_v44 = vsub.s32 %v1236_v35, %v9469_v46 }
 0x1ed   : > { %v1016_v52 = vpop.f32.mrb[0].mxu0 }
 0x1ee   : > { %v9484_v53 = vadd.f32 %v1016_v52, %v842_v50  ;;  %v1018_v54 = vpop.f32.mrb[1].mxu0 }
 0x1ef   : > { %v9487_v55 = vadd.f32 %v1018_v54, %v9482_v51  ;;  %v1020_v56 = vpop.f32.mrb[2].mxu0 }
 0x1f0   : > { %v1022_v57 = vpop.f32.mrb[3].mxu0  ;;  %1128 = vrot.lane.b32.xlu0 %v9484_v53, %s8985_s1  ;;  %v9493_v58 = vadd.f32 %v1020_v56, %v842_v50 }
 0x1f1   : > { %2320 = vrot.lane.b32.xlu1 %v9487_v55, %s8986_s3  ;;  %v9508_v1 = vadd.f32 %v1022_v57, %v9482_v51 }
 0x1f3   : > { %v8074_v22 = vpop.f32.mrb[0].mxu1 }
 0x1f4   : > { %1152 = vrot.lane.b32.xlu0 %v9484_v53, %s8986_s3  ;;  %v1089_v24 = vpop.f32.mrb[1].mxu1 }
 0x1f5   : > { %1130 = vrot.lane.b32.xlu1 %v9493_v58, %s8985_s1  ;;  %v1026_v59 = vpop.f32.mrb[4].mxu0  ;;  %v9627_v25 = vadd.f32 %v1089_v24, %v9624_v23  ;;  %v8075_v40 = vpop.f32.mrb[2].mxu1 }
 0x1f6   : > { %v1028_v60 = vpop.f32.mrb[5].mxu0  ;;  %v9514_v4 = vadd.f32 %v1026_v59, %v842_v50  ;;  %v1092_v48 = vpop.f32.mrb[3].mxu1 }
 0x1f7   : > { %v1030_v61 = vpop.f32.mrb[6].mxu0  ;;  %v9545_v15 = vadd.f32 %v1028_v60, %v9482_v51  ;;  %11829 = vst [vmem:[#allocation27_spill] sm:$0xff] %v9627_v25  ;;  %v9652_v60 = vadd.f32 %v8074_v22, %v9624_v23 }
 0x1f8   : > { %1176 = vrot.lane.b32.xlu0 %v9484_v53, %s8987_s27  ;;  %v1032_v62 = vpop.f32.mrb[7].mxu0  ;;  %v9522_v8 = vadd.f32 %v1030_v61, %v842_v50 }
 0x1f9   : > { %1154 = vrot.lane.b32.xlu1 %v9493_v58, %s8986_s3  ;;  %v9548_v16 = vadd.f32 %v1032_v62, %v9482_v51  ;;  %11831 = vst [vmem:[#allocation29_spill] sm:$0xff] %v9652_v60 }
 0x1fc   : > { %2296 = vrot.lane.b32.xlu0 %v9487_v55, %s8985_s1 }
 0x1fd   : > { %1178 = vrot.lane.b32.xlu1 %v9493_v58, %s8987_s27  ;;  %v1036_v63 = vpop.f32.mrb[8].mxu0 }
 0x1fe   : > { %v1038_v0 = vpop.f32.mrb[9].mxu0  ;;  %v9558_v17 = vadd.f32 %v1036_v63, %v842_v50 }
 0x1ff   : > { %v1040_v2 = vpop.f32.mrb[10].mxu0  ;;  %v9575_v19 = vadd.f32 %v1038_v0, %v9482_v51 }
 0x200   : > { %2344 = vrot.lane.b32.xlu0 %v9487_v55, %s8987_s27  ;;  %v1042_v3 = vpop.f32.mrb[11].mxu0  ;;  %v9564_v18 = vadd.f32 %v1040_v2, %v842_v50 }
 0x201   : > { %2322 = vrot.lane.b32.xlu1 %v9508_v1, %s8986_s3  ;;  %v9578_v20 = vadd.f32 %v1042_v3, %v9482_v51 }
 0x204   : > { %2298 = vrot.lane.b32.xlu0 %v9508_v1, %s8985_s1 }
 0x205   : > { %2346 = vrot.lane.b32.xlu1 %v9508_v1, %s8987_s27  ;;  %v1046_v5 = vpop.f32.mrb[12].mxu0 }
 0x206   : > { %v9520_v6 = vadd.f32 %v1046_v5, %v842_v50  ;;  %v1048_v7 = vpop.f32.mrb[13].mxu0 }
 0x207   : > { %v9525_v9 = vadd.f32 %v1048_v7, %v9482_v51  ;;  %v1050_v11 = vpop.f32.mrb[14].mxu0 }
 0x208   : > { %1132 = vrot.lane.b32.xlu0 %v9514_v4, %s8985_s1  ;;  %v9529_v12 = vadd.f32 %v1050_v11, %v842_v50  ;;  %v1052_v13 = vpop.f32.mrb[15].mxu0  ;;  %v9658_v11 = vadd.f32 %v8075_v40, %v9624_v23 }
 0x209   : > { %1134 = vrot.lane.b32.xlu1 %v9522_v8, %s8985_s1  ;;  %v9534_v14 = vadd.f32 %v1052_v13, %v9482_v51 }
 0x20a   : > { %11832 = vst [vmem:[#allocation30_spill] sm:$0xff] %v9658_v11 }
 0x20c   : > { %1156 = vrot.lane.b32.xlu0 %v9514_v4, %s8986_s3 }
 0x20d   : > { %1158 = vrot.lane.b32.xlu1 %v9522_v8, %s8986_s3 }
 0x210   : > { %1180 = vrot.lane.b32.xlu0 %v9514_v4, %s8987_s27 }
 0x211   : > { %1182 = vrot.lane.b32.xlu1 %v9522_v8, %s8987_s27 }
 0x214   : > { %2300 = vrot.lane.b32.xlu0 %v9545_v15, %s8985_s1 }
 0x215   : > { %2302 = vrot.lane.b32.xlu1 %v9548_v16, %s8985_s1 }
 0x218   : > { %2324 = vrot.lane.b32.xlu0 %v9545_v15, %s8986_s3 }
 0x219   : > { %2326 = vrot.lane.b32.xlu1 %v9548_v16, %s8986_s3 }
 0x21c   : > { %2348 = vrot.lane.b32.xlu0 %v9545_v15, %s8987_s27 }
 0x21d   : > { %2350 = vrot.lane.b32.xlu1 %v9548_v16, %s8987_s27 }
 0x220   : > { %1136 = vrot.lane.b32.xlu0 %v9558_v17, %s8985_s1 }
 0x221   : > { %1138 = vrot.lane.b32.xlu1 %v9564_v18, %s8985_s1 }
 0x224   : > { %1160 = vrot.lane.b32.xlu0 %v9558_v17, %s8986_s3 }
 0x225   : > { %1162 = vrot.lane.b32.xlu1 %v9564_v18, %s8986_s3 }
 0x228   : > { %2304 = vrot.lane.b32.xlu0 %v9575_v19, %s8985_s1 }
 0x229   : > { %2306 = vrot.lane.b32.xlu1 %v9578_v20, %s8985_s1 }
 0x22c   : > { %2328 = vrot.lane.b32.xlu0 %v9575_v19, %s8986_s3 }
 0x22d   : > { %2330 = vrot.lane.b32.xlu1 %v9578_v20, %s8986_s3 }
 0x230   : > { %2352 = vrot.lane.b32.xlu0 %v9575_v19, %s8987_s27 }
 0x231   : > { %2354 = vrot.lane.b32.xlu1 %v9578_v20, %s8987_s27 }
 0x234   : > { %2308 = vrot.lane.b32.xlu0 %v9525_v9, %s8985_s1 }
 0x235   : > { %2310 = vrot.lane.b32.xlu1 %v9534_v14, %s8985_s1 }
 0x238   : > { %2332 = vrot.lane.b32.xlu0 %v9525_v9, %s8986_s3 }
 0x239   : > { %2334 = vrot.lane.b32.xlu1 %v9534_v14, %s8986_s3 }
 0x23c   : > { %2356 = vrot.lane.b32.xlu0 %v9525_v9, %s8987_s27 }
 0x23d   : > { %2358 = vrot.lane.b32.xlu1 %v9534_v14, %s8987_s27 }
 0x240   : > { %1184 = vrot.lane.b32.xlu0 %v9558_v17, %s8987_s27 }
 0x241   : > { %1186 = vrot.lane.b32.xlu1 %v9564_v18, %s8987_s27 }
 0x244   : > { %1140 = vrot.lane.b32.xlu0 %v9520_v6, %s8985_s1 }
 0x245   : > { %1142 = vrot.lane.b32.xlu1 %v9529_v12, %s8985_s1 }
 0x248   : > { %1164 = vrot.lane.b32.xlu0 %v9520_v6, %s8986_s3 }
 0x249   : > { %1166 = vrot.lane.b32.xlu1 %v9529_v12, %s8986_s3 }
 0x24c   : > { %1188 = vrot.lane.b32.xlu0 %v9520_v6, %s8987_s27 }
 0x24d   : > { %1190 = vrot.lane.b32.xlu1 %v9529_v12, %s8987_s27 }
 0x251   : > { %3464 = vrot.lane.b32.xlu1 %v9627_v25, %s8985_s1 }
 0x255   : > { %3488 = vrot.lane.b32.xlu1 %v9627_v25, %s8986_s3 }
 0x262   : > { %v1129_v28 = vpop.permute.xlu0 %1128 }
 0x263   : > { %v2321_v29 = vpop.permute.xlu1 %2320 }
 0x264   : > { %v2368_v54 = vcombine.low %v9487_v55, %v2321_v29  ;;  %v2369_v3 = vcombine.high %v9487_v55, %v2321_v29 }
 0x266   : > { %v1153_v33 = vpop.permute.xlu0 %1152  ;;  %v2376_v40 = vrot.slane %v2368_v54, %v9636_v38 }
 0x267   : > { %v1131_v34 = vpop.permute.xlu1 %1130  ;;  %v1200_v36 = vcombine.low %v9484_v53, %v1153_v33  ;;  %v1201_v37 = vcombine.high %v9484_v53, %v1153_v33  ;;  %v9646_v53 = vadd.f32 %v1092_v48, %v9624_v23 }
 0x269   : > { %v1208_v45 = vrot.slane %v1200_v36, %v9636_v38  ;;  %v1215_v50 = vrot.slane %v1201_v37, %v9636_v38  ;;  %11830 = vst [vmem:[#allocation28_spill] sm:$0xff] %v9646_v53  ;;  %3490 = vrot.lane.b32.xlu1 %v9646_v53, %s8986_s3  ;;  %3466 = vrot.lane.b32.xlu0 %v9646_v53, %s8985_s1 }
 0x26a   : > { %v1177_v39 = vpop.permute.xlu0 %1176 }
 0x26b   : > { %v1216_v41 = vcombine.low %v1129_v28, %v1177_v39  ;;  %v1217_v42 = vcombine.high %v1129_v28, %v1177_v39  ;;  %v1155_v43 = vpop.permute.xlu1 %1154 }
 0x26c   : > { %v1268_v56 = vcombine.low %v9493_v58, %v1155_v43  ;;  %v1269_v57 = vcombine.high %v9493_v58, %v1155_v43 }
 0x26d   : > { %v1224_v51 = vrot.slane %v1216_v41, %v9636_v38  ;;  %v1231_v52 = vrot.slane %v1217_v42, %v9636_v38  ;;  %3514 = vrot.lane.b32.xlu1 %v9646_v53, %s8987_s27  ;;  %3512 = vrot.lane.b32.xlu0 %v9627_v25, %s8987_s27  ;;  %v2383_v41 = vrot.slane %v2369_v3, %v9636_v38 }
 0x26e   : > { %v2297_v59 = vpop.permute.xlu0 %2296  ;;  %v1276_v26 = vrot.slane %v1268_v56, %v9636_v38  ;;  %v1283_v55 = vrot.slane %v1269_v57, %v9636_v38 }
 0x26f   : > { %v1232_v61 = vcombine.low %v1208_v45, %v1224_v51  ;;  %v1233_v62 = vcombine.high %v1208_v45, %v1224_v51  ;;  %v1248_v63 = vcombine.low %v1215_v50, %v1231_v52  ;;  %v1249_v0 = vcombine.high %v1215_v50, %v1231_v52  ;;  %v1179_v2 = vpop.permute.xlu1 %1178 }
 0x270   : > { %v1284_v5 = vcombine.low %v1131_v34, %v1179_v2  ;;  %v1285_v7 = vcombine.high %v1131_v34, %v1179_v2 }
 0x271   : > { %v1240_v58 = vrot.slane %v1232_v61, %v9639_v44  ;;  %v1247_v13 = vrot.slane %v1233_v62, %v9639_v44  ;;  %v1256_v22 = vrot.slane %v1248_v63, %v9639_v44  ;;  %v1263_v24 = vrot.slane %v1249_v0, %v9639_v44  ;;  %3470 = vrot.lane.b32.xlu1 %v9658_v11, %s8985_s1 }
 0x272   : > { %v1292_v27 = vrot.slane %v1284_v5, %v9636_v38  ;;  %v1299_v28 = vrot.slane %v1285_v7, %v9636_v38  ;;  %v2345_v29 = vpop.permute.xlu0 %2344  ;;  %3468 = vrot.lane.b32.xlu0 %v9652_v60, %s8985_s1 }
 0x273   : > { %v1744_v30 = vcombine.low %v1240_v58, %v1247_v13  ;;  %v7685_v31 = vcombine.high %v1240_v58, %v1247_v13  ;;  %v1760_v32 = vcombine.low %v1256_v22, %v1263_v24  ;;  %v7686_v33 = vcombine.high %v1256_v22, %v1263_v24  ;;  %v2323_v34 = vpop.permute.xlu1 %2322 }
 0x274   : > { %v1300_v35 = vcombine.low %v1276_v26, %v1292_v27  ;;  %v1301_v36 = vcombine.high %v1276_v26, %v1292_v27  ;;  %v1316_v37 = vcombine.low %v1283_v55, %v1299_v28  ;;  %v1317_v39 = vcombine.high %v1283_v55, %v1299_v28 }
 0x275   : > { %v9677_v42 = vrot.slane %v1744_v30, %v9636_v38  ;;  %v2384_v52 = vcombine.low %v2297_v59, %v2345_v29  ;;  %v2385_v56 = vcombine.high %v2297_v59, %v2345_v29  ;;  %v2436_v57 = vcombine.low %v9508_v1, %v2323_v34  ;;  %3494 = vrot.lane.b32.xlu1 %v9658_v11, %s8986_s3 }
 0x276   : > { %v1308_v43 = vrot.slane %v1300_v35, %v9639_v44  ;;  %v1315_v45 = vrot.slane %v1301_v36, %v9639_v44  ;;  %v1324_v48 = vrot.slane %v1316_v37, %v9639_v44  ;;  %v1331_v50 = vrot.slane %v1317_v39, %v9639_v44  ;;  %v2299_v51 = vpop.permute.xlu0 %2298  ;;  %3492 = vrot.lane.b32.xlu0 %v9652_v60, %s8986_s3 }
 0x277   : > { %11833 = vst [vmem:[#allocation31_spill] sm:$0xff] %v9677_v42  ;;  %v2437_v54 = vcombine.high %v9508_v1, %v2323_v34  ;;  %v2347_v61 = vpop.permute.xlu1 %2346  ;;  %v9688_v62 = vrot.slane %v7685_v31, %v9636_v38  ;;  %v9691_v63 = vrot.slane %v1760_v32, %v9636_v38  ;;  %v9694_v0 = vrot.slane %v7686_v33, %v9636_v38 }
 0x278   : > { %v1812_v2 = vcombine.low %v1308_v43, %v1315_v45  ;;  %v7687_v59 = vcombine.high %v1308_v43, %v1315_v45  ;;  %v1828_v3 = vcombine.low %v1324_v48, %v1331_v50  ;;  %v2392_v1 = vrot.slane %v2384_v52, %v9636_v38 }
 0x279   : > { %11834 = vst [vmem:[#allocation32_spill] sm:$0xff] %v9691_v63  ;;  %11835 = vst [vmem:[#allocation33_spill] sm:$0xff] %v9694_v0  ;;  %v2399_v5 = vrot.slane %v2385_v56, %v9636_v38  ;;  %v7688_v58 = vcombine.high %v1324_v48, %v1331_v50  ;;  %v2444_v13 = vrot.slane %v2436_v57, %v9636_v38  ;;  %3518 = vrot.lane.b32.xlu1 %v9658_v11, %s8987_s27 }
 0x27a   : > { %v9701_v7 = vrot.slane %v1812_v2, %v9636_v38  ;;  %v2451_v22 = vrot.slane %v2437_v54, %v9636_v38  ;;  %v9705_v24 = vpop.permute.xlu0 %1132  ;;  %v2400_v26 = vcombine.low %v2376_v40, %v2392_v1  ;;  %v2401_v55 = vcombine.high %v2376_v40, %v2392_v1  ;;  %3516 = vrot.lane.b32.xlu0 %v9652_v60, %s8987_s27 }
 0x27b   : > { %v2416_v27 = vcombine.low %v2383_v41, %v2399_v5  ;;  %v2417_v28 = vcombine.high %v2383_v41, %v2399_v5  ;;  %v9707_v29 = vpop.permute.xlu1 %1134  ;;  %v2452_v30 = vcombine.low %v2299_v51, %v2347_v61  ;;  %v2453_v31 = vcombine.high %v2299_v51, %v2347_v61 }
 0x27c   : > { %11836 = vst [vmem:[#allocation34_spill] sm:$0xff] %v9701_v7  ;;  %v1776_v32 = vcombine.low %v9677_v42, %v9688_v62  ;;  %v1792_v33 = vcombine.low %v9691_v63, %v9694_v0  ;;  %v2408_v34 = vrot.slane %v2400_v26, %v9639_v44  ;;  %v2415_v35 = vrot.slane %v2401_v55, %v9639_v44 }
 0x27d   : > { %v2424_v36 = vrot.slane %v2416_v27, %v9639_v44  ;;  %v2431_v37 = vrot.slane %v2417_v28, %v9639_v44  ;;  %v9722_v39 = vrot.slane %v7687_v59, %v9636_v38  ;;  %v9725_v40 = vrot.slane %v1828_v3, %v9636_v38 }
 0x27e   : > { %v2460_v41 = vrot.slane %v2452_v30, %v9636_v38  ;;  %v2467_v43 = vrot.slane %v2453_v31, %v9636_v38  ;;  %v1157_v45 = vpop.permute.xlu0 %1156  ;;  %v9730_v48 = vrot.slane %v7688_v58, %v9636_v38  ;;  %v2912_v50 = vcombine.low %v2408_v34, %v2415_v35 }
 0x27f   : > { %11837 = vst [vmem:[#allocation35_spill] sm:$0xff] %v9722_v39  ;;  %11838 = vst [vmem:[#allocation36_spill] sm:$0xff] %v9725_v40  ;;  %v7701_v51 = vcombine.high %v2408_v34, %v2415_v35  ;;  %v1159_v52 = vpop.permute.xlu1 %1158  ;;  %v9733_v56 = vrot.slane %v1776_v32, %v9639_v44  ;;  %v2928_v3 = vcombine.low %v2424_v36, %v2431_v37 }
 0x280   : > { %11839 = vst [vmem:[#allocation37_spill] sm:$0xff] %v9730_v48  ;;  %v2468_v57 = vcombine.low %v2444_v13, %v2460_v41  ;;  %v2469_v54 = vcombine.high %v2444_v13, %v2460_v41  ;;  %v2484_v61 = vcombine.low %v2451_v22, %v2467_v43  ;;  %v2485_v2 = vcombine.high %v2451_v22, %v2467_v43 }
 0x281   : > { %v9740_v59 = vrot.slane %v2912_v50, %v9636_v38  ;;  %v7702_v1 = vcombine.high %v2424_v36, %v2431_v37  ;;  %v9743_v5 = vrot.slane %v1792_v33, %v9639_v44  ;;  %v1336_v27 = vcombine.low %v9514_v4, %v1157_v45 }
 0x282   : > { %v2476_v58 = vrot.slane %v2468_v57, %v9639_v44  ;;  %v2483_v26 = vrot.slane %v2469_v54, %v9639_v44  ;;  %v2492_v55 = vrot.slane %v2484_v61, %v9639_v44  ;;  %v2499_v13 = vrot.slane %v2485_v2, %v9639_v44  ;;  %v1181_v22 = vpop.permute.xlu0 %1180 }
 0x283   : > { %v1337_v28 = vcombine.high %v9514_v4, %v1157_v45  ;;  %v1404_v30 = vcombine.low %v9522_v8, %v1159_v52  ;;  %v1405_v31 = vcombine.high %v9522_v8, %v1159_v52  ;;  %v1183_v32 = vpop.permute.xlu1 %1182  ;;  %v9754_v33 = vrot.slane %v7701_v51, %v9636_v38  ;;  %v9763_v45 = vpop.f32.mrb[4].mxu1 }
 0x284   : > { %v2980_v34 = vcombine.low %v2476_v58, %v2483_v26  ;;  %v7703_v35 = vcombine.high %v2476_v58, %v2483_v26  ;;  %v2996_v36 = vcombine.low %v2492_v55, %v2499_v13  ;;  %v9757_v37 = vrot.slane %v2928_v3, %v9636_v38  ;;  %11840 = vst [vmem:[#allocation38_spill] sm:$0xff] %v9763_v45  ;;  %v9773_v54 = vpop.f32.mrb[5].mxu1 }
 0x285   : > { %v9760_v41 = vrot.slane %v7702_v1, %v9636_v38  ;;  %v7704_v43 = vcombine.high %v2492_v55, %v2499_v13  ;;  %v1344_v4 = vrot.slane %v1336_v27, %v9636_v38  ;;  %v1351_v50 = vrot.slane %v1337_v28, %v9636_v38  ;;  %11841 = vst [vmem:[#allocation39_spill] sm:$0xff] %v9773_v54 }
 0x286   : > { %v9766_v8 = vrot.slane %v2980_v34, %v9636_v38  ;;  %v1412_v51 = vrot.slane %v1404_v30, %v9636_v38  ;;  %v1419_v52 = vrot.slane %v1405_v31, %v9636_v38  ;;  %v9771_v57 = vpop.permute.xlu0 %2300  ;;  %v1352_v61 = vcombine.low %v9705_v24, %v1181_v22 }
 0x287   : > { %v1353_v2 = vcombine.high %v9705_v24, %v1181_v22  ;;  %v1420_v3 = vcombine.low %v9707_v29, %v1183_v32  ;;  %v1421_v1 = vcombine.high %v9707_v29, %v1183_v32  ;;  %v9779_v58 = vpop.permute.xlu1 %2302  ;;  %v9782_v26 = vrot.slane %v7703_v35, %v9636_v38 }
 0x288   : > { %v9785_v55 = vrot.slane %v2996_v36, %v9636_v38  ;;  %v1844_v13 = vcombine.low %v9701_v7, %v9722_v39  ;;  %v1860_v27 = vcombine.low %v9725_v40, %v9730_v48  ;;  %v1360_v24 = vrot.slane %v1352_v61, %v9636_v38 }
 0x289   : > { %v1367_v22 = vrot.slane %v1353_v2, %v9636_v38  ;;  %v1428_v29 = vrot.slane %v1420_v3, %v9636_v38  ;;  %v1435_v28 = vrot.slane %v1421_v1, %v9636_v38  ;;  %v9796_v30 = vrot.slane %v7704_v43, %v9636_v38  ;;  %v9810_v1 = vpop.f32.mrb[6].mxu1 }
 0x28a   : > { %v9801_v32 = vrot.slane %v1844_v13, %v9639_v44  ;;  %v9804_v34 = vrot.slane %v1860_v27, %v9639_v44  ;;  %v9806_v35 = vpop.permute.xlu0 %2324  ;;  %v1368_v36 = vcombine.low %v1344_v4, %v1360_v24  ;;  %v1369_v61 = vcombine.high %v1344_v4, %v1360_v24  ;;  %11842 = vst [vmem:[#allocation40_spill] sm:$0xff] %v9810_v1  ;;  %v9812_v31 = vpop.f32.mrb[7].mxu1 }
 0x28b   : > { %v1384_v2 = vcombine.low %v1351_v50, %v1367_v22  ;;  %v1385_v3 = vcombine.high %v1351_v50, %v1367_v22  ;;  %v9808_v21 = vpop.permute.xlu1 %2326  ;;  %v1436_v43 = vcombine.low %v1412_v51, %v1428_v29  ;;  %v1437_v49 = vcombine.high %v1412_v51, %v1428_v29  ;;  %11843 = vst [vmem:[#allocation41_spill] sm:$0xff] %v9812_v31 }
 0x28c   : > { %v1452_v47 = vcombine.low %v1419_v52, %v1435_v28  ;;  %v1453_v10 = vcombine.high %v1419_v52, %v1435_v28  ;;  %v1376_v13 = vrot.slane %v1368_v36, %v9639_v44  ;;  %v1383_v27 = vrot.slane %v1369_v61, %v9639_v44 }
 0x28d   : > { %v1392_v46 = vrot.slane %v1384_v2, %v9639_v44  ;;  %v1399_v4 = vrot.slane %v1385_v3, %v9639_v44  ;;  %v1444_v50 = vrot.slane %v1436_v43, %v9639_v44  ;;  %v1451_v24 = vrot.slane %v1437_v49, %v9639_v44 }
 0x28e   : > { %v1460_v22 = vrot.slane %v1452_v47, %v9639_v44  ;;  %v1467_v51 = vrot.slane %v1453_v10, %v9639_v44  ;;  %v9822_v29 = vpop.permute.xlu0 %2348  ;;  %v1880_v52 = vcombine.low %v1376_v13, %v1383_v27  ;;  %v7689_v28 = vcombine.high %v1376_v13, %v1383_v27 }
 0x28f   : > { %v1896_v60 = vcombine.low %v1392_v46, %v1399_v4  ;;  %v7690_v36 = vcombine.high %v1392_v46, %v1399_v4  ;;  %v9824_v11 = vpop.permute.xlu1 %2350  ;;  %v1948_v61 = vcombine.low %v1444_v50, %v1451_v24  ;;  %v7691_v2 = vcombine.high %v1444_v50, %v1451_v24 }
 0x290   : > { %v1964_v53 = vcombine.low %v1460_v22, %v1467_v51  ;;  %v7692_v3 = vcombine.high %v1460_v22, %v1467_v51  ;;  %v1887_v43 = vrot.slane %v1880_v52, %v9636_v38  ;;  %v1895_v49 = vrot.slane %v7689_v28, %v9636_v38 }
 0x291   : > { %v1903_v47 = vrot.slane %v1896_v60, %v9636_v38  ;;  %v1911_v10 = vrot.slane %v7690_v36, %v9636_v38  ;;  %v9831_v25 = vrot.slane %v1948_v61, %v9636_v38  ;;  %v9834_v46 = vrot.slane %v7691_v2, %v9636_v38 }
 0x292   : > { %v9837_v13 = vrot.slane %v1964_v53, %v9636_v38  ;;  %v9840_v27 = vrot.slane %v7692_v3, %v9636_v38  ;;  %v9842_v4 = vpop.permute.xlu0 %1136  ;;  %v1912_v50 = vcombine.low %v1887_v43, %v1895_v49  ;;  %v1913_v24 = vcombine.high %v1887_v43, %v1895_v49 }
 0x293   : > { %11844 = vst [vmem:[#allocation42_spill] sm:$0xff] %v9831_v25  ;;  %11845 = vst [vmem:[#allocation43_spill] sm:$0xff] %v9834_v46  ;;  %v1928_v22 = vcombine.low %v1903_v47, %v1911_v10  ;;  %v1929_v60 = vcombine.high %v1903_v47, %v1911_v10  ;;  %v9844_v51 = vpop.permute.xlu1 %1138  ;;  %v1980_v52 = vcombine.low %v9831_v25, %v9834_v46 }
 0x294   : > { %11846 = vst [vmem:[#allocation44_spill] sm:$0xff] %v9837_v13  ;;  %11847 = vst [vmem:[#allocation45_spill] sm:$0xff] %v9840_v27  ;;  %v1809_v28 = vcombine.high %v9733_v56, %v9743_v5  ;;  %v2944_v53 = vcombine.low %v9740_v59, %v9754_v33  ;;  %v2960_v36 = vcombine.low %v9757_v37, %v9760_v41 }
 0x295   : > { %v9855_v61 = vrot.slane %v1912_v50, %v9639_v44  ;;  %v1996_v3 = vcombine.low %v9837_v13, %v9840_v27  ;;  %v9864_v49 = vrot.slane %v1913_v24, %v9639_v44  ;;  %v9867_v47 = vrot.slane %v1928_v22, %v9639_v44 }
 0x296   : > { %v9870_v10 = vrot.slane %v1929_v60, %v9639_v44  ;;  %v9873_v50 = vrot.slane %v1980_v52, %v9639_v44  ;;  %v9875_v1 = vpop.permute.xlu0 %1160  ;;  %v1876_v2 = vcombine.low %v9801_v32, %v9804_v34  ;;  %v1877_v43 = vcombine.high %v9801_v32, %v9804_v34 }
 0x297   : > { %11848 = vst [vmem:[#allocation46_spill] sm:$0xff] %v9864_v49  ;;  %v2504_v24 = vcombine.low %v9545_v15, %v9806_v35  ;;  %v2505_v22 = vcombine.high %v9545_v15, %v9806_v35  ;;  %v9885_v49 = vpop.permute.xlu1 %1162  ;;  %v2572_v60 = vcombine.low %v9548_v16, %v9808_v21  ;;  %v2573_v52 = vcombine.high %v9548_v16, %v9808_v21 }
 0x298   : > { %11849 = vst [vmem:[#allocation47_spill] sm:$0xff] %v9870_v10  ;;  %v2952_v10 = vrot.slane %v2944_v53, %v9639_v44  ;;  %v2968_v31 = vrot.slane %v2960_v36, %v9639_v44  ;;  %v9894_v32 = vrot.slane %v1996_v3, %v9639_v44  ;;  %v11850_v34 = vcombine.low %v9733_v56, %v9743_v5 }
 0x299   : > { %v4652_v15 = vpack.c.bf16 %v1877_v43, %v1809_v28  ;;  %v2512_v35 = vrot.slane %v2504_v24, %v9636_v38  ;;  %v2519_v54 = vrot.slane %v2505_v22, %v9636_v38  ;;  %v2580_v23 = vrot.slane %v2572_v60, %v9636_v38 }
 0x29a   : > { %v4648_v45 = vpack.c.bf16 %v1876_v2, %v11850_v34  ;;  %v2587_v16 = vrot.slane %v2573_v52, %v9636_v38  ;;  %v3012_v21 = vcombine.low %v9766_v8, %v9782_v26  ;;  %v9905_v53 = vpop.permute.xlu0 %2304  ;;  %v2976_v56 = vcombine.low %v2952_v10, %v2968_v31 }
 0x29b   : > { %8104 = vmatprep.mubr.msk.bf16.mxu1 %vm4680_vm0, %v4652_v15  ;;  %v3028_v5 = vcombine.low %v9785_v55, %v9796_v30  ;;  %v2520_v28 = vcombine.low %v9771_v57, %v9822_v29  ;;  %v9913_v36 = vpop.permute.xlu1 %2306  ;;  %v2521_v3 = vcombine.high %v9771_v57, %v9822_v29  ;;  %v2588_v43 = vcombine.low %v9779_v58, %v9824_v11 }
 0x29c   : > { %8088 = vmatprep.mubr.msk.bf16.mxu0 %vm4680_vm0, %v4648_v45  ;;  %v3020_v2 = vrot.slane %v3012_v21, %v9639_v44  ;;  %v2589_v45 = vcombine.high %v9779_v58, %v9824_v11  ;;  %v2977_v22 = vcombine.high %v2952_v10, %v2968_v31  ;;  %v1472_v52 = vcombine.low %v9558_v17, %v9875_v1 }
 0x29d   : > { %v3036_v24 = vrot.slane %v3028_v5, %v9639_v44  ;;  %v2528_v60 = vrot.slane %v2520_v28, %v9636_v38  ;;  %v2535_v34 = vrot.slane %v2521_v3, %v9636_v38  ;;  %v2596_v15 = vrot.slane %v2588_v43, %v9636_v38 }
 0x29e   : > { %v2603_v57 = vrot.slane %v2589_v45, %v9636_v38  ;;  %v1473_v29 = vcombine.high %v9558_v17, %v9875_v1  ;;  %v2329_v21 = vpop.permute.xlu0 %2328 }
 0x29f   : > { %v3044_v27 = vcombine.low %v3020_v2, %v3036_v24  ;;  %v3045_v11 = vcombine.high %v3020_v2, %v3036_v24  ;;  %v2536_v58 = vcombine.low %v2512_v35, %v2528_v60  ;;  %v2537_v5 = vcombine.high %v2512_v35, %v2528_v60  ;;  %v2331_v40 = vpop.permute.xlu1 %2330 }
 0x2a0   : > { %v2552_v31 = vcombine.low %v2519_v54, %v2535_v34  ;;  %v2553_v10 = vcombine.high %v2519_v54, %v2535_v34  ;;  %v2604_v28 = vcombine.low %v2580_v23, %v2596_v15  ;;  %v2605_v13 = vcombine.high %v2580_v23, %v2596_v15 }
 0x2a1   : > { %v4664_v46 = vpack.c.bf16 %v3044_v27, %v2976_v56  ;;  %v4668_v25 = vpack.c.bf16 %v3045_v11, %v2977_v22  ;;  %v2544_v3 = vrot.slane %v2536_v58, %v9639_v44  ;;  %v2551_v43 = vrot.slane %v2537_v5, %v9639_v44 }
 0x2a2   : > { %v2560_v45 = vrot.slane %v2552_v31, %v9639_v44  ;;  %v2567_v17 = vrot.slane %v2553_v10, %v9639_v44  ;;  %v2612_v1 = vrot.slane %v2604_v28, %v9639_v44  ;;  %v2619_v2 = vrot.slane %v2605_v13, %v9639_v44  ;;  %v2353_v60 = vpop.permute.xlu0 %2352 }
 0x2a3   : > { %8280 = vmatprep.subr.msk.bf16.mxu0 %vm4680_vm0, %v4664_v46  ;;  %8284 = vmatprep.subr.msk.bf16.mxu1 %vm4680_vm0, %v4668_v25  ;;  %v4694_v23 = vsel %vm4680_vm0, %v4664_v46, 0  ;;  %v4783_v54 = vsel %vm4680_vm0, %v4668_v25, 0  ;;  %v3048_v27 = vcombine.low %v2544_v3, %v2551_v43  ;;  %v7705_v35 = vcombine.high %v2544_v3, %v2551_v43  ;;  %v2355_v28 = vpop.permute.xlu1 %2354 }
 0x2a4   : > { %8081 = vmatpush3.bf16.xpose.msra.mxu0 %v4694_v23  ;;  %8097 = vmatpush3.bf16.xpose.msra.mxu1 %v4783_v54  ;;  %v3064_v56 = vcombine.low %v2560_v45, %v2567_v17  ;;  %v7706_v24 = vcombine.high %v2560_v45, %v2567_v17  ;;  %v2620_v22 = vcombine.low %v2587_v16, %v2603_v57 }
 0x2a5   : > { %v9942_v34 = vrot.slane %v3048_v27, %v9636_v38  ;;  %v2621_v13 = vcombine.high %v2587_v16, %v2603_v57  ;;  %v3116_v15 = vcombine.low %v2612_v1, %v2619_v2  ;;  %v1540_v11 = vcombine.low %v9564_v18, %v9885_v49 }
 0x2a6   : > { %v9947_v46 = vrot.slane %v7705_v35, %v9636_v38  ;;  %v9950_v25 = vrot.slane %v3064_v56, %v9636_v38  ;;  %v2628_v58 = vrot.slane %v2620_v22, %v9639_v44  ;;  %v7707_v5 = vcombine.high %v2612_v1, %v2619_v2  ;;  %v9982_v56 = vpop.permute.xlu0 %2308 }
 0x2a7   : > { %v9954_v31 = vrot.slane %v7706_v24, %v9636_v38  ;;  %v2635_v10 = vrot.slane %v2621_v13, %v9639_v44  ;;  %v9958_v16 = vrot.slane %v3116_v15, %v9636_v38  ;;  %v9961_v57 = vrot.slane %v1472_v52, %v9636_v38 }
 0x2a8   : > { %v9964_v3 = vrot.slane %v7707_v5, %v9636_v38  ;;  %v9967_v43 = vrot.slane %v1473_v29, %v9636_v38  ;;  %v1541_v45 = vcombine.high %v9564_v18, %v9885_v49  ;;  %v2640_v17 = vcombine.low %v9575_v19, %v2329_v21  ;;  %v10002_v5 = vpop.permute.xlu1 %2310 }
 0x2a9   : > { %v3132_v1 = vcombine.low %v2628_v58, %v2635_v10  ;;  %v7708_v2 = vcombine.high %v2628_v58, %v2635_v10  ;;  %v2641_v23 = vcombine.high %v9575_v19, %v2329_v21  ;;  %v2708_v54 = vcombine.low %v9578_v20, %v2331_v40 }
 0x2aa   : > { %v9975_v52 = vrot.slane %v1540_v11, %v9636_v38  ;;  %v9978_v27 = vrot.slane %v1541_v45, %v9636_v38  ;;  %v2709_v29 = vcombine.high %v9578_v20, %v2331_v40  ;;  %v2656_v35 = vcombine.low %v9905_v53, %v2353_v60 }
 0x2ab   : > { %v9985_v18 = vrot.slane %v3132_v1, %v9636_v38  ;;  %v9988_v49 = vrot.slane %v7708_v2, %v9636_v38  ;;  %v2648_v19 = vrot.slane %v2640_v17, %v9636_v38  ;;  %v2655_v21 = vrot.slane %v2641_v23, %v9636_v38 }
 0x2ac   : > { %v2716_v24 = vrot.slane %v2708_v54, %v9636_v38  ;;  %v2657_v22 = vcombine.high %v9905_v53, %v2353_v60  ;;  %v2664_v20 = vrot.slane %v2656_v35, %v9636_v38  ;;  %v2724_v40 = vcombine.low %v9913_v36, %v2355_v28  ;;  %v2333_v35 = vpop.permute.xlu0 %2332 }
 0x2ad   : > { %v2723_v13 = vrot.slane %v2709_v29, %v9636_v38  ;;  %v2725_v15 = vcombine.high %v9913_v36, %v2355_v28  ;;  %v3080_v11 = vcombine.low %v9942_v34, %v9947_v46  ;;  %v3096_v58 = vcombine.low %v9950_v25, %v9954_v31 }
 0x2ae   : > { %v2671_v10 = vrot.slane %v2657_v22, %v9636_v38  ;;  %v2672_v45 = vcombine.low %v2648_v19, %v2664_v20  ;;  %v2673_v53 = vcombine.high %v2648_v19, %v2664_v20  ;;  %v2732_v60 = vrot.slane %v2724_v40, %v9636_v38 }
 0x2af   : > { %v2739_v17 = vrot.slane %v2725_v15, %v9636_v38  ;;  %v3088_v1 = vrot.slane %v3080_v11, %v9639_v44  ;;  %v3104_v36 = vrot.slane %v3096_v58, %v9639_v44  ;;  %v3148_v28 = vcombine.low %v9958_v16, %v9964_v3 }
 0x2b0   : > { %v2680_v2 = vrot.slane %v2672_v45, %v9639_v44  ;;  %v2687_v23 = vrot.slane %v2673_v53, %v9639_v44  ;;  %v2688_v54 = vcombine.low %v2655_v21, %v2671_v10  ;;  %v2689_v29 = vcombine.high %v2655_v21, %v2671_v10  ;;  %v2335_v10 = vpop.permute.xlu1 %2334 }
 0x2b1   : > { %v2740_v22 = vcombine.low %v2716_v24, %v2732_v60  ;;  %v2741_v19 = vcombine.high %v2716_v24, %v2732_v60  ;;  %v2756_v20 = vcombine.low %v2723_v13, %v2739_v17  ;;  %v2757_v40 = vcombine.high %v2723_v13, %v2739_v17 }
 0x2b2   : > { %v2696_v15 = vrot.slane %v2688_v54, %v9639_v44  ;;  %v2703_v11 = vrot.slane %v2689_v29, %v9639_v44  ;;  %v3184_v48 = vcombine.low %v2680_v2, %v2687_v23  ;;  %v7709_v58 = vcombine.high %v2680_v2, %v2687_v23 }
 0x2b3   : > { %v2748_v7 = vrot.slane %v2740_v22, %v9639_v44  ;;  %v2755_v39 = vrot.slane %v2741_v19, %v9639_v44  ;;  %v10018_v45 = vrot.slane %v2756_v20, %v9639_v44  ;;  %v10021_v21 = vrot.slane %v2757_v40, %v9639_v44  ;;  %v2357_v19 = vpop.permute.xlu0 %2356 }
 0x2b4   : > { %v10024_v24 = vrot.slane %v3184_v48, %v9636_v38  ;;  %v3200_v13 = vcombine.low %v2696_v15, %v2703_v11  ;;  %v7710_v53 = vcombine.high %v2696_v15, %v2703_v11  ;;  %v3156_v60 = vrot.slane %v3148_v28, %v9639_v44 }
 0x2b5   : > { %v10028_v17 = vrot.slane %v7709_v58, %v9636_v38  ;;  %v3252_v2 = vcombine.low %v2748_v7, %v2755_v39  ;;  %v7711_v23 = vcombine.high %v2748_v7, %v2755_v39  ;;  %v3268_v54 = vcombine.low %v10018_v45, %v10021_v21 }
 0x2b6   : > { %11851 = vst [vmem:[#allocation48_spill] sm:$0xff] %v10024_v24  ;;  %v10033_v29 = vrot.slane %v3200_v13, %v9636_v38  ;;  %v10036_v22 = vrot.slane %v7710_v53, %v9636_v38  ;;  %v7712_v48 = vcombine.high %v10018_v45, %v10021_v21  ;;  %v3164_v28 = vcombine.low %v9985_v18, %v9988_v49 }
 0x2b7   : > { %11852 = vst [vmem:[#allocation49_spill] sm:$0xff] %v10028_v17  ;;  %v10043_v20 = vrot.slane %v3252_v2, %v9636_v38  ;;  %v10046_v7 = vrot.slane %v7711_v23, %v9636_v38  ;;  %v10049_v39 = vrot.slane %v3268_v54, %v9636_v38  ;;  %v3112_v40 = vcombine.low %v3088_v1, %v3104_v36  ;;  %v2359_v23 = vpop.permute.xlu1 %2358 }
 0x2b8   : > { %11853 = vst [vmem:[#allocation50_spill] sm:$0xff] %v10033_v29  ;;  %11854 = vst [vmem:[#allocation51_spill] sm:$0xff] %v10036_v22  ;;  %v3172_v15 = vrot.slane %v3164_v28, %v9639_v44  ;;  %v3113_v11 = vcombine.high %v3088_v1, %v3104_v36  ;;  %v2776_v58 = vcombine.low %v9525_v9, %v2333_v35 }
 0x2b9   : > { %11855 = vst [vmem:[#allocation52_spill] sm:$0xff] %v10043_v20  ;;  %11856 = vst [vmem:[#allocation53_spill] sm:$0xff] %v10046_v7  ;;  %v2777_v45 = vcombine.high %v9525_v9, %v2333_v35  ;;  %v2844_v21 = vcombine.low %v9534_v14, %v2335_v10  ;;  %v2845_v13 = vcombine.high %v9534_v14, %v2335_v10 }
 0x2ba   : > { %11857 = vst [vmem:[#allocation54_spill] sm:$0xff] %v10049_v39  ;;  %v2792_v53 = vcombine.low %v9982_v56, %v2357_v19  ;;  %v2793_v2 = vcombine.high %v9982_v56, %v2357_v19  ;;  %v3180_v63 = vcombine.low %v3156_v60, %v3172_v15  ;;  %v3181_v54 = vcombine.high %v3156_v60, %v3172_v15 }
 0x2bb   : > { %v2784_v0 = vrot.slane %v2776_v58, %v9636_v38  ;;  %v2791_v28 = vrot.slane %v2777_v45, %v9636_v38  ;;  %v2852_v1 = vrot.slane %v2844_v21, %v9636_v38  ;;  %v2859_v36 = vrot.slane %v2845_v13, %v9636_v38 }
 0x2bc   : > { %v2800_v9 = vrot.slane %v2792_v53, %v9636_v38  ;;  %v2807_v35 = vrot.slane %v2793_v2, %v9636_v38  ;;  %v4665_v14 = vpack.c.bf16 %v3180_v63, %v3112_v40  ;;  %v4669_v10 = vpack.c.bf16 %v3181_v54, %v3113_v11  ;;  %v1185_v40 = vpop.permute.xlu0 %1184  ;;  %v1187_v53 = vpop.permute.xlu1 %1186 }
 0x2bd   : > { %v2860_v42 = vcombine.low %v10002_v5, %v2359_v23  ;;  %v2861_v56 = vcombine.high %v10002_v5, %v2359_v23 }
 0x2be   : > { %v2808_v19 = vcombine.low %v2784_v0, %v2800_v9  ;;  %v2809_v60 = vcombine.high %v2784_v0, %v2800_v9  ;;  %v2824_v15 = vcombine.low %v2791_v28, %v2807_v35  ;;  %v2825_v58 = vcombine.high %v2791_v28, %v2807_v35  ;;  %8281 = vmatprep.subr.msk.bf16.mxu0 %vm4680_vm0, %v4665_v14 }
 0x2bf   : > { %8285 = vmatprep.subr.msk.bf16.mxu1 %vm4680_vm0, %v4669_v10  ;;  %v4697_v45 = vsel %vm4680_vm0, %v4665_v14, 0  ;;  %v4786_v21 = vsel %vm4680_vm0, %v4669_v10, 0  ;;  %v2868_v13 = vrot.slane %v2860_v42, %v9636_v38  ;;  %v2875_v63 = vrot.slane %v2861_v56, %v9636_v38 }
 0x2c0   : > { %8083 = vmatpush3.bf16.xpose.msra.mxu0 %v4697_v45  ;;  %8099 = vmatpush3.bf16.xpose.msra.mxu1 %v4786_v21  ;;  %v2816_v5 = vrot.slane %v2808_v19, %v9639_v44  ;;  %v2823_v0 = vrot.slane %v2809_v60, %v9639_v44  ;;  %v2832_v11 = vrot.slane %v2824_v15, %v9639_v44 }
 0x2c1   : > { %v2839_v2 = vrot.slane %v2825_v58, %v9639_v44  ;;  %v2876_v23 = vcombine.low %v2852_v1, %v2868_v13  ;;  %v2877_v54 = vcombine.high %v2852_v1, %v2868_v13  ;;  %v2892_v28 = vcombine.low %v2859_v36, %v2875_v63 }
 0x2c2   : > { %v3320_v9 = vcombine.low %v2816_v5, %v2823_v0  ;;  %v7713_v35 = vcombine.high %v2816_v5, %v2823_v0  ;;  %v2893_v42 = vcombine.high %v2859_v36, %v2875_v63  ;;  %v1488_v14 = vcombine.low %v9842_v4, %v1185_v40 }
 0x2c3   : > { %v3336_v10 = vcombine.low %v2832_v11, %v2839_v2  ;;  %v7714_v56 = vcombine.high %v2832_v11, %v2839_v2  ;;  %v2884_v45 = vrot.slane %v2876_v23, %v9639_v44  ;;  %v2891_v19 = vrot.slane %v2877_v54, %v9639_v44  ;;  %v10095_v2 = vpop.permute.xlu0 %1140  ;;  %v10097_v23 = vpop.permute.xlu1 %1142 }
 0x2c4   : > { %v10080_v60 = vrot.slane %v7712_v48, %v9636_v38  ;;  %v10083_v15 = vrot.slane %v3320_v9, %v9636_v38  ;;  %v2900_v1 = vrot.slane %v2892_v28, %v9639_v44  ;;  %v2907_v58 = vrot.slane %v2893_v42, %v9639_v44 }
 0x2c5   : > { %v10088_v36 = vrot.slane %v7713_v35, %v9636_v38  ;;  %v10091_v21 = vrot.slane %v3336_v10, %v9636_v38  ;;  %v3388_v13 = vcombine.low %v2884_v45, %v2891_v19  ;;  %v7715_v63 = vcombine.high %v2884_v45, %v2891_v19 }
 0x2c6   : > { %11858 = vst [vmem:[#allocation55_spill] sm:$0xff] %v10080_v60  ;;  %v3404_v5 = vcombine.low %v2900_v1, %v2907_v58  ;;  %v7716_v0 = vcombine.high %v2900_v1, %v2907_v58  ;;  %v1489_v48 = vcombine.high %v9842_v4, %v1185_v40  ;;  %v1496_v11 = vrot.slane %v1488_v14, %v9636_v38 }
 0x2c7   : > { %v10100_v54 = vrot.slane %v7714_v56, %v9636_v38  ;;  %v10103_v28 = vrot.slane %v3388_v13, %v9636_v38  ;;  %v1556_v9 = vcombine.low %v9844_v51, %v1187_v53  ;;  %v1557_v35 = vcombine.high %v9844_v51, %v1187_v53 }
 0x2c8   : > { %v10108_v42 = vrot.slane %v7715_v63, %v9636_v38  ;;  %v10111_v4 = vrot.slane %v3404_v5, %v9636_v38  ;;  %v1503_v40 = vrot.slane %v1489_v48, %v9636_v38  ;;  %v1504_v14 = vcombine.low %v9961_v57, %v1496_v11 }
 0x2c9   : > { %v10116_v10 = vrot.slane %v7716_v0, %v9636_v38  ;;  %v1505_v56 = vcombine.high %v9961_v57, %v1496_v11  ;;  %v1564_v45 = vrot.slane %v1556_v9, %v9636_v38  ;;  %v1571_v19 = vrot.slane %v1557_v35, %v9636_v38  ;;  %v1165_v9 = vpop.permute.xlu0 %1164  ;;  %v1167_v35 = vpop.permute.xlu1 %1166 }
 0x2ca   : > { %v1512_v51 = vrot.slane %v1504_v14, %v9639_v44  ;;  %v1520_v53 = vcombine.low %v9967_v43, %v1503_v40  ;;  %v1521_v1 = vcombine.high %v9967_v43, %v1503_v40  ;;  %v3216_v58 = vcombine.low %v10024_v24, %v10028_v17 }
 0x2cb   : > { %v1519_v13 = vrot.slane %v1505_v56, %v9639_v44  ;;  %v1572_v63 = vcombine.low %v9975_v52, %v1564_v45  ;;  %v1573_v5 = vcombine.high %v9975_v52, %v1564_v45  ;;  %v1588_v57 = vcombine.low %v9978_v27, %v1571_v19 }
 0x2cc   : > { %v1528_v0 = vrot.slane %v1520_v53, %v9639_v44  ;;  %v1535_v48 = vrot.slane %v1521_v1, %v9639_v44  ;;  %v1589_v11 = vcombine.high %v9978_v27, %v1571_v19  ;;  %v3232_v43 = vcombine.low %v10033_v29, %v10036_v22 }
 0x2cd   : > { %v2016_v40 = vcombine.low %v1512_v51, %v1519_v13  ;;  %v7693_v14 = vcombine.high %v1512_v51, %v1519_v13  ;;  %v1580_v56 = vrot.slane %v1572_v63, %v9639_v44  ;;  %v1587_v24 = vrot.slane %v1573_v5, %v9639_v44 }
 0x2ce   : > { %v2032_v52 = vcombine.low %v1528_v0, %v1535_v48  ;;  %v7694_v45 = vcombine.high %v1528_v0, %v1535_v48  ;;  %v10138_v17 = vrot.slane %v1588_v57, %v9639_v44  ;;  %v10141_v53 = vrot.slane %v1589_v11, %v9639_v44 }
 0x2cf   : > { %v10144_v27 = vrot.slane %v2016_v40, %v9636_v38  ;;  %v2084_v19 = vcombine.low %v1580_v56, %v1587_v24  ;;  %v7695_v1 = vcombine.high %v1580_v56, %v1587_v24  ;;  %v3224_v29 = vrot.slane %v3216_v58, %v9639_v44  ;;  %v1189_v56 = vpop.permute.xlu0 %1188 }
 0x2d0   : > { %v10148_v51 = vrot.slane %v7693_v14, %v9636_v38  ;;  %v10151_v13 = vrot.slane %v2032_v52, %v9636_v38  ;;  %v10154_v63 = vrot.slane %v7694_v45, %v9636_v38  ;;  %v2100_v5 = vcombine.low %v10138_v17, %v10141_v53  ;;  %v1191_v52 = vpop.permute.xlu1 %1190 }
 0x2d1   : > { %v10159_v57 = vrot.slane %v2084_v19, %v9636_v38  ;;  %v7696_v24 = vcombine.high %v10138_v17, %v10141_v53  ;;  %v3240_v58 = vrot.slane %v3232_v43, %v9639_v44  ;;  %v3284_v0 = vcombine.low %v10043_v20, %v10046_v7 }
 0x2d2   : > { %v10167_v48 = vrot.slane %v7695_v1, %v9636_v38  ;;  %v10170_v11 = vrot.slane %v2100_v5, %v9636_v38  ;;  %v3300_v40 = vcombine.low %v10049_v39, %v10080_v60  ;;  %v1608_v14 = vcombine.low %v9520_v6, %v1165_v9 }
 0x2d3   : > { %v3248_v45 = vcombine.low %v3224_v29, %v3240_v58  ;;  %v3292_v17 = vrot.slane %v3284_v0, %v9639_v44  ;;  %v3249_v43 = vcombine.high %v3224_v29, %v3240_v58  ;;  %v1609_v53 = vcombine.high %v9520_v6, %v1165_v9 }
 0x2d4   : > { %v3308_v19 = vrot.slane %v3300_v40, %v9639_v44  ;;  %v1616_v1 = vrot.slane %v1608_v14, %v9636_v38  ;;  %v1676_v5 = vcombine.low %v9529_v12, %v1167_v35  ;;  %v1677_v20 = vcombine.high %v9529_v12, %v1167_v35 }
 0x2d5   : > { %v1623_v39 = vrot.slane %v1609_v53, %v9636_v38  ;;  %v1624_v60 = vcombine.low %v10095_v2, %v1189_v56  ;;  %v1625_v7 = vcombine.high %v10095_v2, %v1189_v56  ;;  %v1692_v22 = vcombine.low %v10097_v23, %v1191_v52 }
 0x2d6   : > { %v3316_v0 = vcombine.low %v3292_v17, %v3308_v19  ;;  %v3317_v29 = vcombine.high %v3292_v17, %v3308_v19  ;;  %v1684_v6 = vrot.slane %v1676_v5, %v9636_v38  ;;  %v1691_v9 = vrot.slane %v1677_v20, %v9636_v38 }
 0x2d7   : > { %v1632_v58 = vrot.slane %v1624_v60, %v9636_v38  ;;  %v1639_v40 = vrot.slane %v1625_v7, %v9636_v38  ;;  %v1693_v12 = vcombine.high %v10097_v23, %v1191_v52  ;;  %v1700_v35 = vrot.slane %v1692_v22, %v9636_v38 }
 0x2d8   : > { %v4666_v14 = vpack.c.bf16 %v3316_v0, %v3248_v45  ;;  %v4670_v53 = vpack.c.bf16 %v3317_v29, %v3249_v43  ;;  %v3352_v2 = vcombine.low %v10083_v15, %v10088_v36  ;;  %v3368_v56 = vcombine.low %v10091_v21, %v10100_v54 }
 0x2d9   : > { %v1640_v17 = vcombine.low %v1616_v1, %v1632_v58  ;;  %v1641_v19 = vcombine.high %v1616_v1, %v1632_v58  ;;  %v1656_v5 = vcombine.low %v1623_v39, %v1639_v40  ;;  %v1657_v20 = vcombine.high %v1623_v39, %v1639_v40 }
 0x2da   : > { %8282 = vmatprep.subr.msk.bf16.mxu0 %vm4680_vm0, %v4666_v14  ;;  %8286 = vmatprep.subr.msk.bf16.mxu1 %vm4680_vm0, %v4670_v53  ;;  %v4700_v7 = vsel %vm4680_vm0, %v4666_v14, 0  ;;  %v4789_v22 = vsel %vm4680_vm0, %v4670_v53, 0  ;;  %v1707_v60 = vrot.slane %v1693_v12, %v9636_v38  ;;  %v1708_v23 = vcombine.low %v1684_v6, %v1700_v35 }
 0x2db   : > { %8085 = vmatpush3.bf16.xpose.msra.mxu0 %v4700_v7  ;;  %8101 = vmatpush3.bf16.xpose.msra.mxu1 %v4789_v22  ;;  %v1648_v52 = vrot.slane %v1640_v17, %v9639_v44  ;;  %v1655_v45 = vrot.slane %v1641_v19, %v9639_v44  ;;  %v1664_v43 = vrot.slane %v1656_v5, %v9639_v44 }
 0x2dc   : > { %v1671_v39 = vrot.slane %v1657_v20, %v9639_v44  ;;  %v1709_v1 = vcombine.high %v1684_v6, %v1700_v35  ;;  %v1716_v0 = vrot.slane %v1708_v23, %v9639_v44  ;;  %v1724_v29 = vcombine.low %v1691_v9, %v1707_v60 }
 0x2dd   : > { %v2152_v58 = vcombine.low %v1648_v52, %v1655_v45  ;;  %v7697_v40 = vcombine.high %v1648_v52, %v1655_v45  ;;  %v1725_v14 = vcombine.high %v1691_v9, %v1707_v60  ;;  %v3360_v12 = vrot.slane %v3352_v2, %v9639_v44 }
 0x2de   : > { %v2168_v53 = vcombine.low %v1664_v43, %v1671_v39  ;;  %v7698_v7 = vcombine.high %v1664_v43, %v1671_v39  ;;  %v1723_v22 = vrot.slane %v1709_v1, %v9639_v44  ;;  %v1732_v17 = vrot.slane %v1724_v29, %v9639_v44 }
 0x2df   : > { %v10209_v19 = vrot.slane %v7696_v24, %v9636_v38  ;;  %v10212_v5 = vrot.slane %v2152_v58, %v9636_v38  ;;  %v1739_v6 = vrot.slane %v1725_v14, %v9639_v44  ;;  %v3376_v35 = vrot.slane %v3368_v56, %v9639_v44 }
 0x2e0   : > { %v10217_v9 = vrot.slane %v7697_v40, %v9636_v38  ;;  %v10220_v2 = vrot.slane %v2168_v53, %v9636_v38  ;;  %v2220_v20 = vcombine.low %v1716_v0, %v1723_v22  ;;  %v7699_v60 = vcombine.high %v1716_v0, %v1723_v22 }
 0x2e1   : > { %v10223_v23 = vrot.slane %v7698_v7, %v9636_v38  ;;  %v2236_v24 = vcombine.low %v1732_v17, %v1739_v6  ;;  %v7700_v52 = vcombine.high %v1732_v17, %v1739_v6  ;;  %v3420_v45 = vcombine.low %v10103_v28, %v10108_v42 }
 0x2e2   : > { %v10228_v43 = vrot.slane %v2220_v20, %v9636_v38  ;;  %v10231_v56 = vrot.slane %v7699_v60, %v9636_v38  ;;  %v3384_v39 = vcombine.low %v3360_v12, %v3376_v35  ;;  %v3436_v1 = vcombine.low %v10111_v4, %v10116_v10 }
 0x2e3   : > { %v10236_v0 = vrot.slane %v2236_v24, %v9636_v38  ;;  %v3428_v29 = vrot.slane %v3420_v45, %v9639_v44  ;;  %v3385_v58 = vcombine.high %v3360_v12, %v3376_v35  ;;  %v2945_v40 = vcombine.high %v9740_v59, %v9754_v33 }
 0x2e4   : > { %v3444_v14 = vrot.slane %v3436_v1, %v9639_v44  ;;  %v2961_v53 = vcombine.high %v9757_v37, %v9760_v41  ;;  %v3013_v7 = vcombine.high %v9766_v8, %v9782_v26  ;;  %v3029_v22 = vcombine.high %v9785_v55, %v9796_v30 }
 0x2e5   : > { %v10249_v17 = vrot.slane %v7700_v52, %v9636_v38  ;;  %v2959_v6 = vrot.slane %v2945_v40, %v9639_v44  ;;  %v1944_v12 = vcombine.low %v9855_v61, %v9867_v47  ;;  %v2012_v59 = vcombine.low %v9873_v50, %v9894_v32 }
 0x2e6   : > { %v3452_v33 = vcombine.low %v3428_v29, %v3444_v14  ;;  %v3453_v35 = vcombine.high %v3428_v29, %v3444_v14  ;;  %v2975_v37 = vrot.slane %v2961_v53, %v9639_v44  ;;  %v3027_v41 = vrot.slane %v3013_v7, %v9639_v44 }
 0x2e7   : > { %v3043_v8 = vrot.slane %v3029_v22, %v9639_v44  ;;  %v4649_v26 = vpack.c.bf16 %v2012_v59, %v1944_v12  ;;  %v1945_v55 = vcombine.high %v9855_v61, %v9867_v47  ;;  %v2048_v30 = vcombine.low %v10144_v27, %v10148_v51 }
 0x2e8   : > { %v4667_v20 = vpack.c.bf16 %v3452_v33, %v3384_v39  ;;  %v4671_v60 = vpack.c.bf16 %v3453_v35, %v3385_v58  ;;  %v2978_v24 = vcombine.low %v2959_v6, %v2975_v37  ;;  %v2013_v52 = vcombine.high %v9873_v50, %v9894_v32 }
 0x2e9   : > { %v3046_v45 = vcombine.low %v3027_v41, %v3043_v8  ;;  %v2979_v1 = vcombine.high %v2959_v6, %v2975_v37  ;;  %v3047_v29 = vcombine.high %v3027_v41, %v3043_v8  ;;  %v2056_v40 = vrot.slane %v2048_v30, %v9639_v44 }
 0x2ea   : > { %8283 = vmatprep.subr.msk.bf16.mxu0 %vm4680_vm0, %v4667_v20  ;;  %8287 = vmatprep.subr.msk.bf16.mxu1 %vm4680_vm0, %v4671_v60  ;;  %v4703_v61 = vsel %vm4680_vm0, %v4667_v20, 0  ;;  %v4792_v47 = vsel %vm4680_vm0, %v4671_v60, 0  ;;  %v2064_v39 = vcombine.low %v10151_v13, %v10154_v63  ;;  %v2116_v58 = vcombine.low %v10159_v57, %v10167_v48 }
 0x2eb   : > { %8087 = vmatpush3.bf16.xpose.msra.mxu0 %v4703_v61  ;;  %8103 = vmatpush3.bf16.xpose.msra.mxu1 %v4792_v47  ;;  %v4672_v50 = vpack.c.bf16 %v3046_v45, %v2978_v24  ;;  %v4676_v32 = vpack.c.bf16 %v3047_v29, %v2979_v1  ;;  %v2132_v14 = vcombine.low %v10170_v11, %v10209_v19  ;;  %v10299_v45 = vpop.permute.xlu1 %3464 }
 0x2ec   : > { %v2072_v53 = vrot.slane %v2064_v39, %v9639_v44  ;;  %v2124_v7 = vrot.slane %v2116_v58, %v9639_v44  ;;  %v3081_v22 = vcombine.high %v9942_v34, %v9947_v46  ;;  %v3097_v6 = vcombine.high %v9950_v25, %v9954_v31 }
 0x2ed   : > { %8288 = vmatprep.subr.msk.bf16.mxu0 %vm4680_vm0, %v4672_v50  ;;  %8292 = vmatprep.subr.msk.bf16.mxu1 %vm4680_vm0, %v4676_v32  ;;  %v4653_v12 = vpack.c.bf16 %v2013_v52, %v1945_v55  ;;  %v2140_v59 = vrot.slane %v2132_v14, %v9639_v44  ;;  %v3149_v33 = vcombine.high %v9958_v16, %v9964_v3 }
 0x2ee   : > { %v2080_v35 = vcombine.low %v2056_v40, %v2072_v53  ;;  %v2081_v37 = vcombine.high %v2056_v40, %v2072_v53  ;;  %v3095_v41 = vrot.slane %v3081_v22, %v9639_v44  ;;  %v3111_v8 = vrot.slane %v3097_v6, %v9639_v44  ;;  %v11860_v6 = vld [vmem:[#allocation33_spill] sm:$0xff] }
 0x2ef   : > { %v2148_v34 = vcombine.low %v2124_v7, %v2140_v59  ;;  %v2149_v46 = vcombine.high %v2124_v7, %v2140_v59  ;;  %v3163_v25 = vrot.slane %v3149_v33, %v9639_v44  ;;  %v3165_v31 = vcombine.high %v9985_v18, %v9988_v49  ;;  %v11859_v7 = vld [vmem:[#allocation31_spill] sm:$0xff] }
 0x2f0   : > { %v3114_v30 = vcombine.low %v3095_v41, %v3111_v8  ;;  %v3115_v55 = vcombine.high %v3095_v41, %v3111_v8  ;;  %v2184_v20 = vcombine.low %v10212_v5, %v10217_v9  ;;  %v2200_v16 = vcombine.low %v10220_v2, %v10223_v23  ;;  %v11864_v8 = vld [vmem:[#allocation37_spill] sm:$0xff] }
 0x2f1   : > { %v4650_v3 = vpack.c.bf16 %v2148_v34, %v2080_v35  ;;  %v4654_v60 = vpack.c.bf16 %v2149_v46, %v2081_v37  ;;  %v3179_v24 = vrot.slane %v3165_v31, %v9639_v44  ;;  %v2252_v52 = vcombine.low %v10228_v43, %v10231_v56  ;;  %v11862_v35 = vld [vmem:[#allocation35_spill] sm:$0xff]  ;;  %v11863_v37 = vld [vmem:[#allocation34_spill] sm:$0xff]  ;;  %v11865_v34 = vld [vmem:[#allocation36_spill] sm:$0xff] }
 0x2f2   : > { %8089 = vmatmul.mubr.msk.bf16.vlgmr.msra.gmra.mrb[16].mxu0 %vm4680_vm0, %v4649_v26  ;;  %8105 = vmatmul.mubr.msk.bf16.vlgmr.msra.gmra.mrb[8].mxu1 %vm4680_vm0, %v4653_v12  ;;  %v4872_v18 = vsel %vm4680_vm0, %v4672_v50, 0  ;;  %v2192_v49 = vrot.slane %v2184_v20, %v9639_v44  ;;  %v2208_v1 = vrot.slane %v2200_v16, %v9639_v44  ;;  %v2268_v29 = vcombine.low %v10236_v0, %v10249_v17  ;;  %v11861_v12 = vld [vmem:[#allocation32_spill] sm:$0xff]  ;;  %v11867_v31 = vld [vmem:[#allocation43_spill] sm:$0xff] }
 0x2f3   : > { %8092 = vmatprep.mubr.msk.bf16.mxu0 %vm4680_vm0, %v4650_v3  ;;  %8108 = vmatprep.mubr.msk.bf16.mxu1 %vm4680_vm0, %v4654_v60  ;;  %v4961_v40 = vsel %vm4680_vm0, %v4676_v32, 0  ;;  %v3182_v61 = vcombine.low %v3163_v25, %v3179_v24  ;;  %v3183_v47 = vcombine.high %v3163_v25, %v3179_v24  ;;  %v2260_v26 = vrot.slane %v2252_v52, %v9639_v44  ;;  %v11866_v25 = vld [vmem:[#allocation42_spill] sm:$0xff]  ;;  %v10332_v3 = vpop.permute.xlu1 %3488 }
 0x2f4   : > { %8113 = vmatpush3.bf16.xpose.msra.mxu0 %v4872_v18  ;;  %8129 = vmatpush3.bf16.xpose.msra.mxu1 %v4961_v40  ;;  %v2216_v39 = vcombine.low %v2192_v49, %v2208_v1  ;;  %v2276_v58 = vrot.slane %v2268_v29, %v9639_v44  ;;  %v2217_v50 = vcombine.high %v2192_v49, %v2208_v1  ;;  %v11869_v29 = vld [vmem:[#allocation49_spill] sm:$0xff]  ;;  %v11870_v40 = vld [vmem:[#allocation48_spill] sm:$0xff] }
 0x2f5   : > { %v4673_v14 = vpack.c.bf16 %v3182_v61, %v3114_v30  ;;  %v4677_v53 = vpack.c.bf16 %v3183_v47, %v3115_v55  ;;  %v1777_v22 = vcombine.high %v11859_v7, %v9688_v62  ;;  %v1793_v59 = vcombine.high %v11861_v12, %v11860_v6  ;;  %v11871_v47 = vld [vmem:[#allocation51_spill] sm:$0xff]  ;;  %v11873_v7 = vld [vmem:[#allocation53_spill] sm:$0xff] }
 0x2f6   : > { %v2284_v33 = vcombine.low %v2260_v26, %v2276_v58  ;;  %v2285_v32 = vcombine.high %v2260_v26, %v2276_v58  ;;  %v1845_v41 = vcombine.high %v11863_v37, %v11862_v35  ;;  %v1861_v46 = vcombine.high %v11865_v34, %v11864_v8  ;;  %v11872_v26 = vld [vmem:[#allocation50_spill] sm:$0xff] }
 0x2f7   : > { %v11868_v20 = vcombine.high %v11866_v25, %v11867_v31  ;;  %8289 = vmatprep.subr.msk.bf16.mxu0 %vm4680_vm0, %v4673_v14  ;;  %8293 = vmatprep.subr.msk.bf16.mxu1 %vm4680_vm0, %v4677_v53  ;;  %v4875_v62 = vsel %vm4680_vm0, %v4673_v14, 0  ;;  %v1791_v55 = vrot.slane %v1777_v22, %v9639_v44  ;;  %v1807_v16 = vrot.slane %v1793_v59, %v9639_v44  ;;  %v11874_v22 = vld [vmem:[#allocation52_spill] sm:$0xff] }
 0x2f8   : > { %v4651_v60 = vpack.c.bf16 %v2284_v33, %v2216_v39  ;;  %v4655_v24 = vpack.c.bf16 %v2285_v32, %v2217_v50  ;;  %v1859_v52 = vrot.slane %v1845_v41, %v9639_v44  ;;  %v1875_v18 = vrot.slane %v1861_v46, %v9639_v44  ;;  %v11875_v33 = vld [vmem:[#allocation55_spill] sm:$0xff]  ;;  %v11876_v32 = vld [vmem:[#allocation54_spill] sm:$0xff] }
 0x2f9   : > { %v10325_v30 = vrot.slane %v11868_v20, %v9639_v44  ;;  %v1810_v49 = vcombine.low %v1791_v55, %v1807_v16  ;;  %v1811_v1 = vcombine.high %v1791_v55, %v1807_v16  ;;  %v3217_v61 = vcombine.high %v11870_v40, %v11869_v29  ;;  %v10354_v20 = vpop.permute.xlu1 %3490  ;;  %v11877_v55 = vld [vmem:[#allocation44_spill] sm:$0xff]  ;;  %v11878_v16 = vld [vmem:[#allocation45_spill] sm:$0xff]  ;;  %v10372_v40 = vpop.permute.xlu0 %3466 }
 0x2fa   : > { %v3233_v58 = vcombine.high %v11872_v26, %v11871_v47  ;;  %8093 = vmatmul.mubr.msk.bf16.gmra.mrb[20].mxu0 %vm4680_vm0, %v4651_v60  ;;  %8109 = vmatmul.mubr.msk.bf16.gmra.mrb[12].mxu1 %vm4680_vm0, %v4655_v24  ;;  %v1878_v14 = vcombine.low %v1859_v52, %v1875_v18  ;;  %v4964_v39 = vsel %vm4680_vm0, %v4677_v53, 0  ;;  %v1879_v50 = vcombine.high %v1859_v52, %v1875_v18  ;;  %v11883_v47 = vld [vmem:[#allocation41_spill] sm:$0xff] }
 0x2fb   : > { %v3285_v6 = vcombine.high %v11874_v22, %v11873_v7  ;;  %v3231_v12 = vrot.slane %v3217_v61, %v9639_v44  ;;  %v3301_v35 = vcombine.high %v11876_v32, %v11875_v33  ;;  %v3353_v37 = vcombine.high %v10083_v15, %v10088_v36 }
 0x2fc   : > { %v3247_v59 = vrot.slane %v3233_v58, %v9639_v44  ;;  %8115 = vmatpush3.bf16.xpose.msra.mxu0 %v4875_v62  ;;  %v4656_v41 = vpack.c.bf16 %v1878_v14, %v1810_v49  ;;  %8131 = vmatpush3.bf16.xpose.msra.mxu1 %v4964_v39  ;;  %v4660_v8 = vpack.c.bf16 %v1879_v50, %v1811_v1  ;;  %v11880_v49 = vld [vmem:[#allocation26_spill] sm:$0xff]  ;;  %v11881_v1 = vld [vmem:[#allocation39_spill] sm:$0xff] }
 0x2fd   : > { %v3299_v53 = vrot.slane %v3285_v6, %v9639_v44  ;;  %v3315_v46 = vrot.slane %v3301_v35, %v9639_v44  ;;  %v3367_v31 = vrot.slane %v3353_v37, %v9639_v44  ;;  %v3369_v15 = vcombine.high %v10091_v21, %v10100_v54  ;;  %v11884_v58 = vld [vmem:[#allocation47_spill] sm:$0xff]  ;;  %v11885_v14 = vld [vmem:[#allocation46_spill] sm:$0xff]  ;;  %v10396_v35 = vpop.permute.xlu1 %3514 }
 0x2fe   : > { %v3250_v34 = vcombine.low %v3231_v12, %v3247_v59  ;;  %v3251_v25 = vcombine.high %v3231_v12, %v3247_v59  ;;  %8120 = vmatprep.mubr.msk.bf16.mxu0 %vm4680_vm0, %v4656_v41  ;;  %8136 = vmatprep.mubr.msk.bf16.mxu1 %vm4680_vm0, %v4660_v8  ;;  %v3421_v36 = vcombine.high %v10103_v28, %v10108_v42  ;;  %v11882_v42 = vld [vmem:[#allocation38_spill] sm:$0xff] }
 0x2ff   : > { %v3437_v62 = vcombine.high %v10111_v4, %v10116_v10  ;;  %v11879_v60 = vcombine.high %v11877_v55, %v11878_v16  ;;  %v3318_v52 = vcombine.low %v3299_v53, %v3315_v46  ;;  %v3319_v18 = vcombine.high %v3299_v53, %v3315_v46  ;;  %v11886_v53 = vld [vmem:[#allocation40_spill] sm:$0xff] }
 0x300   : > { %v10370_v29 = vadd.f32 %v11881_v1, %v11880_v49  ;;  %v3383_v21 = vrot.slane %v3369_v15, %v9639_v44  ;;  %v3435_v54 = vrot.slane %v3421_v36, %v9639_v44  ;;  %v10379_v4 = vadd.f32 %v11882_v42, %v11880_v49 }
 0x301   : > { %v2011_v24 = vrot.slane %v11879_v60, %v9639_v44  ;;  %v3451_v28 = vrot.slane %v3437_v62, %v9639_v44  ;;  %v4674_v10 = vpack.c.bf16 %v3318_v52, %v3250_v34  ;;  %v4678_v61 = vpack.c.bf16 %v3319_v18, %v3251_v25 }
 0x302   : > { %3472 = vrot.lane.b32.xlu1 %v10370_v29, %s8985_s1  ;;  %v10385_v26 = vadd.f32 %v11883_v47, %v11880_v49  ;;  %v1946_v39 = vcombine.low %v11885_v14, %v11884_v58  ;;  %v3386_v50 = vcombine.low %v3367_v31, %v3383_v21  ;;  %v3387_v22 = vcombine.high %v3367_v31, %v3383_v21  ;;  %v3513_v31 = vpop.permute.xlu0 %3512 }
 0x303   : > { %v3454_v7 = vcombine.low %v3435_v54, %v3451_v28  ;;  %v3455_v6 = vcombine.high %v3435_v54, %v3451_v28  ;;  %8290 = vmatprep.subr.msk.bf16.mxu0 %vm4680_vm0, %v4674_v10  ;;  %8294 = vmatprep.subr.msk.bf16.mxu1 %vm4680_vm0, %v4678_v61  ;;  %v4878_v12 = vsel %vm4680_vm0, %v4674_v10, 0  ;;  %v4967_v59 = vsel %vm4680_vm0, %v4678_v61, 0 }
 0x304   : > { %v2014_v33 = vcombine.low %v10325_v30, %v2011_v24  ;;  %v1947_v32 = vcombine.high %v11885_v14, %v11884_v58  ;;  %8117 = vmatpush3.bf16.xpose.msra.mxu0 %v4878_v12  ;;  %8133 = vmatpush3.bf16.xpose.msra.mxu1 %v4967_v59  ;;  %v2015_v8 = vcombine.high %v10325_v30, %v2011_v24  ;;  %v11887_v24 = vld [vmem:[#allocation27_spill] sm:$0xff]  ;;  %v11888_v58 = vld [vmem:[#allocation28_spill] sm:$0xff] }
 0x305   : > { %v4675_v37 = vpack.c.bf16 %v3454_v7, %v3386_v50  ;;  %v4679_v41 = vpack.c.bf16 %v3455_v6, %v3387_v22  ;;  %v10401_v34 = vadd.f32 %v11886_v53, %v11880_v49  ;;  %3474 = vrot.lane.b32.xlu0 %v10385_v26, %s8985_s1  ;;  %v2049_v46 = vcombine.high %v10144_v27, %v10148_v51 }
 0x306   : > { %3496 = vrot.lane.b32.xlu1 %v10370_v29, %s8986_s3  ;;  %v2065_v25 = vcombine.high %v10151_v13, %v10154_v63  ;;  %v4657_v15 = vpack.c.bf16 %v2014_v33, %v1946_v39  ;;  %v4661_v36 = vpack.c.bf16 %v2015_v8, %v1947_v32  ;;  %v2117_v62 = vcombine.high %v10159_v57, %v10167_v48  ;;  %v10445_v49 = vpop.permute.xlu0 %3468  ;;  %v11889_v32 = vld [vmem:[#allocation30_spill] sm:$0xff] }
 0x307   : > { %8291 = vmatprep.subr.msk.bf16.mxu0 %vm4680_vm0, %v4675_v37  ;;  %8295 = vmatprep.subr.msk.bf16.mxu1 %vm4680_vm0, %v4679_v41  ;;  %v4881_v30 = vsel %vm4680_vm0, %v4675_v37, 0  ;;  %v2063_v55 = vrot.slane %v2049_v46, %v9639_v44  ;;  %v2133_v27 = vcombine.high %v10170_v11, %v10209_v19  ;;  %v2185_v51 = vcombine.high %v10212_v5, %v10217_v9  ;;  %v10435_v9 = vpop.permute.xlu1 %3470 }
 0x308   : > { %v2079_v16 = vrot.slane %v2065_v25, %v9639_v44  ;;  %v2131_v13 = vrot.slane %v2117_v62, %v9639_v44  ;;  %v2201_v63 = vcombine.high %v10220_v2, %v10223_v23  ;;  %v2253_v60 = vcombine.high %v10228_v43, %v10231_v56 }
 0x309   : > { %v2269_v57 = vcombine.high %v10236_v0, %v10249_v17  ;;  %v4970_v48 = vsel %vm4680_vm0, %v4679_v41, 0  ;;  %v2147_v19 = vrot.slane %v2133_v27, %v9639_v44  ;;  %3520 = vrot.lane.b32.xlu0 %v10370_v29, %s8987_s27  ;;  %v2199_v2 = vrot.slane %v2185_v51, %v9639_v44 }
 0x30a   : > { %3498 = vrot.lane.b32.xlu1 %v10385_v26, %s8986_s3  ;;  %v2082_v11 = vcombine.low %v2063_v55, %v2079_v16  ;;  %v2083_v5 = vcombine.high %v2063_v55, %v2079_v16  ;;  %v2215_v23 = vrot.slane %v2201_v63, %v9639_v44  ;;  %v2267_v43 = vrot.slane %v2253_v60, %v9639_v44 }
 0x30b   : > { %v2283_v56 = vrot.slane %v2269_v57, %v9639_v44  ;;  %v2150_v0 = vcombine.low %v2131_v13, %v2147_v19  ;;  %v2151_v17 = vcombine.high %v2131_v13, %v2147_v19  ;;  %v3536_v52 = vcombine.low %v11887_v24, %v10332_v3  ;;  %v3495_v6 = vpop.permute.xlu1 %3494 }
 0x30c   : > { %v3537_v18 = vcombine.high %v11887_v24, %v10332_v3  ;;  %8119 = vmatpush3.bf16.xpose.msra.mxu0 %v4881_v30  ;;  %8135 = vmatpush3.bf16.xpose.msra.mxu1 %v4970_v48  ;;  %v2218_v1 = vcombine.low %v2199_v2, %v2215_v23  ;;  %v2219_v54 = vcombine.high %v2199_v2, %v2215_v23 }
 0x30d   : > { %v2286_v21 = vcombine.low %v2267_v43, %v2283_v56  ;;  %v4658_v28 = vpack.c.bf16 %v2150_v0, %v2082_v11  ;;  %v4662_v42 = vpack.c.bf16 %v2151_v17, %v2083_v5  ;;  %3476 = vrot.lane.b32.xlu0 %v10379_v4, %s8985_s1  ;;  %v2287_v10 = vcombine.high %v2267_v43, %v2283_v56 }
 0x30e   : > { %3522 = vrot.lane.b32.xlu1 %v10385_v26, %s8987_s27  ;;  %v3544_v47 = vrot.slane %v3536_v52, %v9636_v38  ;;  %v3551_v3 = vrot.slane %v3537_v18, %v9636_v38  ;;  %v3604_v14 = vcombine.low %v11888_v58, %v10354_v20  ;;  %v3605_v50 = vcombine.high %v11888_v58, %v10354_v20  ;;  %v11890_v52 = vld [vmem:[#allocation29_spill] sm:$0xff] }
 0x30f   : > { %v4659_v61 = vpack.c.bf16 %v2286_v21, %v2218_v1  ;;  %v4663_v39 = vpack.c.bf16 %v2287_v10, %v2219_v54  ;;  %v3620_v7 = vcombine.low %v10372_v40, %v10396_v35  ;;  %v3621_v22 = vcombine.high %v10372_v40, %v10396_v35  ;;  %v3493_v35 = vpop.permute.xlu0 %3492  ;;  %v3519_v48 = vpop.permute.xlu1 %3518 }
 0x310   : > { %v3612_v12 = vrot.slane %v3604_v14, %v9636_v38  ;;  %v3552_v59 = vcombine.low %v10299_v45, %v3513_v31  ;;  %v3553_v33 = vcombine.high %v10299_v45, %v3513_v31  ;;  %v3740_v37 = vcombine.low %v11889_v32, %v3495_v6 }
 0x311   : > { %3500 = vrot.lane.b32.xlu0 %v10379_v4, %s8986_s3  ;;  %v3619_v20 = vrot.slane %v3605_v50, %v9636_v38  ;;  %v3628_v41 = vrot.slane %v3620_v7, %v9636_v38  ;;  %v3635_v40 = vrot.slane %v3621_v22, %v9636_v38  ;;  %v3741_v45 = vcombine.high %v11889_v32, %v3495_v6 }
 0x312   : > { %3478 = vrot.lane.b32.xlu1 %v10401_v34, %s8985_s1  ;;  %v3560_v8 = vrot.slane %v3552_v59, %v9636_v38  ;;  %v3567_v53 = vrot.slane %v3553_v33, %v9636_v38  ;;  %v3748_v46 = vrot.slane %v3740_v37, %v9636_v38  ;;  %v3672_v18 = vcombine.low %v11890_v52, %v3493_v35 }
 0x313   : > { %8121 = vmatmul.mubr.msk.bf16.vlgmr.msra.gmra.mrb[24].mxu0 %vm4680_vm0, %v4657_v15  ;;  %8137 = vmatmul.mubr.msk.bf16.vlgmr.msra.gmra.mrb[16].mxu1 %vm4680_vm0, %v4661_v36  ;;  %v3636_v25 = vcombine.low %v3612_v12, %v3628_v41  ;;  %v3637_v31 = vcombine.high %v3612_v12, %v3628_v41  ;;  %v3652_v30 = vcombine.low %v3619_v20, %v3635_v40  ;;  %v3517_v23 = vpop.permute.xlu0 %3516 }
 0x314   : > { %8124 = vmatprep.mubr.msk.bf16.mxu0 %vm4680_vm0, %v4658_v28  ;;  %8140 = vmatprep.mubr.msk.bf16.mxu1 %vm4680_vm0, %v4662_v42  ;;  %v3653_v62 = vcombine.high %v3619_v20, %v3635_v40  ;;  %v3568_v55 = vcombine.low %v3544_v47, %v3560_v8  ;;  %v3569_v16 = vcombine.high %v3544_v47, %v3560_v8 }
 0x315   : > { %v10483_v27 = vrot.slane %v3636_v25, %v9639_v44  ;;  %v10486_v15 = vrot.slane %v3637_v31, %v9639_v44  ;;  %v10489_v36 = vrot.slane %v3652_v30, %v9639_v44  ;;  %v3584_v51 = vcombine.low %v3551_v3, %v3567_v53 }
 0x316   : > { %3502 = vrot.lane.b32.xlu1 %v10401_v34, %s8986_s3  ;;  %v10492_v13 = vrot.slane %v3653_v62, %v9639_v44  ;;  %v3576_v63 = vrot.slane %v3568_v55, %v9639_v44  ;;  %v3583_v60 = vrot.slane %v3569_v16, %v9639_v44  ;;  %v3585_v57 = vcombine.high %v3551_v3, %v3567_v53 }
 0x317   : > { %v4148_v11 = vcombine.low %v10483_v27, %v10486_v15  ;;  %v7719_v19 = vcombine.high %v10483_v27, %v10486_v15  ;;  %v3592_v5 = vrot.slane %v3584_v51, %v9639_v44  ;;  %v3755_v2 = vrot.slane %v3741_v45, %v9636_v38 }
 0x318   : > { %v4164_v43 = vcombine.low %v10489_v36, %v10492_v13  ;;  %v7720_v56 = vcombine.high %v10489_v36, %v10492_v13  ;;  %v3599_v0 = vrot.slane %v3585_v57, %v9639_v44  ;;  %v4080_v17 = vcombine.low %v3576_v63, %v3583_v60 }
 0x319   : > { %v7717_v24 = vcombine.high %v3576_v63, %v3583_v60  ;;  %v3673_v1 = vcombine.high %v11890_v52, %v3493_v35  ;;  %v3756_v21 = vcombine.low %v10435_v9, %v3519_v48  ;;  %v3757_v42 = vcombine.high %v10435_v9, %v3519_v48 }
 0x31a   : > { %v4096_v54 = vcombine.low %v3592_v5, %v3599_v0  ;;  %v7718_v28 = vcombine.high %v3592_v5, %v3599_v0  ;;  %v3688_v10 = vcombine.low %v10445_v49, %v3517_v23  ;;  %v3680_v47 = vrot.slane %v3672_v18, %v9636_v38 }
 0x31b   : > { %8125 = vmatmul.mubr.msk.bf16.gmra.mrb[28].mxu0 %vm4680_vm0, %v4659_v61  ;;  %8141 = vmatmul.mubr.msk.bf16.gmra.mrb[20].mxu1 %vm4680_vm0, %v4663_v39  ;;  %v3687_v3 = vrot.slane %v3673_v1, %v9636_v38  ;;  %v3764_v58 = vrot.slane %v3756_v21, %v9636_v38  ;;  %v3771_v14 = vrot.slane %v3757_v42, %v9636_v38 }
 0x31c   : > { %v3689_v50 = vcombine.high %v10445_v49, %v3517_v23  ;;  %v3696_v7 = vrot.slane %v3688_v10, %v9636_v38  ;;  %v10521_v9 = vrot.slane %v4080_v17, %v9636_v38  ;;  %v10524_v61 = vrot.slane %v7717_v24, %v9636_v38 }
 0x31d   : > { %v3772_v22 = vcombine.low %v3748_v46, %v3764_v58  ;;  %v3773_v6 = vcombine.high %v3748_v46, %v3764_v58  ;;  %v10527_v39 = vrot.slane %v4096_v54, %v9636_v38  ;;  %v3788_v12 = vcombine.low %v3755_v2, %v3771_v14 }
 0x31e   : > { %v3789_v59 = vcombine.high %v3755_v2, %v3771_v14  ;;  %v3703_v33 = vrot.slane %v3689_v50, %v9636_v38  ;;  %v3704_v32 = vcombine.low %v3680_v47, %v3696_v7  ;;  %v3705_v20 = vcombine.high %v3680_v47, %v3696_v7 }
 0x31f   : > { %v3780_v49 = vrot.slane %v3772_v22, %v9639_v44  ;;  %v3787_v37 = vrot.slane %v3773_v6, %v9639_v44  ;;  %v10533_v41 = vrot.slane %v7718_v28, %v9636_v38  ;;  %v3796_v40 = vrot.slane %v3788_v12, %v9639_v44 }
 0x320   : > { %v3803_v35 = vrot.slane %v3789_v59, %v9639_v44  ;;  %v3712_v8 = vrot.slane %v3704_v32, %v9639_v44  ;;  %v3720_v53 = vcombine.low %v3687_v3, %v3703_v33  ;;  %v3719_v25 = vrot.slane %v3705_v20, %v9639_v44 }
 0x321   : > { %v4284_v45 = vcombine.low %v3780_v49, %v3787_v37  ;;  %v7723_v46 = vcombine.high %v3780_v49, %v3787_v37  ;;  %v3721_v31 = vcombine.high %v3687_v3, %v3703_v33  ;;  %v4112_v16 = vcombine.low %v10521_v9, %v10524_v61 }
 0x322   : > { %v4300_v30 = vcombine.low %v3796_v40, %v3803_v35  ;;  %v7724_v62 = vcombine.high %v3796_v40, %v3803_v35  ;;  %v3728_v55 = vrot.slane %v3720_v53, %v9639_v44  ;;  %v4216_v15 = vcombine.low %v3712_v8, %v3719_v25 }
 0x323   : > { %v3735_v27 = vrot.slane %v3721_v31, %v9639_v44  ;;  %v7721_v36 = vcombine.high %v3712_v8, %v3719_v25  ;;  %v4128_v51 = vcombine.low %v10527_v39, %v10533_v41  ;;  %v4120_v13 = vrot.slane %v4112_v16, %v9639_v44 }
 0x324   : > { %v4155_v63 = vrot.slane %v4148_v11, %v9636_v38  ;;  %v4163_v60 = vrot.slane %v7719_v19, %v9636_v38  ;;  %v4171_v57 = vrot.slane %v4164_v43, %v9636_v38  ;;  %v4179_v23 = vrot.slane %v7720_v56, %v9636_v38 }
 0x325   : > { %v4232_v48 = vcombine.low %v3728_v55, %v3735_v27  ;;  %v7722_v5 = vcombine.high %v3728_v55, %v3735_v27  ;;  %v4136_v2 = vrot.slane %v4128_v51, %v9639_v44  ;;  %v4223_v17 = vrot.slane %v4216_v15, %v9636_v38 }
 0x326   : > { %v4180_v0 = vcombine.low %v4155_v63, %v4163_v60  ;;  %v4231_v24 = vrot.slane %v7721_v36, %v9636_v38  ;;  %v4291_v52 = vrot.slane %v4284_v45, %v9636_v38  ;;  %v4196_v1 = vcombine.low %v4171_v57, %v4179_v23 }
 0x327   : > { %v4144_v18 = vcombine.low %v4120_v13, %v4136_v2  ;;  %v4239_v11 = vrot.slane %v4232_v48, %v9636_v38  ;;  %v4247_v43 = vrot.slane %v7722_v5, %v9636_v38  ;;  %v4299_v54 = vrot.slane %v7723_v46, %v9636_v38 }
 0x328   : > { %v4188_v19 = vrot.slane %v4180_v0, %v9639_v44  ;;  %v4248_v21 = vcombine.low %v4223_v17, %v4231_v24  ;;  %v4204_v56 = vrot.slane %v4196_v1, %v9639_v44  ;;  %v4145_v28 = vcombine.high %v4120_v13, %v4136_v2 }
 0x329   : > { %v4307_v42 = vrot.slane %v4300_v30, %v9636_v38  ;;  %v4315_v10 = vrot.slane %v7724_v62, %v9636_v38  ;;  %v4264_v3 = vcombine.low %v4239_v11, %v4247_v43  ;;  %v4316_v58 = vcombine.low %v4291_v52, %v4299_v54 }
 0x32a   : > { %v4256_v47 = vrot.slane %v4248_v21, %v9639_v44  ;;  %v4212_v14 = vcombine.low %v4188_v19, %v4204_v56  ;;  %v4213_v50 = vcombine.high %v4188_v19, %v4204_v56  ;;  %v4113_v8 = vcombine.high %v10521_v9, %v10524_v61 }
 0x32b   : > { %v4332_v7 = vcombine.low %v4307_v42, %v4315_v10  ;;  %v4272_v22 = vrot.slane %v4264_v3, %v9639_v44  ;;  %v4324_v6 = vrot.slane %v4316_v58, %v9639_v44  ;;  %v4129_v53 = vcombine.high %v10527_v39, %v10533_v41 }
 0x32c   : > { %v5502_v12 = vpack.c.bf16 %v4212_v14, %v4144_v18  ;;  %v5506_v59 = vpack.c.bf16 %v4213_v50, %v4145_v28  ;;  %v4181_v45 = vcombine.high %v4155_v63, %v4163_v60  ;;  %v4197_v46 = vcombine.high %v4171_v57, %v4179_v23 }
 0x32d   : > { %v4340_v33 = vrot.slane %v4332_v7, %v9639_v44  ;;  %v4280_v32 = vcombine.low %v4256_v47, %v4272_v22  ;;  %v4281_v49 = vcombine.high %v4256_v47, %v4272_v22  ;;  %v4249_v25 = vcombine.high %v4223_v17, %v4231_v24 }
 0x32e   : > { %8144 = vmatprep.subr.bf16.mxu0 %v5502_v12  ;;  %8160 = vmatprep.subr.bf16.mxu1 %v5506_v59  ;;  %v4265_v31 = vcombine.high %v4239_v11, %v4247_v43  ;;  %v4317_v30 = vcombine.high %v4291_v52, %v4299_v54  ;;  %v4333_v62 = vcombine.high %v4307_v42, %v4315_v10 }
 0x32f   : > { %v4348_v37 = vcombine.low %v4324_v6, %v4340_v33  ;;  %v4349_v20 = vcombine.high %v4324_v6, %v4340_v33  ;;  %8145 = vmatpush3.bf16.msra.mxu0 %v5502_v12  ;;  %8161 = vmatpush3.bf16.msra.mxu1 %v5506_v59  ;;  %v4127_v55 = vrot.slane %v4113_v8, %v9639_v44 }
 0x330   : > { %v4143_v16 = vrot.slane %v4129_v53, %v9639_v44  ;;  %v4195_v27 = vrot.slane %v4181_v45, %v9639_v44  ;;  %v4211_v15 = vrot.slane %v4197_v46, %v9639_v44  ;;  %v4263_v36 = vrot.slane %v4249_v25, %v9639_v44 }
 0x331   : > { %v5503_v40 = vpack.c.bf16 %v4348_v37, %v4280_v32  ;;  %v5507_v35 = vpack.c.bf16 %v4349_v20, %v4281_v49  ;;  %v4279_v9 = vrot.slane %v4265_v31, %v9639_v44  ;;  %v4331_v61 = vrot.slane %v4317_v30, %v9639_v44 }
 0x332   : > { %v4347_v39 = vrot.slane %v4333_v62, %v9639_v44  ;;  %v4146_v41 = vcombine.low %v4127_v55, %v4143_v16  ;;  %v4214_v51 = vcombine.low %v4195_v27, %v4211_v15  ;;  %v4147_v13 = vcombine.high %v4127_v55, %v4143_v16 }
 0x333   : > { %8146 = vmatprep.subr.bf16.mxu0 %v5503_v40  ;;  %8162 = vmatprep.subr.bf16.mxu1 %v5507_v35  ;;  %v4215_v63 = vcombine.high %v4195_v27, %v4211_v15  ;;  %v4282_v60 = vcombine.low %v4263_v36, %v4279_v9  ;;  %v4283_v48 = vcombine.high %v4263_v36, %v4279_v9 }
 0x334   : > { %8147 = vmatpush3.bf16.msra.mxu0 %v5503_v40  ;;  %8163 = vmatpush3.bf16.msra.mxu1 %v5507_v35  ;;  %v4350_v57 = vcombine.low %v4331_v61, %v4347_v39  ;;  %v4351_v5 = vcombine.high %v4331_v61, %v4347_v39  ;;  %v10577_v2 = vpack.c.bf16 %v4214_v51, %v4146_v41 }
 0x335   : > { %v10579_v23 = vpack.c.bf16 %v4215_v63, %v4147_v13 }
 0x336   : > { %11891 = vst [vmem:[#allocation31_spill] sm:$0xff] %v10577_v2  ;;  %v10581_v0 = vpack.c.bf16 %v4350_v57, %v4282_v60  ;;  %v10583_v17 = vpack.c.bf16 %v4351_v5, %v4283_v48 }
 0x337   : > { %11892 = vst [vmem:[#allocation33_spill] sm:$0xff] %v10579_v23 }
 0x338   : > { %11893 = vst [vmem:[#allocation32_spill] sm:$0xff] %v10581_v0  ;;  %11894 = vst [vmem:[#allocation35_spill] sm:$0xff] %v10583_v17 }
 0x374   : > { %v3473_v24 = vpop.permute.xlu1 %3472 }
 0x377   : > { %v3475_v18 = vpop.permute.xlu0 %3474 }
 0x378   : > { %v3497_v52 = vpop.permute.xlu1 %3496 }
 0x379   : > { %v3808_v1 = vcombine.low %v10370_v29, %v3497_v52  ;;  %v3809_v11 = vcombine.high %v10370_v29, %v3497_v52 }
 0x37b   : > { %v3816_v19 = vrot.slane %v3808_v1, %v9636_v38  ;;  %v3521_v21 = vpop.permute.xlu0 %3520  ;;  %v3823_v10 = vrot.slane %v3809_v11, %v9636_v38 }
 0x37c   : > { %v3499_v43 = vpop.permute.xlu1 %3498  ;;  %v3824_v28 = vcombine.low %v3473_v24, %v3521_v21  ;;  %v3825_v42 = vcombine.high %v3473_v24, %v3521_v21 }
 0x37d   : > { %v3876_v54 = vcombine.low %v10385_v26, %v3499_v43  ;;  %v3877_v56 = vcombine.high %v10385_v26, %v3499_v43 }
 0x37e   : > { %v3832_v47 = vrot.slane %v3824_v28, %v9636_v38  ;;  %v3839_v3 = vrot.slane %v3825_v42, %v9636_v38 }
 0x37f   : > { %v3884_v58 = vrot.slane %v3876_v54, %v9636_v38  ;;  %v3891_v29 = vrot.slane %v3877_v56, %v9636_v38 }
 0x380   : > { %v3523_v14 = vpop.permute.xlu1 %3522  ;;  %v3840_v22 = vcombine.low %v3816_v19, %v3832_v47  ;;  %v3841_v6 = vcombine.high %v3816_v19, %v3832_v47  ;;  %v3856_v12 = vcombine.low %v3823_v10, %v3839_v3  ;;  %v3857_v59 = vcombine.high %v3823_v10, %v3839_v3 }
 0x381   : > { %v3892_v50 = vcombine.low %v3475_v18, %v3523_v14  ;;  %v3893_v7 = vcombine.high %v3475_v18, %v3523_v14 }
 0x382   : > { %v3848_v32 = vrot.slane %v3840_v22, %v9639_v44  ;;  %v3855_v49 = vrot.slane %v3841_v6, %v9639_v44  ;;  %v3864_v37 = vrot.slane %v3856_v12, %v9639_v44  ;;  %v3871_v20 = vrot.slane %v3857_v59, %v9639_v44 }
 0x383   : > { %v3900_v26 = vrot.slane %v3892_v50, %v9636_v38  ;;  %v3907_v33 = vrot.slane %v3893_v7, %v9636_v38 }
 0x384   : > { %v4352_v45 = vcombine.low %v3848_v32, %v3855_v49  ;;  %v7725_v46 = vcombine.high %v3848_v32, %v3855_v49  ;;  %v4368_v55 = vcombine.low %v3864_v37, %v3871_v20  ;;  %v7726_v16 = vcombine.high %v3864_v37, %v3871_v20  ;;  %v10625_v32 = vld [vmem:[#allocation6 + $0x10] sm:$0xff]  ;;  %v10627_v49 = vld [vmem:[#allocation6] sm:$0xff]  ;;  %v10630_v20 = vld [vmem:[#allocation6 + $0x18] sm:$0xff] }
 0x385   : > { %v3908_v40 = vcombine.low %v3884_v58, %v3900_v26  ;;  %v3909_v35 = vcombine.high %v3884_v58, %v3900_v26  ;;  %v3924_v8 = vcombine.low %v3891_v29, %v3907_v33  ;;  %v3925_v53 = vcombine.high %v3891_v29, %v3907_v33 }
 0x386   : > { %v4359_v27 = vrot.slane %v4352_v45, %v9636_v38  ;;  %v4367_v15 = vrot.slane %v7725_v46, %v9636_v38  ;;  %v4375_v60 = vrot.slane %v4368_v55, %v9636_v38  ;;  %v4383_v57 = vrot.slane %v7726_v16, %v9636_v38 }
 0x387   : > { %v3916_v25 = vrot.slane %v3908_v40, %v9639_v44  ;;  %v3923_v31 = vrot.slane %v3909_v35, %v9639_v44  ;;  %v3932_v30 = vrot.slane %v3924_v8, %v9639_v44  ;;  %v3939_v62 = vrot.slane %v3925_v53, %v9639_v44  ;;  %v10633_v35 = vld [vmem:[#allocation6 + $0x8] sm:$0xff] }
 0x388   : > { %v4384_v48 = vcombine.low %v4359_v27, %v4367_v15  ;;  %v4385_v52 = vcombine.high %v4359_v27, %v4367_v15  ;;  %v4400_v18 = vcombine.low %v4375_v60, %v4383_v57  ;;  %v4401_v1 = vcombine.high %v4375_v60, %v4383_v57 }
 0x389   : > { %v4420_v36 = vcombine.low %v3916_v25, %v3923_v31  ;;  %v7727_v9 = vcombine.high %v3916_v25, %v3923_v31  ;;  %v4436_v61 = vcombine.low %v3932_v30, %v3939_v62  ;;  %v7728_v39 = vcombine.high %v3932_v30, %v3939_v62  ;;  %v10641_v25 = vld [vmem:[#allocation6 + $0x30] sm:$0xff] }
 0x38a   : > { %v4392_v43 = vrot.slane %v4384_v48, %v9639_v44  ;;  %v4399_v56 = vrot.slane %v4385_v52, %v9639_v44  ;;  %v4408_v28 = vrot.slane %v4400_v18, %v9639_v44  ;;  %v4415_v42 = vrot.slane %v4401_v1, %v9639_v44  ;;  %v10676_v1 = vld [vmem:[#allocation6 + $0x20] sm:$0xff] }
 0x38b   : > { %v4427_v41 = vrot.slane %v4420_v36, %v9636_v38  ;;  %v4435_v51 = vrot.slane %v7727_v9, %v9636_v38  ;;  %v4443_v13 = vrot.slane %v4436_v61, %v9636_v38  ;;  %v4451_v63 = vrot.slane %v7728_v39, %v9636_v38 }
 0x38c   : > { %v4416_v29 = vcombine.low %v4392_v43, %v4408_v28  ;;  %v4417_v14 = vcombine.high %v4392_v43, %v4408_v28  ;;  %v4418_v50 = vcombine.low %v4399_v56, %v4415_v42  ;;  %v4419_v22 = vcombine.high %v4399_v56, %v4415_v42 }
 0x38d   : > { %v4452_v5 = vcombine.low %v4427_v41, %v4435_v51  ;;  %v4468_v24 = vcombine.low %v4443_v13, %v4451_v63  ;;  %v4453_v11 = vcombine.high %v4427_v41, %v4435_v51  ;;  %v4469_v19 = vcombine.high %v4443_v13, %v4451_v63 }
 0x38e   : > { %v7735_v37 = vadd.f32 -1.0, %v10625_v32  ;;  %v7733_v40 = vadd.f32 -1.0, %v10627_v49  ;;  %v7736_v53 = vadd.f32 -1.0, %v10630_v20  ;;  %v7734_v45 = vadd.f32 -1.0, %v10633_v35 }
 0x38f   : > { %v4460_v21 = vrot.slane %v4452_v5, %v9639_v44  ;;  %v4476_v54 = vrot.slane %v4468_v24, %v9639_v44  ;;  %v4467_v10 = vrot.slane %v4453_v11, %v9639_v44  ;;  %v4483_v47 = vrot.slane %v4469_v19, %v9639_v44  ;;  %v10678_v11 = vld [vmem:[#allocation6 + $0x38] sm:$0xff] }
 0x390   : > { %v10635_v8 = vmul.f32 1e+30, %v7735_v37  ;;  %v10639_v46 = vmul.f32 1e+30, %v7733_v40  ;;  %v10649_v15 = vmul.f32 1e+30, %v7736_v53 }
 0x391   : > { %v4484_v3 = vcombine.low %v4460_v21, %v4476_v54  ;;  %v4485_v58 = vcombine.high %v4460_v21, %v4476_v54  ;;  %v4486_v7 = vcombine.low %v4467_v10, %v4483_v47  ;;  %v4487_v6 = vcombine.high %v4467_v10, %v4483_v47 }
 0x392   : > { %v10651_v61 = vmul.f32 1e+30, %v7734_v45  ;;  %v7739_v39 = vadd.f32 -1.0, %v10641_v25  ;;  %v7737_v56 = vadd.f32 -1.0, %v10676_v1  ;;  %v7740_v28 = vadd.f32 -1.0, %v10678_v11 }
 0x393   : > { %v5504_v12 = vpack.c.bf16 %v4484_v3, %v4416_v29  ;;  %v5508_v59 = vpack.c.bf16 %v4485_v58, %v4417_v14  ;;  %v10621_v26 = vpack.c.bf16 %v4486_v7, %v4418_v50  ;;  %v10623_v33 = vpack.c.bf16 %v4487_v6, %v4419_v22 }
 0x394   : > { %v10664_v48 = vmul.f32 1e+30, %v7739_v39  ;;  %v10692_v7 = vmul.f32 1e+30, %v7737_v56  ;;  %v10694_v22 = vmul.f32 1e+30, %v7740_v28 }
 0x395   : > { %11895 = vst [vmem:[#allocation34_spill] sm:$0xff] %v10621_v26  ;;  %11896 = vst [vmem:[#allocation37_spill] sm:$0xff] %v10623_v33  ;;  %8148 = vmatprep.subr.bf16.mxu0 %v5504_v12  ;;  %8164 = vmatprep.subr.bf16.mxu1 %v5508_v59 }
 0x396   : > { %8149 = vmatpush3.bf16.msra.mxu0 %v5504_v12  ;;  %8165 = vmatpush3.bf16.msra.mxu1 %v5508_v59  ;;  %v10702_v59 = vld [vmem:[#allocation6 + $0x28] sm:$0xff] }
 0x397   : > { %v7738_v53 = vadd.f32 -1.0, %v10702_v59 }
 0x3c5   : > { %v8090_v31 = vpop.f32.mrb[16].mxu0  ;;  %v8106_v30 = vpop.f32.mrb[8].mxu1 }
 0x3c6   : > { %v10644_v62 = vadd.f32 %v8090_v31, %v10635_v8  ;;  %v10647_v55 = vadd.f32 %v8106_v30, %v10635_v8  ;;  %v4739_v16 = vpop.f32.mrb[17].mxu0  ;;  %v4828_v27 = vpop.f32.mrb[9].mxu1 }
 0x3c7   : > { %v8091_v36 = vpop.f32.mrb[18].mxu0  ;;  %v8107_v9 = vpop.f32.mrb[10].mxu1  ;;  %v10655_v41 = vadd.f32 %v4739_v16, %v10639_v46  ;;  %v10658_v51 = vadd.f32 %v4828_v27, %v10639_v46  ;;  %v10719_v27 = vmul.f32 1e+30, %v7738_v53 }
 0x3c8   : > { %v4742_v13 = vpop.f32.mrb[19].mxu0  ;;  %v4831_v63 = vpop.f32.mrb[11].mxu1  ;;  %v5068_v60 = vsel %vm5037_vm1, %v10647_v55, -inf  ;;  %v5044_v57 = vsel %vm5037_vm1, %v10644_v62, -inf  ;;  %v10667_v5 = vadd.f32 %v8091_v36, %v10649_v15  ;;  %v10683_v47 = vadd.f32 %v8107_v9, %v10649_v15 }
 0x3c9   : > { %5069 = vmax.xlane.f32.xlu1 %v5068_v60  ;;  %5045 = vmax.xlane.f32.xlu0 %v5044_v57  ;;  %v10670_v24 = vadd.f32 %v4742_v13, %v10651_v61  ;;  %v5062_v52 = vsel %vm5037_vm1, %v10658_v51, -inf  ;;  %v5038_v18 = vsel %vm5037_vm1, %v10655_v41, -inf  ;;  %v10697_v6 = vadd.f32 %v4831_v63, %v10651_v61 }
 0x3ca   : > { %v5047_v50 = vsel %vm5037_vm1, %v10667_v5, -inf  ;;  %v5071_v37 = vsel %vm5037_vm1, %v10683_v47, -inf }
 0x3cb   : > { %v5041_v14 = vsel %vm5037_vm1, %v10670_v24, -inf  ;;  %v5065_v30 = vsel %vm5037_vm1, %v10697_v6, -inf }
 0x3cd   : > { %5063 = vmax.xlane.f32.xlu1 %v5062_v52  ;;  %5039 = vmax.xlane.f32.xlu0 %v5038_v18  ;;  %v8094_v19 = vpop.f32.mrb[20].mxu0  ;;  %v8110_v43 = vpop.f32.mrb[12].mxu1 }
 0x3ce   : > { %v4755_v21 = vpop.f32.mrb[21].mxu0  ;;  %v4844_v54 = vpop.f32.mrb[13].mxu1  ;;  %v10686_v3 = vadd.f32 %v8094_v19, %v10664_v48  ;;  %v10700_v12 = vadd.f32 %v8110_v43, %v10664_v48 }
 0x3cf   : > { %v8095_v42 = vpop.f32.mrb[22].mxu0  ;;  %v8111_v10 = vpop.f32.mrb[14].mxu1  ;;  %v10710_v45 = vadd.f32 %v4755_v21, %v10692_v7  ;;  %v10722_v36 = vadd.f32 %v4844_v54, %v10692_v7 }
 0x3d0   : > { %v4758_v58 = vpop.f32.mrb[23].mxu0  ;;  %v4847_v29 = vpop.f32.mrb[15].mxu1  ;;  %v5056_v40 = vsel %vm5037_vm1, %v10686_v3, -inf  ;;  %v10713_v31 = vadd.f32 %v8095_v42, %v10694_v22  ;;  %v5080_v16 = vsel %vm5037_vm1, %v10700_v12, -inf  ;;  %v10725_v9 = vadd.f32 %v8111_v10, %v10694_v22 }
 0x3d1   : > { %5042 = vmax.xlane.f32.xlu1 %v5041_v14  ;;  %5048 = vmax.xlane.f32.xlu0 %v5047_v50  ;;  %v5050_v13 = vsel %vm5037_vm1, %v10710_v45, -inf  ;;  %v10732_v63 = vadd.f32 %v4758_v58, %v10719_v27  ;;  %v5074_v57 = vsel %vm5037_vm1, %v10722_v36, -inf  ;;  %v10739_v52 = vadd.f32 %v4847_v29, %v10719_v27 }
 0x3d2   : > { %v5059_v39 = vsel %vm5037_vm1, %v10713_v31, -inf  ;;  %v5083_v60 = vsel %vm5037_vm1, %v10725_v9, -inf }
 0x3d3   : > { %v5053_v18 = vsel %vm5037_vm1, %v10732_v63, -inf  ;;  %v5077_v10 = vsel %vm5037_vm1, %v10739_v52, -inf }
 0x3d5   : > { %5072 = vmax.xlane.f32.xlu0 %v5071_v37  ;;  %5057 = vmax.xlane.f32.xlu1 %v5056_v40 }
 0x3d9   : > { %5066 = vmax.xlane.f32.xlu0 %v5065_v30  ;;  %5081 = vmax.xlane.f32.xlu1 %v5080_v16 }
 0x3dd   : > { %5060 = vmax.xlane.f32.xlu0 %v5059_v39  ;;  %5051 = vmax.xlane.f32.xlu1 %v5050_v13 }
 0x3e1   : > { %5084 = vmax.xlane.f32.xlu0 %v5083_v60  ;;  %5075 = vmax.xlane.f32.xlu1 %v5074_v57 }
 0x3e5   : > { %5054 = vmax.xlane.f32.xlu0 %v5053_v18 }
 0x3e6   : > { %v8122_v19 = vpop.f32.mrb[24].mxu0  ;;  %v8138_v43 = vpop.f32.mrb[16].mxu1 }
 0x3e7   : > { %v10744_v21 = vadd.f32 %v8122_v19, %v10635_v8  ;;  %v4917_v54 = vpop.f32.mrb[25].mxu0  ;;  %v5006_v56 = vpop.f32.mrb[17].mxu1  ;;  %v10749_v58 = vadd.f32 %v8138_v43, %v10635_v8 }
 0x3e8   : > { %v8123_v28 = vpop.f32.mrb[26].mxu0  ;;  %v8139_v42 = vpop.f32.mrb[18].mxu1  ;;  %v10762_v30 = vadd.f32 %v4917_v54, %v10639_v46  ;;  %v10772_v43 = vadd.f32 %v5006_v56, %v10639_v46 }
 0x3e9   : > { %v10752_v29 = vadd.f32 %v8123_v28, %v10649_v15  ;;  %v4920_v14 = vpop.f32.mrb[27].mxu0  ;;  %v5009_v50 = vpop.f32.mrb[19].mxu1  ;;  %5078 = vmax.xlane.f32.xlu0 %v5077_v10  ;;  %v5092_v37 = vsel %vm5037_vm1, %v10744_v21, -inf  ;;  %v10757_v40 = vadd.f32 %v8139_v42, %v10649_v15  ;;  %v5116_v8 = vsel %vm5037_vm1, %v10749_v58, -inf }
 0x3ea   : > { %5093 = vmax.xlane.f32.xlu1 %v5092_v37  ;;  %v10767_v57 = vadd.f32 %v4920_v14, %v10651_v61  ;;  %v5086_v42 = vsel %vm5037_vm1, %v10762_v30, -inf  ;;  %v10777_v10 = vadd.f32 %v5009_v50, %v10651_v61  ;;  %v5110_v46 = vsel %vm5037_vm1, %v10772_v43, -inf }
 0x3eb   : > { %v5095_v53 = vsel %vm5037_vm1, %v10752_v29, -inf  ;;  %v5119_v19 = vsel %vm5037_vm1, %v10757_v40, -inf }
 0x3ec   : > { %v5089_v14 = vsel %vm5037_vm1, %v10767_v57, -inf }
 0x3ed   : > { %5096 = vmax.xlane.f32.xlu0 %v5095_v53  ;;  %v5113_v53 = vsel %vm5037_vm1, %v10777_v10, -inf }
 0x3ee   : > { %v8126_v16 = vpop.f32.mrb[28].mxu0  ;;  %v8142_v39 = vpop.f32.mrb[20].mxu1  ;;  %5117 = vmax.xlane.f32.xlu1 %v5116_v8 }
 0x3ef   : > { %v4933_v13 = vpop.f32.mrb[29].mxu0  ;;  %v5022_v60 = vpop.f32.mrb[21].mxu1  ;;  %v10782_v37 = vadd.f32 %v8126_v16, %v10664_v48  ;;  %v10792_v61 = vadd.f32 %v8142_v39, %v10664_v48 }
 0x3f0   : > { %v8127_v15 = vpop.f32.mrb[30].mxu0  ;;  %v8143_v18 = vpop.f32.mrb[22].mxu1 }
 0x3f1   : > { %v4936_v54 = vpop.f32.mrb[31].mxu0  ;;  %v5025_v28 = vpop.f32.mrb[23].mxu1  ;;  %5120 = vmax.xlane.f32.xlu0 %v5119_v19  ;;  %v10787_v56 = vadd.f32 %v8127_v15, %v10694_v22  ;;  %v5104_v50 = vsel %vm5037_vm1, %v10782_v37, -inf  ;;  %v10797_v8 = vadd.f32 %v8143_v18, %v10694_v22  ;;  %v10802_v15 = vadd.f32 %v4933_v13, %v10692_v7 }
 0x3f2   : > { %5087 = vmax.xlane.f32.xlu1 %v5086_v42  ;;  %v5128_v19 = vsel %vm5037_vm1, %v10792_v61, -inf  ;;  %v10807_v48 = vadd.f32 %v4936_v54, %v10719_v27  ;;  %v10812_v22 = vadd.f32 %v5022_v60, %v10692_v7  ;;  %v10817_v13 = vadd.f32 %v5025_v28, %v10719_v27  ;;  %v10827_v60 = vpop.permute.xlu1 %3478 }
 0x3f3   : > { %v5107_v16 = vsel %vm5037_vm1, %v10787_v56, -inf  ;;  %v5131_v39 = vsel %vm5037_vm1, %v10797_v8, -inf  ;;  %v5098_v18 = vsel %vm5037_vm1, %v10802_v15, -inf }
 0x3f4   : > { %v5101_v42 = vsel %vm5037_vm1, %v10807_v48, -inf  ;;  %v5122_v54 = vsel %vm5037_vm1, %v10812_v22, -inf  ;;  %v5125_v7 = vsel %vm5037_vm1, %v10817_v13, -inf }
 0x3f5   : > { %5090 = vmax.xlane.f32.xlu0 %v5089_v14  ;;  %v10829_v14 = vpop.permute.xlu0 %3476 }
 0x3f6   : > { %5111 = vmax.xlane.f32.xlu1 %v5110_v46  ;;  %v10831_v27 = vpop.permute.xlu1 %3502 }
 0x3f9   : > { %5114 = vmax.xlane.f32.xlu0 %v5113_v53  ;;  %v10833_v28 = vpop.permute.xlu0 %3500 }
 0x3fa   : > { %5105 = vmax.xlane.f32.xlu1 %v5104_v50 }
 0x3fd   : > { %5108 = vmax.xlane.f32.xlu0 %v5107_v16 }
 0x3fe   : > { %5129 = vmax.xlane.f32.xlu1 %v5128_v19 }
 0x401   : > { %5132 = vmax.xlane.f32.xlu0 %v5131_v39 }
 0x402   : > { %5099 = vmax.xlane.f32.xlu1 %v5098_v18 }
 0x405   : > { %5102 = vmax.xlane.f32.xlu0 %v5101_v42 }
 0x406   : > { %5123 = vmax.xlane.f32.xlu1 %v5122_v54 }
 0x409   : > { %5126 = vmax.xlane.f32.xlu0 %v5125_v7 }
 0x41f   : > { %3524 = vrot.lane.b32.xlu0 %v10379_v4, %s8987_s27 }
 0x456   : > { %v10835_v46 = vpop.xlane.xlu1 %5069  ;;  %v5046_v53 = vpop.xlane.xlu0 %5045 }
 0x457   : > { %v5136_v50 = vsub.f32 %v10644_v62, %v5046_v53 }
 0x459   : > { %v5170_v16 = vmul.f32 1.442695, %v5136_v50 }
 0x45a   : > { %v10838_v19 = vpop.xlane.xlu1 %5063  ;;  %v5040_v39 = vpop.xlane.xlu0 %5039 }
 0x45b   : > { %v5134_v18 = vsub.f32 %v10655_v41, %v5040_v39  ;;  %8534 = vpow2.f32 %v5170_v16 }
 0x45d   : > { %v5166_v42 = vmul.f32 1.442695, %v5134_v18 }
 0x45e   : > { %v5043_v54 = vpop.xlane.xlu1 %5042  ;;  %v5049_v7 = vpop.xlane.xlu0 %5048 }
 0x45f   : > { %v5135_v33 = vsub.f32 %v10670_v24, %v5043_v54  ;;  %v5137_v17 = vsub.f32 %v10667_v5, %v5049_v7  ;;  %8536 = vpow2.f32 %v5166_v42 }
 0x461   : > { %v5168_v26 = vmul.f32 1.442695, %v5135_v33  ;;  %v5172_v0 = vmul.f32 1.442695, %v5137_v17 }
 0x462   : > { %v5058_v23 = vpop.xlane.xlu1 %5057  ;;  %v5073_v2 = vpop.xlane.xlu0 %5072 }
 0x463   : > { %8538 = vpow2.f32 %v5168_v26  ;;  %v5140_v53 = vsub.f32 %v10686_v3, %v5058_v23 }
 0x464   : > { %8540 = vpow2.f32 %v5172_v0 }
 0x465   : > { %v8535_v62 = vpop.eup %8534  ;;  %v5178_v39 = vmul.f32 1.442695, %v5140_v53 }
 0x466   : > { %v10844_v50 = vpop.xlane.xlu1 %5081  ;;  %v5067_v41 = vpop.xlane.xlu0 %5066  ;;  %v10847_v16 = vmul.f32 %v8535_v62, %v10625_v32 }
 0x467   : > { %8542 = vpow2.f32 %v5178_v39  ;;  %v5143_v53 = vsub.f32 %v10697_v6, %v5067_v41 }
 0x468   : > { %v5268_v24 = vsel %vm5037_vm1, %v10847_v16, 0.0 }
 0x469   : > { %v8537_v5 = vpop.eup %8536  ;;  %5269 = vadd.xlane.f32.xlu0 %v5268_v24 }
 0x46a   : > { %v5052_v17 = vpop.xlane.xlu1 %5051  ;;  %v5061_v33 = vpop.xlane.xlu0 %5060  ;;  %v10854_v23 = vmul.f32 %v8537_v5, %v10627_v49 }
 0x46b   : > { %v5138_v26 = vsub.f32 %v10710_v45, %v5052_v17  ;;  %v5141_v0 = vsub.f32 %v10713_v31, %v5061_v33  ;;  %v5145_v17 = vsub.f32 %v10683_v47, %v5073_v2  ;;  %v5184_v33 = vmul.f32 1.442695, %v5143_v53 }
 0x46c   : > { %v5262_v42 = vsel %vm5037_vm1, %v10854_v23, 0.0 }
 0x46d   : > { %v8539_v3 = vpop.eup %8538  ;;  %v5174_v18 = vmul.f32 1.442695, %v5138_v26  ;;  %5263 = vadd.xlane.f32.xlu0 %v5262_v42  ;;  %v5180_v45 = vmul.f32 1.442695, %v5141_v0  ;;  %v5188_v6 = vmul.f32 1.442695, %v5145_v17 }
 0x46e   : > { %v8541_v54 = vpop.eup %8540  ;;  %v5085_v7 = vpop.xlane.xlu0 %5084  ;;  %v10859_v62 = vmul.f32 %v8539_v3, %v10633_v35 }
 0x46f   : > { %8544 = vpow2.f32 %v5174_v18  ;;  %v10863_v31 = vmul.f32 %v8541_v54, %v10630_v20  ;;  %v5149_v54 = vsub.f32 %v10725_v9, %v5085_v7 }
 0x470   : > { %v5265_v24 = vsel %vm5037_vm1, %v10859_v62, 0.0  ;;  %8546 = vpow2.f32 %v5180_v45  ;;  %v10880_v45 = vpop.xlane.xlu1 %5075 }
 0x471   : > { %5266 = vadd.xlane.f32.xlu1 %v5265_v24  ;;  %v5271_v5 = vsel %vm5037_vm1, %v10863_v31, 0.0  ;;  %8548 = vpow2.f32 %v5184_v33  ;;  %v8543_v0 = vpop.eup %8542 }
 0x472   : > { %5272 = vadd.xlane.f32.xlu0 %v5271_v5  ;;  %v5055_v39 = vpop.xlane.xlu0 %5054  ;;  %8550 = vpow2.f32 %v5188_v6  ;;  %v10878_v47 = vmul.f32 %v8543_v0, %v10641_v25  ;;  %v5196_v5 = vmul.f32 1.442695, %v5149_v54 }
 0x474   : > { %11897 = vst [vmem:[#allocation36_spill] sm:$0xff] %v10878_v47  ;;  %v5280_v17 = vsel %vm5037_vm1, %v10878_v47, 0.0 }
 0x476   : > { %v5079_v26 = vpop.xlane.xlu0 %5078 }
 0x477   : > { %v5147_v41 = vsub.f32 %v10739_v52, %v5079_v26  ;;  %v10889_v33 = vpop.xlane.xlu1 %5093 }
 0x479   : > { %v8545_v3 = vpop.eup %8544  ;;  %v5192_v24 = vmul.f32 1.442695, %v5147_v41 }
 0x47a   : > { %v5097_v18 = vpop.xlane.xlu0 %5096  ;;  %v10872_v42 = vmul.f32 %v8545_v3, %v10676_v1  ;;  %v8547_v53 = vpop.eup %8546 }
 0x47b   : > { %8552 = vpow2.f32 %v5192_v24  ;;  %v10887_v9 = vmul.f32 %v8547_v53, %v10678_v11  ;;  %v8549_v7 = vpop.eup %8548  ;;  %v5153_v6 = vsub.f32 %v10752_v29, %v5097_v18  ;;  %v10900_v53 = vpop.xlane.xlu1 %5117 }
 0x47c   : > { %v5274_v2 = vsel %vm5037_vm1, %v10872_v42, 0.0  ;;  %8554 = vpow2.f32 %v5196_v5  ;;  %v10898_v3 = vmul.f32 %v8549_v7, %v10633_v35  ;;  %v8551_v54 = vpop.eup %8550  ;;  %v5139_v7 = vsub.f32 %v10732_v63, %v5055_v39 }
 0x47d   : > { %5275 = vadd.xlane.f32.xlu0 %v5274_v2  ;;  %v5283_v0 = vsel %vm5037_vm1, %v10887_v9, 0.0  ;;  %v10905_v29 = vmul.f32 %v8551_v54, %v10630_v20  ;;  %v5142_v54 = vsub.f32 %v10658_v51, %v10838_v19 }
 0x47e   : > { %v10882_v52 = vpop.xlane.xlu0 %5120  ;;  %11898 = vst [vmem:[#allocation42_spill] sm:$0xff] %v10898_v3  ;;  %v5289_v5 = vsel %vm5037_vm1, %v10898_v3, 0.0 }
 0x47f   : > { %11899 = vst [vmem:[#allocation43_spill] sm:$0xff] %v10905_v29  ;;  %v5182_v19 = vmul.f32 1.442695, %v5142_v54 }
 0x481   : > { %5281 = vadd.xlane.f32.xlu0 %v5280_v17  ;;  %v5204_v17 = vmul.f32 1.442695, %v5153_v6 }
 0x482   : > { %3526 = vrot.lane.b32.xlu1 %v10401_v34, %s8987_s27  ;;  %v5091_v26 = vpop.xlane.xlu0 %5090  ;;  %s11924_s27 = sld [smem:[#allocation70_spill]] }
 0x483   : > { %v5151_v41 = vsub.f32 %v10767_v57, %v5091_v26  ;;  %v5295_v26 = vsel %vm5037_vm1, %v10905_v29, 0.0 }
 0x485   : > { %v5200_v24 = vmul.f32 1.442695, %v5151_v41  ;;  %5284 = vadd.xlane.f32.xlu0 %v5283_v0  ;;  %v8553_v57 = vpop.eup %8552  ;;  %v5088_v0 = vpop.xlane.xlu1 %5087 }
 0x486   : > { %v5115_v2 = vpop.xlane.xlu0 %5114  ;;  %v10911_v41 = vmul.f32 %v8553_v57, %v10702_v59  ;;  %v8555_v6 = vpop.eup %8554 }
 0x487   : > { %8556 = vpow2.f32 %v5200_v24  ;;  %v10919_v63 = vmul.f32 %v8555_v6, %v10678_v11 }
 0x488   : > { %8558 = vpow2.f32 %v5204_v17  ;;  %v5301_v17 = vsel %vm5037_vm1, %v10911_v41, 0.0 }
 0x489   : > { %5290 = vadd.xlane.f32.xlu0 %v5289_v5  ;;  %v5176_v5 = vmul.f32 1.442695, %v5139_v7  ;;  %v10923_v47 = vpop.xlane.xlu1 %5111 }
 0x48a   : > { %v5109_v18 = vpop.xlane.xlu0 %5108 }
 0x48b   : > { %v5157_v24 = vsub.f32 %v10787_v56, %v5109_v18  ;;  %v5159_v56 = vsub.f32 %v10777_v10, %v5115_v2  ;;  %8560 = vpow2.f32 %v5176_v5  ;;  %v5307_v18 = vsel %vm5037_vm1, %v10919_v63, 0.0 }
 0x48c   : > { %v5146_v10 = vsub.f32 %v10722_v36, %v10880_v45 }
 0x48d   : > { %5296 = vadd.xlane.f32.xlu0 %v5295_v26  ;;  %v5212_v57 = vmul.f32 1.442695, %v5157_v24  ;;  %v5144_v26 = vsub.f32 %v10647_v55, %v10835_v46  ;;  %v5161_v55 = vsub.f32 %v10757_v40, %v10882_v52  ;;  %v5216_v46 = vmul.f32 1.442695, %v5159_v56  ;;  %v5106_v54 = vpop.xlane.xlu1 %5105 }
 0x48e   : > { %v5133_v3 = vpop.xlane.xlu0 %5132  ;;  %v5148_v40 = vsub.f32 %v10700_v12, %v10844_v50  ;;  %v5190_v52 = vmul.f32 1.442695, %v5146_v10 }
 0x48f   : > { %8562 = vpow2.f32 %v5212_v57  ;;  %v5220_v5 = vmul.f32 1.442695, %v5161_v55 }
 0x491   : > { %v8557_v39 = vpop.eup %8556  ;;  %5302 = vadd.xlane.f32.xlu0 %v5301_v17  ;;  %v5186_v17 = vmul.f32 1.442695, %v5144_v26  ;;  %v10946_v57 = vpop.xlane.xlu1 %5129  ;;  %v5165_v26 = vsub.f32 %v10797_v8, %v5133_v3 }
 0x492   : > { %v5103_v29 = vpop.xlane.xlu0 %5102  ;;  %v10930_v7 = vmul.f32 %v8557_v39, %v10633_v35  ;;  %v8559_v6 = vpop.eup %8558 }
 0x493   : > { %v5155_v51 = vsub.f32 %v10807_v48, %v5103_v29  ;;  %v10939_v29 = vmul.f32 %v8559_v6, %v10630_v20 }
 0x494   : > { %v5313_v2 = vsel %vm5037_vm1, %v10930_v7, 0.0 }
 0x495   : > { %v5208_v24 = vmul.f32 1.442695, %v5155_v51  ;;  %5308 = vadd.xlane.f32.xlu0 %v5307_v18  ;;  %v5319_v36 = vsel %vm5037_vm1, %v10939_v29, 0.0  ;;  %v8561_v45 = vpop.eup %8560  ;;  %v5100_v55 = vpop.xlane.xlu1 %5099 }
 0x496   : > { %v5127_v48 = vpop.xlane.xlu0 %5126  ;;  %v10951_v12 = vmul.f32 %v8561_v45, %v10702_v59  ;;  %v5156_v45 = vsub.f32 %v10782_v37, %v5106_v54  ;;  %v5158_v37 = vsub.f32 %v10772_v43, %v10923_v47  ;;  %v5160_v43 = vsub.f32 %v10749_v58, %v10900_v53 }
 0x497   : > { %8564 = vpow2.f32 %v5208_v24  ;;  %v5163_v39 = vsub.f32 %v10817_v13, %v5127_v48  ;;  %v5150_v13 = vsub.f32 %v10762_v30, %v5088_v0  ;;  %v5152_v24 = vsub.f32 %v10744_v21, %v10889_v33 }
 0x498   : > { %8566 = vpow2.f32 %v5182_v19  ;;  %v5194_v19 = vmul.f32 1.442695, %v5148_v40  ;;  %v5154_v48 = vsub.f32 %v10802_v15, %v5100_v55  ;;  %v5210_v54 = vmul.f32 1.442695, %v5156_v45 }
 0x499   : > { %5314 = vadd.xlane.f32.xlu0 %v5313_v2  ;;  %8568 = vpow2.f32 %v5216_v46  ;;  %v5224_v56 = vmul.f32 1.442695, %v5163_v39  ;;  %v8563_v51 = vpop.eup %8562  ;;  %v5198_v8 = vmul.f32 1.442695, %v5150_v13  ;;  %v5277_v46 = vsel %vm5037_vm1, %v10951_v12, 0.0  ;;  %v5124_v55 = vpop.xlane.xlu1 %5123 }
 0x49a   : > { %8570 = vpow2.f32 %v5186_v17  ;;  %v5228_v17 = vmul.f32 1.442695, %v5165_v26  ;;  %v10961_v30 = vmul.f32 %v8563_v51, %v10678_v11  ;;  %v5202_v33 = vmul.f32 1.442695, %v5152_v24 }
 0x49b   : > { %8572 = vpow2.f32 %v5220_v5  ;;  %v5206_v15 = vmul.f32 1.442695, %v5154_v48  ;;  %v5214_v47 = vmul.f32 1.442695, %v5158_v37  ;;  %v5162_v58 = vsub.f32 %v10812_v22, %v5124_v55 }
 0x49c   : > { %8574 = vpow2.f32 %v5190_v52  ;;  %v5331_v2 = vsel %vm5037_vm1, %v10961_v30, 0.0  ;;  %v3945_v55 = vcombine.high %v10379_v4, %v10833_v28 }
 0x49d   : > { %5320 = vadd.xlane.f32.xlu0 %v5319_v36  ;;  %8576 = vpow2.f32 %v5224_v56 }
 0x49e   : > { %8578 = vpow2.f32 %v5194_v19 }
 0x49f   : > { %8580 = vpow2.f32 %v5228_v17 }
 0x4a0   : > { %8582 = vpow2.f32 %v5198_v8 }
 0x4a1   : > { %v8565_v18 = vpop.eup %8564  ;;  %8584 = vpow2.f32 %v5202_v33  ;;  %v5218_v33 = vmul.f32 1.442695, %v5160_v43 }
 0x4a2   : > { %v8567_v50 = vpop.eup %8566  ;;  %v10954_v6 = vmul.f32 %v8565_v18, %v10702_v59  ;;  %8586 = vpow2.f32 %v5206_v15 }
 0x4a3   : > { %v8569_v0 = vpop.eup %8568  ;;  %v10966_v10 = vmul.f32 %v8567_v50, %v10627_v49  ;;  %8588 = vpow2.f32 %v5210_v54 }
 0x4a4   : > { %v5325_v3 = vsel %vm5037_vm1, %v10954_v6, 0.0  ;;  %v8571_v21 = vpop.eup %8570  ;;  %v10972_v5 = vmul.f32 %v8569_v0, %v10633_v35  ;;  %8590 = vpow2.f32 %v5214_v47  ;;  %v3525_v47 = vpop.permute.xlu0 %3524 }
 0x4a5   : > { %5326 = vadd.xlane.f32.xlu0 %v5325_v3  ;;  %v8573_v39 = vpop.eup %8572  ;;  %v5286_v40 = vsel %vm5037_vm1, %v10966_v10, 0.0  ;;  %v10977_v52 = vmul.f32 %v8571_v21, %v10625_v32  ;;  %8592 = vpow2.f32 %v5218_v33 }
 0x4a6   : > { %5278 = vadd.xlane.f32.xlu1 %v5277_v46  ;;  %v8575_v36 = vpop.eup %8574  ;;  %v5337_v26 = vsel %vm5037_vm1, %v10972_v5, 0.0  ;;  %v10983_v35 = vmul.f32 %v8573_v39, %v10630_v20  ;;  %v5164_v39 = vsub.f32 %v10792_v61, %v10946_v57 }
 0x4a7   : > { %v8577_v56 = vpop.eup %8576  ;;  %v5292_v51 = vsel %vm5037_vm1, %v10977_v52, 0.0  ;;  %v10988_v19 = vmul.f32 %v8575_v36, %v10676_v1 }
 0x4a8   : > { %v8579_v13 = vpop.eup %8578  ;;  %v5343_v18 = vsel %vm5037_vm1, %v10983_v35, 0.0  ;;  %v10995_v20 = vmul.f32 %v8577_v56, %v10702_v59  ;;  %v5226_v15 = vmul.f32 1.442695, %v5164_v39 }
 0x4a9   : > { %5332 = vadd.xlane.f32.xlu0 %v5331_v2  ;;  %v8581_v50 = vpop.eup %8580  ;;  %v5298_v24 = vsel %vm5037_vm1, %v10988_v19, 0.0  ;;  %v11000_v17 = vmul.f32 %v8579_v13, %v10641_v25 }
 0x4aa   : > { %5287 = vadd.xlane.f32.xlu1 %v5286_v40  ;;  %v8583_v8 = vpop.eup %8582  ;;  %v5349_v3 = vsel %vm5037_vm1, %v10995_v20, 0.0  ;;  %v11007_v59 = vmul.f32 %v8581_v50, %v10678_v11  ;;  %v5222_v40 = vmul.f32 1.442695, %v5162_v58 }
 0x4ab   : > { %v8585_v0 = vpop.eup %8584  ;;  %v5304_v46 = vsel %vm5037_vm1, %v11000_v17, 0.0  ;;  %v11012_v21 = vmul.f32 %v8583_v8, %v10627_v49 }
 0x4ac   : > { %v5355_v53 = vsel %vm5037_vm1, %v11007_v59, 0.0  ;;  %v11020_v48 = vmul.f32 %v8585_v0, %v10625_v32  ;;  %v8587_v2 = vpop.eup %8586  ;;  %8594 = vpow2.f32 %v5222_v40  ;;  %v3961_v0 = vcombine.high %v10829_v14, %v3525_v47 }
 0x4ad   : > { %5338 = vadd.xlane.f32.xlu0 %v5337_v26  ;;  %v5310_v11 = vsel %vm5037_vm1, %v11012_v21, 0.0  ;;  %v11027_v36 = vmul.f32 %v8587_v2, %v10676_v1  ;;  %v8589_v45 = vpop.eup %8588  ;;  %8596 = vpow2.f32 %v5226_v15 }
 0x4ae   : > { %5293 = vadd.xlane.f32.xlu1 %v5292_v51  ;;  %v5316_v22 = vsel %vm5037_vm1, %v11020_v48, 0.0  ;;  %v11032_v56 = vmul.f32 %v8589_v45, %v10641_v25  ;;  %v8591_v51 = vpop.eup %8590 }
 0x4af   : > { %v5322_v26 = vsel %vm5037_vm1, %v11027_v36, 0.0  ;;  %v11037_v57 = vmul.f32 %v8591_v51, %v10627_v49  ;;  %v8593_v13 = vpop.eup %8592  ;;  %v4013_v51 = vcombine.high %v10401_v34, %v10831_v27 }
 0x4b0   : > { %v5328_v61 = vsel %vm5037_vm1, %v11032_v56, 0.0  ;;  %v11042_v54 = vmul.f32 %v8593_v13, %v10625_v32 }
 0x4b1   : > { %5344 = vadd.xlane.f32.xlu0 %v5343_v18  ;;  %v5334_v37 = vsel %vm5037_vm1, %v11037_v57, 0.0 }
 0x4b2   : > { %5299 = vadd.xlane.f32.xlu1 %v5298_v24  ;;  %v5340_v50 = vsel %vm5037_vm1, %v11042_v54, 0.0 }
 0x4b5   : > { %5350 = vadd.xlane.f32.xlu0 %v5349_v3  ;;  %v3960_v3 = vcombine.low %v10829_v14, %v3525_v47 }
 0x4b6   : > { %5305 = vadd.xlane.f32.xlu1 %v5304_v46  ;;  %v8595_v18 = vpop.eup %8594 }
 0x4b7   : > { %v11047_v24 = vmul.f32 %v8595_v18, %v10676_v1  ;;  %v8597_v8 = vpop.eup %8596  ;;  %v3944_v1 = vcombine.low %v10379_v4, %v10833_v28  ;;  %v3968_v46 = vrot.slane %v3960_v3, %v9636_v38  ;;  %v4027_v3 = vrot.slane %v4013_v51, %v9636_v38 }
 0x4b8   : > { %v11052_v43 = vmul.f32 %v8597_v8, %v10641_v25  ;;  %v3975_v25 = vrot.slane %v3961_v0, %v9636_v38 }
 0x4b9   : > { %5356 = vadd.xlane.f32.xlu0 %v5355_v53  ;;  %v5346_v49 = vsel %vm5037_vm1, %v11047_v24, 0.0  ;;  %v3952_v33 = vrot.slane %v3944_v1, %v9636_v38  ;;  %v3959_v53 = vrot.slane %v3945_v55, %v9636_v38 }
 0x4ba   : > { %5311 = vadd.xlane.f32.xlu1 %v5310_v11  ;;  %v5352_v32 = vsel %vm5037_vm1, %v11052_v43, 0.0 }
 0x4bb   : > { %v3976_v11 = vcombine.low %v3952_v33, %v3968_v46  ;;  %v3977_v2 = vcombine.high %v3952_v33, %v3968_v46  ;;  %v3992_v39 = vcombine.low %v3959_v53, %v3975_v25  ;;  %v3993_v14 = vcombine.high %v3959_v53, %v3975_v25 }
 0x4bd   : > { %v3991_v4 = vrot.slane %v3977_v2, %v9639_v44  ;;  %v4000_v28 = vrot.slane %v3992_v39, %v9639_v44  ;;  %v4007_v45 = vrot.slane %v3993_v14, %v9639_v44 }
 0x4be   : > { %5317 = vadd.xlane.f32.xlu1 %v5316_v22  ;;  %v3984_v22 = vrot.slane %v3976_v11, %v9639_v44 }
 0x4bf   : > { %v7730_v18 = vcombine.high %v4000_v28, %v4007_v45 }
 0x4c0   : > { %v7729_v13 = vcombine.high %v3984_v22, %v3991_v4 }
 0x4c2   : > { %5323 = vadd.xlane.f32.xlu1 %v5322_v26  ;;  %v4012_v26 = vcombine.low %v10401_v34, %v10831_v27  ;;  %v11086_v55 = vrot.slane %v7729_v13, %v9636_v38 }
 0x4c4   : > { %v4020_v47 = vrot.slane %v4012_v26, %v9636_v38 }
 0x4c6   : > { %5329 = vadd.xlane.f32.xlu1 %v5328_v61  ;;  %v4488_v61 = vcombine.low %v3984_v22, %v3991_v4 }
 0x4c8   : > { %v11081_v0 = vrot.slane %v4488_v61, %v9636_v38 }
 0x4ca   : > { %5335 = vadd.xlane.f32.xlu1 %v5334_v37  ;;  %v4504_v37 = vcombine.low %v4000_v28, %v4007_v45 }
 0x4cc   : > { %v11089_v46 = vrot.slane %v4504_v37, %v9636_v38 }
 0x4ce   : > { %5341 = vadd.xlane.f32.xlu1 %v5340_v50 }
 0x4d2   : > { %5347 = vadd.xlane.f32.xlu1 %v5346_v49 }
 0x4d6   : > { %5353 = vadd.xlane.f32.xlu1 %v5352_v32 }
 0x4f6   : > { %v11065_v58 = vpop.xlane.xlu0 %5269 }
 0x4f7   : > { %vm5360_vm5 = vcmp.gt.f32.partialorder %v11065_v58, 0.0 }
 0x4fa   : > { %v5264_v40 = vpop.xlane.xlu0 %5263 }
 0x4fb   : > { %8598 = vrcp.f32 %v5264_v40  ;;  %vm5358_vm2 = vcmp.gt.f32.partialorder %v5264_v40, 0.0  ;;  %v4520_v40 = vcombine.low %v11081_v0, %v11086_v55 }
 0x4fe   : > { %v5267_v15 = vpop.xlane.xlu1 %5266 }
 0x4ff   : > { %8600 = vrcp.f32 %v5267_v15  ;;  %v5273_v8 = vpop.xlane.xlu0 %5272  ;;  %vm5359_vm3 = vcmp.gt.f32.partialorder %v5267_v15, 0.0 }
 0x500   : > { %8602 = vrcp.f32 %v5273_v8  ;;  %vm5361_vm4 = vcmp.gt.f32.partialorder %v5273_v8, 0.0 }
 0x501   : > { %8604 = vrcp.f32 %v11065_v58  ;;  %v11901_v58 = vld [vmem:[#allocation33_spill] sm:$0xff] }
 0x502   : > { %v3527_v50 = vpop.permute.xlu1 %3526 }
 0x503   : > { %v4028_v49 = vcombine.low %v10827_v60, %v3527_v50  ;;  %v4029_v32 = vcombine.high %v10827_v60, %v3527_v50  ;;  %v11092_v60 = vrot.slane %v7730_v18, %v9636_v38 }
 0x505   : > { %v4036_v1 = vrot.slane %v4028_v49, %v9636_v38  ;;  %v4043_v34 = vrot.slane %v4029_v32, %v9636_v38  ;;  %v8599_v27 = vpop.eup %8598  ;;  %v4536_v51 = vcombine.low %v11089_v46, %v11092_v60 }
 0x506   : > { %v5422_v11 = vsel %vm5358_vm2, %v8599_v27, 0.0 }
 0x507   : > { %v4044_v25 = vcombine.low %v4020_v47, %v4036_v1  ;;  %v4045_v33 = vcombine.high %v4020_v47, %v4036_v1  ;;  %v4060_v53 = vcombine.low %v4027_v3, %v4043_v34  ;;  %v4061_v2 = vcombine.high %v4027_v3, %v4043_v34 }
 0x508   : > { %v5454_v61 = vmul.f32 %v5422_v11, %v10854_v23  ;;  %v4528_v34 = vrot.slane %v4520_v40, %v9639_v44  ;;  %v4544_v23 = vrot.slane %v4536_v51, %v9639_v44 }
 0x509   : > { %v8601_v39 = vpop.eup %8600  ;;  %v4052_v14 = vrot.slane %v4044_v25, %v9639_v44  ;;  %v4059_v22 = vrot.slane %v4045_v33, %v9639_v44  ;;  %v4068_v4 = vrot.slane %v4060_v53, %v9639_v44  ;;  %v4075_v45 = vrot.slane %v4061_v2, %v9639_v44 }
 0x50a   : > { %v5423_v28 = vsel %vm5359_vm3, %v8601_v39, 0.0  ;;  %v11099_v26 = vpop.xlane.xlu0 %5275  ;;  %v8603_v27 = vpop.eup %8602 }
 0x50b   : > { %v5455_v15 = vmul.f32 %v5423_v28, %v10859_v62  ;;  %v4556_v13 = vcombine.low %v4052_v14, %v4059_v22  ;;  %v7731_v37 = vcombine.high %v4052_v14, %v4059_v22  ;;  %v4572_v18 = vcombine.low %v4068_v4, %v4075_v45  ;;  %v8605_v11 = vpop.eup %8604 }
 0x50c   : > { %v7732_v50 = vcombine.high %v4068_v4, %v4075_v45  ;;  %v5425_v39 = vsel %vm5361_vm4, %v8603_v27, 0.0  ;;  %v4552_v14 = vcombine.low %v4528_v34, %v4544_v23  ;;  %v4553_v22 = vcombine.high %v4528_v34, %v4544_v23  ;;  %v11152_v23 = vld [vmem:[%s9432_s17] sm:$0xff]  }
 0x50d   : > { %v5486_v49 = vpack.c.bf16 %v5455_v15, %v5454_v61  ;;  %v4563_v32 = vrot.slane %v4556_v13, %v9636_v38  ;;  %v4571_v47 = vrot.slane %v7731_v37, %v9636_v38  ;;  %v4579_v3 = vrot.slane %v4572_v18, %v9636_v38  ;;  %v11900_v18 = vld [vmem:[#allocation31_spill] sm:$0xff] }
 0x50e   : > { %v4587_v1 = vrot.slane %v7732_v50, %v9636_v38  ;;  %v11114_v25 = vpop.xlane.xlu0 %5281  ;;  %v5424_v28 = vsel %vm5360_vm5, %v8605_v11, 0.0  ;;  %v5457_v45 = vmul.f32 %v5425_v39, %v10863_v31  ;;  %v4521_v50 = vcombine.high %v11081_v0, %v11086_v55 }
 0x50f   : > { %8152 = vmatprep.mubr.msk.bf16.mxu0 %vm5037_vm1, %v5486_v49  ;;  %v4588_v62 = vcombine.low %v4563_v32, %v4571_v47  ;;  %v5456_v15 = vmul.f32 %v5424_v28, %v10847_v16  ;;  %v4589_v8 = vcombine.high %v4563_v32, %v4571_v47  ;;  %v4537_v31 = vcombine.high %v11089_v46, %v11092_v60  ;;  %v11902_v47 = vld [vmem:[#allocation32_spill] sm:$0xff]  ;;  %v11903_v60 = vld [vmem:[#allocation34_spill] sm:$0xff] }
 0x510   : > { %v4604_v33 = vcombine.low %v4579_v3, %v4587_v1  ;;  %v4605_v13 = vcombine.high %v4579_v3, %v4587_v1  ;;  %v11137_v3 = vrot.slane %v4521_v50, %v9639_v44  ;;  %vm5362_vm7 = vcmp.gt.f32.partialorder %v11099_v26, 0.0 }
 0x511   : > { %v4596_v53 = vrot.slane %v4588_v62, %v9639_v44  ;;  %v5487_v37 = vpack.c.bf16 %v5457_v45, %v5456_v15  ;;  %v11129_v16 = vrot.slane %v4589_v8, %v9639_v44  ;;  %v11140_v0 = vrot.slane %v4537_v31, %v9639_v44 }
 0x512   : > { %v4612_v2 = vrot.slane %v4604_v33, %v9639_v44  ;;  %v5285_v40 = vpop.xlane.xlu0 %5284  ;;  %v11132_v32 = vrot.slane %v4605_v13, %v9639_v44  ;;  %vm5364_vm8 = vcmp.gt.f32.partialorder %v11114_v25, 0.0 }
 0x513   : > { %v4554_v1 = vcombine.low %v11137_v3, %v11140_v0  ;;  %8606 = vrcp.f32 %v5285_v40  ;;  %vm5365_vm6 = vcmp.gt.f32.partialorder %v5285_v40, 0.0 }
 0x514   : > { %v4620_v38 = vcombine.low %v4596_v53, %v4612_v2  ;;  %v4621_v4 = vcombine.high %v4596_v53, %v4612_v2  ;;  %v4622_v55 = vcombine.low %v11129_v16, %v11132_v32  ;;  %8608 = vrcp.f32 %v11099_v26 }
 0x515   : > { %8610 = vrcp.f32 %v11114_v25 }
 0x516   : > { %v5505_v51 = vpack.c.bf16 %v4620_v38, %v4552_v14  ;;  %v5509_v61 = vpack.c.bf16 %v4621_v4, %v4553_v22  ;;  %v5291_v49 = vpop.xlane.xlu0 %5290  ;;  %v5513_v34 = vpack.c.bf16 %v4622_v55, %v4554_v1  ;;  %v11905_v1 = vld [vmem:[#allocation42_spill] sm:$0xff] }
 0x517   : > { %8612 = vrcp.f32 %v5291_v49  ;;  %vm5367_vm10 = vcmp.gt.f32.partialorder %v5291_v49, 0.0 }
 0x518   : > { %8150 = vmatprep.subr.bf16.mxu0 %v5505_v51  ;;  %8166 = vmatprep.subr.bf16.mxu1 %v5509_v61 }
 0x519   : > { %8151 = vmatpush3.bf16.msra.mxu0 %v5505_v51  ;;  %8167 = vmatpush3.bf16.msra.mxu1 %v5509_v61 }
 0x51a   : > { %8176 = vmatprep.subr.bf16.mxu0 %v11900_v18  ;;  %8192 = vmatprep.subr.bf16.mxu1 %v11901_v58  ;;  %v11145_v46 = vpop.xlane.xlu0 %5296 }
 0x51b   : > { %vm5369_vm12 = vcmp.gt.f32.partialorder %v11145_v46, 0.0 }
 0x51c   : > { %8153 = vmatmul.mubr.msk.bf16.vlgmr.msra.gmra.mrb[32].mxu0 %vm5037_vm1, %v5487_v37 }
 0x51d   : > { %8177 = vmatpush3.bf16.msra.mxu0 %v11900_v18  ;;  %v8607_v11 = vpop.eup %8606  ;;  %v11904_v18 = vld [vmem:[#allocation36_spill] sm:$0xff] }
 0x51e   : > { %8178 = vmatprep.subr.bf16.mxu0 %v11902_v47  ;;  %v11154_v44 = vpop.xlane.xlu0 %5302  ;;  %v8609_v2 = vpop.eup %8608  ;;  %v5429_v22 = vsel %vm5365_vm6, %v8607_v11, 0.0 }
 0x51f   : > { %v8611_v14 = vpop.eup %8610  ;;  %v5426_v28 = vsel %vm5362_vm7, %v8609_v2, 0.0  ;;  %v5461_v15 = vmul.f32 %v5429_v22, %v10887_v9  ;;  %v11906_v22 = vld [vmem:[#allocation43_spill] sm:$0xff]  ;;  %vm5371_vm14 = vcmp.gt.f32.partialorder %v11154_v44, 0.0 }
 0x520   : > { %v5428_v51 = vsel %vm5364_vm8, %v8611_v14, 0.0  ;;  %v5458_v13 = vmul.f32 %v5426_v28, %v10872_v42 }
 0x521   : > { %8179 = vmatpush3.bf16.msra.mxu0 %v11902_v47  ;;  %v8613_v4 = vpop.eup %8612  ;;  %v5460_v25 = vmul.f32 %v5428_v51, %v11904_v18 }
 0x522   : > { %8180 = vmatprep.subr.bf16.mxu0 %v11903_v60  ;;  %v11157_v62 = vpop.xlane.xlu0 %5308  ;;  %v5431_v50 = vsel %vm5367_vm10, %v8613_v4, 0.0 }
 0x523   : > { %v5489_v55 = vpack.c.bf16 %v5461_v15, %v5460_v25  ;;  %vm5373_vm2 = vcmp.gt.f32.partialorder %v11157_v62, 0.0 }
 0x525   : > { %8181 = vmatpush3.bf16.msra.mxu0 %v11903_v60 }
 0x526   : > { %8182 = vmatprep.subr.bf16.mxu0 %v5513_v34  ;;  %v11161_v33 = vpop.xlane.xlu0 %5314 }
 0x527   : > { %vm5375_vm4 = vcmp.gt.f32.partialorder %v11161_v33, 0.0 }
 0x529   : > { %8183 = vmatpush3.bf16.msra.mxu0 %v5513_v34  ;;  %v5463_v34 = vmul.f32 %v5431_v50, %v11905_v1 }
 0x52a   : > { %8208 = vmatprep.subr.bf16.mxu0 %v11152_v23  ;;  %v11164_v39 = vpop.xlane.xlu0 %5320 }
 0x52b   : > { %vm5377_vm6 = vcmp.gt.f32.partialorder %v11164_v39, 0.0 }
 0x532   : > { %v11169_v61 = vpop.xlane.xlu0 %5326 }
 0x533   : > { %v5279_v27 = vpop.xlane.xlu1 %5278  ;;  %vm5379_vm8 = vcmp.gt.f32.partialorder %v11169_v61, 0.0 }
 0x534   : > { %8614 = vrcp.f32 %v5279_v27  ;;  %vm5363_vm9 = vcmp.gt.f32.partialorder %v5279_v27, 0.0 }
 0x535   : > { %8616 = vrcp.f32 %v11145_v46 }
 0x536   : > { %v11179_v42 = vpop.xlane.xlu0 %5332 }
 0x537   : > { %v5288_v53 = vpop.xlane.xlu1 %5287  ;;  %vm5381_vm10 = vcmp.gt.f32.partialorder %v11179_v42, 0.0 }
 0x538   : > { %8618 = vrcp.f32 %v5288_v53  ;;  %vm5366_vm11 = vcmp.gt.f32.partialorder %v5288_v53, 0.0 }
 0x539   : > { %8620 = vrcp.f32 %v11154_v44 }
 0x53a   : > { %v11189_v51 = vpop.xlane.xlu0 %5338 }
 0x53b   : > { %v5294_v38 = vpop.xlane.xlu1 %5293 }
 0x53c   : > { %8622 = vrcp.f32 %v5294_v38  ;;  %vm5368_vm13 = vcmp.gt.f32.partialorder %v5294_v38, 0.0 }
 0x53d   : > { %8624 = vrcp.f32 %v11157_v62  ;;  %v4623_v62 = vcombine.high %v11129_v16, %v11132_v32 }
 0x53e   : > { %v8615_v45 = vpop.eup %8614  ;;  %v11203_v50 = vpop.xlane.xlu0 %5344 }
 0x53f   : > { %v5427_v40 = vsel %vm5363_vm9, %v8615_v45, 0.0  ;;  %v5300_v8 = vpop.xlane.xlu1 %5299  ;;  %v8617_v37 = vpop.eup %8616 }
 0x540   : > { %v5459_v26 = vmul.f32 %v5427_v40, %v10951_v12  ;;  %8626 = vrcp.f32 %v5300_v8  ;;  %v5433_v27 = vsel %vm5369_vm12, %v8617_v37, 0.0  ;;  %vm5370_vm15 = vcmp.gt.f32.partialorder %v5300_v8, 0.0  ;;  %v11907_v8 = vld [vmem:[#allocation35_spill] sm:$0xff] }
 0x541   : > { %8628 = vrcp.f32 %v11161_v33  ;;  %v5465_v46 = vmul.f32 %v5433_v27, %v11906_v22  ;;  %vm5383_vm12 = vcmp.gt.f32.partialorder %v11189_v51, 0.0 }
 0x542   : > { %v8619_v31 = vpop.eup %8618  ;;  %v5488_v47 = vpack.c.bf16 %v5459_v26, %v5458_v13 }
 0x543   : > { %v5430_v9 = vsel %vm5366_vm11, %v8619_v31, 0.0  ;;  %v5306_v60 = vpop.xlane.xlu1 %5305  ;;  %v8621_v49 = vpop.eup %8620 }
 0x544   : > { %v5462_v12 = vmul.f32 %v5430_v9, %v10966_v10  ;;  %8630 = vrcp.f32 %v5306_v60  ;;  %8156 = vmatprep.mubr.msk.bf16.mxu0 %vm5037_vm1, %v5488_v47  ;;  %v5435_v28 = vsel %vm5371_vm14, %v8621_v49, 0.0  ;;  %vm5372_vm3 = vcmp.gt.f32.partialorder %v5306_v60, 0.0 }
 0x545   : > { %8157 = vmatmul.mubr.msk.bf16.gmra.mrb[36].mxu0 %vm5037_vm1, %v5489_v55  ;;  %8632 = vrcp.f32 %v11164_v39  ;;  %v5467_v13 = vmul.f32 %v5435_v28, %v10911_v41  ;;  %v4555_v55 = vcombine.high %v11137_v3, %v11140_v0  ;;  %vm5385_vm14 = vcmp.gt.f32.partialorder %v11203_v50, 0.0 }
 0x546   : > { %v8623_v53 = vpop.eup %8622  ;;  %v5490_v11 = vpack.c.bf16 %v5463_v34, %v5462_v12  ;;  %v11217_v12 = vpop.xlane.xlu0 %5350 }
 0x547   : > { %v5432_v2 = vsel %vm5368_vm13, %v8623_v53, 0.0  ;;  %v5312_v14 = vpop.xlane.xlu1 %5311  ;;  %v8625_v4 = vpop.eup %8624 }
 0x548   : > { %v5464_v10 = vmul.f32 %v5432_v2, %v10977_v52  ;;  %8634 = vrcp.f32 %v5312_v14  ;;  %8168 = vmatprep.mubr.msk.bf16.mxu1 %vm5037_vm1, %v5490_v11  ;;  %v5437_v26 = vsel %vm5373_vm2, %v8625_v4, 0.0  ;;  %vm5374_vm5 = vcmp.gt.f32.partialorder %v5312_v14, 0.0 }
 0x549   : > { %8636 = vrcp.f32 %v11169_v61  ;;  %vm5387_vm2 = vcmp.gt.f32.partialorder %v11217_v12, 0.0 }
 0x54a   : > { %v8627_v45 = vpop.eup %8626  ;;  %v5491_v15 = vpack.c.bf16 %v5465_v46, %v5464_v10 }
 0x54b   : > { %v5434_v38 = vsel %vm5370_vm15, %v8627_v45, 0.0  ;;  %v5318_v40 = vpop.xlane.xlu1 %5317  ;;  %v8629_v44 = vpop.eup %8628 }
 0x54c   : > { %v5466_v52 = vmul.f32 %v5434_v38, %v10988_v19  ;;  %8638 = vrcp.f32 %v5318_v40  ;;  %8169 = vmatmul.mubr.msk.bf16.vlgmr.msra.gmra.mrb[24].mxu1 %vm5037_vm1, %v5491_v15  ;;  %v5469_v19 = vmul.f32 %v5437_v26, %v10919_v63  ;;  %v5439_v47 = vsel %vm5375_vm4, %v8629_v44, 0.0  ;;  %v11908_v63 = vld [vmem:[#allocation37_spill] sm:$0xff] }
 0x54d   : > { %8193 = vmatpush3.bf16.msra.mxu1 %v11901_v58  ;;  %8640 = vrcp.f32 %v11179_v42  ;;  %v5471_v60 = vmul.f32 %v5439_v47, %v10930_v7  ;;  %vm5376_vm7 = vcmp.gt.f32.partialorder %v5318_v40, 0.0 }
 0x54e   : > { %v8631_v37 = vpop.eup %8630  ;;  %v5492_v18 = vpack.c.bf16 %v5467_v13, %v5466_v52  ;;  %8194 = vmatprep.subr.bf16.mxu1 %v11907_v8 }
 0x54f   : > { %v5436_v25 = vsel %vm5372_vm3, %v8631_v37, 0.0  ;;  %v5324_v41 = vpop.xlane.xlu1 %5323  ;;  %v8633_v31 = vpop.eup %8632 }
 0x550   : > { %v5468_v58 = vmul.f32 %v5436_v25, %v11000_v17  ;;  %8642 = vrcp.f32 %v5324_v41  ;;  %8172 = vmatprep.mubr.msk.bf16.mxu1 %vm5037_vm1, %v5492_v18  ;;  %v5517_v17 = vpack.c.bf16 %v4623_v62, %v4555_v55  ;;  %v5441_v0 = vsel %vm5377_vm6, %v8633_v31, 0.0 }
 0x551   : > { %8195 = vmatpush3.bf16.msra.mxu1 %v11907_v8  ;;  %8644 = vrcp.f32 %v11189_v51  ;;  %v5473_v39 = vmul.f32 %v5441_v0, %v10939_v29  ;;  %vm5378_vm9 = vcmp.gt.f32.partialorder %v5324_v41, 0.0  ;;  %v5357_v29 = vpop.xlane.xlu0 %5356  ;;  %v8450_v0 = vld [vmem:[%s9432_s17 + $0x20] sm:$0xff]  }
 0x552   : > { %v8635_v9 = vpop.eup %8634  ;;  %v5493_v16 = vpack.c.bf16 %v5469_v19, %v5468_v58  ;;  %8196 = vmatprep.subr.bf16.mxu1 %v11908_v63  ;;  %vm5389_vm4 = vcmp.gt.f32.partialorder %v5357_v29, 0.0 }
 0x553   : > { %v5438_v32 = vsel %vm5374_vm5, %v8635_v9, 0.0  ;;  %v5330_v33 = vpop.xlane.xlu1 %5329  ;;  %v8637_v3 = vpop.eup %8636 }
 0x554   : > { %v5470_v1 = vmul.f32 %v5438_v32, %v11012_v21  ;;  %8646 = vrcp.f32 %v5330_v33  ;;  %8173 = vmatmul.mubr.msk.bf16.gmra.mrb[28].mxu1 %vm5037_vm1, %v5493_v16  ;;  %v5443_v11 = vsel %vm5379_vm8, %v8637_v3, 0.0  ;;  %vm5380_vm11 = vcmp.gt.f32.partialorder %v5330_v33, 0.0  ;;  %v8448_v32 = vld [vmem:[%s9432_s17 + $0x10] sm:$0xff]   ;;  %v8449_v3 = vld [vmem:[%s9432_s17 + $0x18] sm:$0xff]  }
 0x555   : > { %8197 = vmatpush3.bf16.msra.mxu1 %v11908_v63  ;;  %8648 = vrcp.f32 %v11203_v50  ;;  %v5475_v10 = vmul.f32 %v5443_v11, %v10954_v6 }
 0x556   : > { %v8639_v34 = vpop.eup %8638  ;;  %v5494_v49 = vpack.c.bf16 %v5471_v60, %v5470_v1  ;;  %8198 = vmatprep.subr.bf16.mxu1 %v5517_v17 }
 0x557   : > { %v5440_v7 = vsel %vm5376_vm7, %v8639_v34, 0.0  ;;  %v5336_v27 = vpop.xlane.xlu1 %5335  ;;  %v8641_v53 = vpop.eup %8640 }
 0x558   : > { %v5472_v21 = vmul.f32 %v5440_v7, %v11020_v48  ;;  %8650 = vrcp.f32 %v5336_v27  ;;  %8184 = vmatprep.mubr.msk.bf16.mxu0 %vm5037_vm1, %v5494_v49  ;;  %v5445_v4 = vsel %vm5381_vm10, %v8641_v53, 0.0  ;;  %vm5382_vm13 = vcmp.gt.f32.partialorder %v5336_v27, 0.0 }
 0x559   : > { %8199 = vmatpush3.bf16.msra.mxu1 %v5517_v17  ;;  %8652 = vrcp.f32 %v11217_v12  ;;  %v5477_v6 = vmul.f32 %v5445_v4, %v10961_v30 }
 0x55a   : > { %v8643_v2 = vpop.eup %8642  ;;  %v5495_v14 = vpack.c.bf16 %v5473_v39, %v5472_v21 }
 0x55b   : > { %v5442_v22 = vsel %vm5378_vm9, %v8643_v2, 0.0  ;;  %v5342_v46 = vpop.xlane.xlu1 %5341  ;;  %v8645_v61 = vpop.eup %8644 }
 0x55c   : > { %v5474_v48 = vmul.f32 %v5442_v22, %v11027_v36  ;;  %8654 = vrcp.f32 %v5342_v46  ;;  %8185 = vmatmul.mubr.msk.bf16.vlgmr.msra.gmra.mrb[40].mxu0 %vm5037_vm1, %v5495_v14  ;;  %v5447_v40 = vsel %vm5383_vm12, %v8645_v61, 0.0  ;;  %vm5384_vm15 = vcmp.gt.f32.partialorder %v5342_v46, 0.0  ;;  %v8451_v46 = vld [vmem:[%s9432_s17 + $0x28] sm:$0xff]   ;;  %v8452_v61 = vld [vmem:[%s9432_s17 + $0x30] sm:$0xff]  }
 0x55d   : > { %8209 = vmatpush3.bf16.msra.mxu0 %v11152_v23  ;;  %8656 = vrcp.f32 %v5357_v29  ;;  %v5479_v26 = vmul.f32 %v5447_v40, %v10972_v5 }
 0x55e   : > { %v8647_v28 = vpop.eup %8646  ;;  %v5496_v45 = vpack.c.bf16 %v5475_v10, %v5474_v48 }
 0x55f   : > { %v5444_v15 = vsel %vm5380_vm11, %v8647_v28, 0.0  ;;  %v5348_v38 = vpop.xlane.xlu1 %5347  ;;  %v8649_v36 = vpop.eup %8648 }
 0x560   : > { %v5476_v42 = vmul.f32 %v5444_v15, %v11032_v56  ;;  %8658 = vrcp.f32 %v5348_v38  ;;  %8188 = vmatprep.mubr.msk.bf16.mxu0 %vm5037_vm1, %v5496_v45  ;;  %v5449_v51 = vsel %vm5385_vm14, %v8649_v36, 0.0  ;;  %vm5386_vm3 = vcmp.gt.f32.partialorder %v5348_v38, 0.0 }
 0x561   : > { %v5481_v25 = vmul.f32 %v5449_v51, %v10983_v35 }
 0x562   : > { %v8651_v13 = vpop.eup %8650  ;;  %v5497_v52 = vpack.c.bf16 %v5477_v6, %v5476_v42 }
 0x563   : > { %v5446_v23 = vsel %vm5382_vm13, %v8651_v13, 0.0  ;;  %v5354_v44 = vpop.xlane.xlu1 %5353  ;;  %v8653_v56 = vpop.eup %8652  ;;  %v8453_v13 = vld [vmem:[%s9432_s17 + $0x38] sm:$0xff]  }
 0x564   : > { %v5478_v30 = vmul.f32 %v5446_v23, %v11037_v57  ;;  %8660 = vrcp.f32 %v5354_v44  ;;  %8189 = vmatmul.mubr.msk.bf16.gmra.mrb[44].mxu0 %vm5037_vm1, %v5497_v52  ;;  %v5451_v62 = vsel %vm5387_vm2, %v8653_v56, 0.0  ;;  %vm5388_vm5 = vcmp.gt.f32.partialorder %v5354_v44, 0.0 }
 0x565   : > { %v5483_v58 = vmul.f32 %v5451_v62, %v10995_v20  ;;  %v8447_v20 = vld [vmem:[%s9432_s17 + $0x8] sm:$0xff]  }
 0x566   : > { %v8655_v37 = vpop.eup %8654  ;;  %v5498_v18 = vpack.c.bf16 %v5479_v26, %v5478_v30  ;;  %8210 = vmatprep.subr.bf16.mxu0 %v8447_v20 }
 0x567   : > { %v5448_v8 = vsel %vm5384_vm15, %v8655_v37, 0.0  ;;  %v8657_v5 = vpop.eup %8656  ;;  %8211 = vmatpush3.bf16.msra.mxu0 %v8447_v20 }
 0x568   : > { %v5480_v41 = vmul.f32 %v5448_v8, %v11042_v54  ;;  %8200 = vmatprep.mubr.msk.bf16.mxu1 %vm5037_vm1, %v5498_v18  ;;  %v5453_v35 = vsel %vm5389_vm4, %v8657_v5, 0.0  ;;  %8220 = vmatprep.subr.bf16.mxu0 %v8448_v32 }
 0x569   : > { %v5485_v9 = vmul.f32 %v5453_v35, %v11007_v59 }
 0x56a   : > { %v8659_v57 = vpop.eup %8658  ;;  %v5499_v19 = vpack.c.bf16 %v5481_v25, %v5480_v41 }
 0x56b   : > { %v5450_v50 = vsel %vm5386_vm3, %v8659_v57, 0.0 }
 0x56c   : > { %v5482_v31 = vmul.f32 %v5450_v50, %v11047_v24  ;;  %8201 = vmatmul.mubr.msk.bf16.vlgmr.msra.gmra.mrb[32].mxu1 %vm5037_vm1, %v5499_v19  ;;  %v11909_v24 = vmov 0  }
 0x56e   : > { %v8661_v47 = vpop.eup %8660  ;;  %v5500_v54 = vpack.c.bf16 %v5483_v58, %v5482_v31  ;;  %v7797_v31 = vld [vmem:[%s11911_s15] ss:$0 sm:$0xff]  ;;  %s8990_s15 = smov [#allocation12]  }
 0x56f   : > { %v5452_v55 = vsel %vm5388_vm5, %v8661_v47, 0.0  ;;  %s8882_s24 = sshll.u32 %s8990_s15, 4  ;;  %s8883_s24 = int_to_ptr.vmem [resolvable:$false] %s8882_s24 }
 0x570   : > { %v5484_v16 = vmul.f32 %v5452_v55, %v11052_v43  ;;  %8204 = vmatprep.mubr.msk.bf16.mxu1 %vm5037_vm1, %v5500_v54  ;;  %s8884_s10 = scalar_lea.vmem %s8883_s24, 2048 }
 0x572   : > { %v5501_v63 = vpack.c.bf16 %v5485_v9, %v5484_v16  ;;  %v8694_v16 = vld [vmem:[#allocation2] sm:$0xff] }
 0x574   : > { %8205 = vmatmul.mubr.msk.bf16.gmra.mrb[36].mxu1 %vm5037_vm1, %v5501_v63 }
 0x575   : > { %6654 = vmatprep.mubr.bf16.mxu1 %v11909_v24 }
 0x5ef   : > { %v8154_v33 = vpop.f32.mrb[32].mxu0 }
 0x5f0   : > { %v5564_v17 = vpop.f32.mrb[33].mxu0 }
 0x5f1   : > { %v8155_v60 = vpop.f32.mrb[34].mxu0 }
 0x5f2   : > { %v5827_v59 = vpack.c.bf16 %v8155_v60, %v8154_v33  ;;  %v5567_v1 = vpop.f32.mrb[35].mxu0 }
 0x5f3   : > { %v5826_v43 = vpack.c.bf16 %v5567_v1, %v5564_v17 }
 0x5f5   : > { %8212 = vmatprep.mubr.msk.bf16.mxu0 %vm4680_vm0, %v5826_v43 }
 0x5f6   : > { %8213 = vmatmul.mubr.msk.bf16.vlgmr.msra.gmra.mrb[48].mxu0 %vm4680_vm0, %v5827_v59 }
 0x5f7   : > { %8221 = vmatpush3.bf16.msra.mxu0 %v8448_v32  ;;  %v8695_v32 = vld [vmem:[#allocation2 + $0x8] sm:$0xff] }
 0x5f8   : > { %8222 = vmatprep.subr.bf16.mxu0 %v8449_v3 }
 0x5fb   : > { %8223 = vmatpush3.bf16.msra.mxu0 %v8449_v3 }
 0x5fc   : > { %8232 = vmatprep.subr.bf16.mxu0 %v8450_v0 }
 0x618   : > { %v8158_v34 = vpop.f32.mrb[36].mxu0 }
 0x619   : > { %v5580_v12 = vpop.f32.mrb[37].mxu0 }
 0x61a   : > { %v8159_v49 = vpop.f32.mrb[38].mxu0 }
 0x61b   : > { %v5829_v7 = vpack.c.bf16 %v8159_v49, %v8158_v34  ;;  %v5583_v27 = vpop.f32.mrb[39].mxu0 }
 0x61c   : > { %v5828_v39 = vpack.c.bf16 %v5583_v27, %v5580_v12  ;;  %v8696_v12 = vld [vmem:[#allocation2 + $0x10] sm:$0xff] }
 0x61e   : > { %8216 = vmatprep.mubr.msk.bf16.mxu0 %vm4680_vm0, %v5828_v39 }
 0x61f   : > { %v8170_v21 = vpop.f32.mrb[24].mxu1  ;;  %8217 = vmatmul.mubr.msk.bf16.gmra.mrb[52].mxu0 %vm4680_vm0, %v5829_v7  ;;  %v8697_v7 = vld [vmem:[#allocation2 + $0x18] sm:$0xff] }
 0x620   : > { %v5641_v53 = vpop.f32.mrb[25].mxu1 }
 0x621   : > { %v8171_v11 = vpop.f32.mrb[26].mxu1 }
 0x622   : > { %v5831_v2 = vpack.c.bf16 %v8171_v11, %v8170_v21  ;;  %v5644_v14 = vpop.f32.mrb[27].mxu1 }
 0x623   : > { %v5830_v22 = vpack.c.bf16 %v5644_v14, %v5641_v53 }
 0x625   : > { %8224 = vmatprep.mubr.msk.bf16.mxu0 %vm4680_vm0, %v5830_v22  ;;  %v8699_v22 = vld [vmem:[#allocation2 + $0x28] sm:$0xff] }
 0x627   : > { %v8174_v10 = vpop.f32.mrb[28].mxu1  ;;  %8225 = vmatmul.mubr.msk.bf16.vlgmr.msra.gmra.mrb[48].mxu0 %vm4680_vm0, %v5831_v2  ;;  %v8698_v2 = vld [vmem:[#allocation2 + $0x20] sm:$0xff] }
 0x628   : > { %8233 = vmatpush3.bf16.msra.mxu0 %v8450_v0  ;;  %v5657_v29 = vpop.f32.mrb[29].mxu1 }
 0x629   : > { %v8175_v48 = vpop.f32.mrb[30].mxu1  ;;  %8234 = vmatprep.subr.bf16.mxu0 %v8451_v46 }
 0x62a   : > { %v5833_v4 = vpack.c.bf16 %v8175_v48, %v8174_v10  ;;  %v5660_v28 = vpop.f32.mrb[31].mxu1  ;;  %v8454_v10 = vld [vmem:[%s9434_s25] ss:$16 sps:$4 sm:$0xff]  }
 0x62b   : > { %v5832_v45 = vpack.c.bf16 %v5660_v28, %v5657_v29  ;;  %v8456_v29 = vld [vmem:[%s9434_s25 + $0x4] ss:$16 sps:$4 sm:$0xff]  }
 0x62c   : > { %8235 = vmatpush3.bf16.msra.mxu0 %v8451_v46  ;;  %6622 = vmatprep.subr.bf16.mxu1 %v8456_v29 }
 0x62d   : > { %8228 = vmatprep.mubr.msk.bf16.mxu0 %vm4680_vm0, %v5832_v45  ;;  %8244 = vmatprep.subr.bf16.mxu0 %v8452_v61  ;;  %v8700_v45 = vld [vmem:[#allocation2 + $0x30] sm:$0xff] }
 0x62e   : > { %6623 = vmatpush1.bf16.msra.mxu1 %v8454_v10 }
 0x62f   : > { %v8186_v15 = vpop.f32.mrb[40].mxu0  ;;  %8229 = vmatmul.mubr.msk.bf16.gmra.mrb[52].mxu0 %vm4680_vm0, %v5833_v4 }
 0x630   : > { %v5718_v38 = vpop.f32.mrb[41].mxu0 }
 0x631   : > { %v8187_v6 = vpop.f32.mrb[42].mxu0 }
 0x632   : > { %v5835_v42 = vpack.c.bf16 %v8187_v6, %v8186_v15  ;;  %v5721_v36 = vpop.f32.mrb[43].mxu0 }
 0x633   : > { %v5834_v40 = vpack.c.bf16 %v5721_v36, %v5718_v38  ;;  %v8701_v38 = vld [vmem:[#allocation2 + $0x38] sm:$0xff] }
 0x635   : > { %8236 = vmatprep.mubr.msk.bf16.mxu0 %vm4680_vm0, %v5834_v40  ;;  %v8457_v40 = vld [vmem:[%s9434_s25 + $0x20] ss:$16 sps:$4 sm:$0xff]  }
 0x637   : > { %v8190_v52 = vpop.f32.mrb[44].mxu0  ;;  %8237 = vmatmul.mubr.msk.bf16.vlgmr.msra.gmra.mrb[48].mxu0 %vm4680_vm0, %v5835_v42 }
 0x638   : > { %8245 = vmatpush3.bf16.msra.mxu0 %v8452_v61  ;;  %v5734_v23 = vpop.f32.mrb[45].mxu0 }
 0x639   : > { %v8191_v44 = vpop.f32.mrb[46].mxu0  ;;  %8246 = vmatprep.subr.bf16.mxu0 %v8453_v13 }
 0x63a   : > { %v5837_v26 = vpack.c.bf16 %v8191_v44, %v8190_v52  ;;  %v5737_v30 = vpop.f32.mrb[47].mxu0  ;;  %v8462_v52 = vld [vmem:[%s9434_s25 + $0x44] ss:$16 sps:$4 sm:$0xff]  }
 0x63b   : > { %v5836_v56 = vpack.c.bf16 %v5737_v30, %v5734_v23  ;;  %v8460_v23 = vld [vmem:[%s9434_s25 + $0x40] ss:$16 sps:$4 sm:$0xff]   ;;  %v8465_v44 = vld [vmem:[%s9434_s25 + $0x64] ss:$16 sps:$4 sm:$0xff]  }
 0x63c   : > { %8247 = vmatpush3.bf16.msra.mxu0 %v8453_v13  ;;  %v8459_v13 = vld [vmem:[%s9434_s25 + $0x24] ss:$16 sps:$4 sm:$0xff]  }
 0x63d   : > { %8240 = vmatprep.mubr.msk.bf16.mxu0 %vm4680_vm0, %v5836_v56  ;;  %6624 = vmatprep.subr.bf16.mxu1 %v8459_v13  ;;  %v8468_v30 = vld [vmem:[%s9434_s25 + $0x84] ss:$16 sps:$4 sm:$0xff]   ;;  %v8466_v56 = vld [vmem:[%s9434_s25 + $0x80] ss:$16 sps:$4 sm:$0xff]  }
 0x63e   : > { %6625 = vmatpush1.bf16.msra.mxu1 %v8457_v40 }
 0x63f   : > { %v8202_v51 = vpop.f32.mrb[32].mxu1  ;;  %8241 = vmatmul.mubr.msk.bf16.gmra.mrb[52].mxu0 %vm4680_vm0, %v5837_v26  ;;  %6626 = vmatprep.subr.bf16.mxu1 %v8462_v52  ;;  %v8463_v26 = vld [vmem:[%s9434_s25 + $0x60] ss:$16 sps:$4 sm:$0xff]  }
 0x640   : > { %v5795_v37 = vpop.f32.mrb[33].mxu1 }
 0x641   : > { %v8203_v18 = vpop.f32.mrb[34].mxu1 }
 0x642   : > { %v5839_v8 = vpack.c.bf16 %v8203_v18, %v8202_v51  ;;  %v5798_v25 = vpop.f32.mrb[35].mxu1  ;;  %6627 = vmatpush1.bf16.msra.mxu1 %v8460_v23  ;;  %v8471_v51 = vld [vmem:[%s9434_s25 + $0xa4] ss:$16 sps:$4 sm:$0xff]  }
 0x643   : > { %v5838_v41 = vpack.c.bf16 %v5798_v25, %v5795_v37  ;;  %6628 = vmatprep.subr.bf16.mxu1 %v8465_v44  ;;  %v8469_v37 = vld [vmem:[%s9434_s25 + $0xa0] ss:$16 sps:$4 sm:$0xff]   ;;  %v8474_v18 = vld [vmem:[%s9434_s25 + $0xc4] ss:$16 sps:$4 sm:$0xff]  }
 0x644   : > { %v8477_v25 = vld [vmem:[%s9434_s25 + $0xe4] ss:$16 sps:$4 sm:$0xff]  }
 0x645   : > { %8248 = vmatprep.mubr.msk.bf16.mxu0 %vm4680_vm0, %v5838_v41  ;;  %v8475_v41 = vld [vmem:[%s9434_s25 + $0xe0] ss:$16 sps:$4 sm:$0xff]  }
 0x646   : > { %6629 = vmatpush1.bf16.msra.mxu1 %v8463_v26 }
 0x647   : > { %v8206_v5 = vpop.f32.mrb[36].mxu1  ;;  %8249 = vmatmul.mubr.msk.bf16.vlgmr.msra.gmra.mrb[48].mxu0 %vm4680_vm0, %v5839_v8  ;;  %6630 = vmatprep.subr.bf16.mxu1 %v8468_v30  ;;  %v8472_v8 = vld [vmem:[%s9434_s25 + $0xc0] ss:$16 sps:$4 sm:$0xff]  }
 0x648   : > { %v5811_v62 = vpop.f32.mrb[37].mxu1 }
 0x649   : > { %v8207_v57 = vpop.f32.mrb[38].mxu1 }
 0x64a   : > { %v5841_v19 = vpack.c.bf16 %v8207_v57, %v8206_v5  ;;  %v5814_v50 = vpop.f32.mrb[39].mxu1  ;;  %6631 = vmatpush1.bf16.msra.mxu1 %v8466_v56  ;;  %v8480_v5 = vld [vmem:[%s9434_s25 + $0xc] ss:$16 sps:$4 sm:$0xff]   ;;  %v8503_v57 = vld [vmem:[%s9436_s16] sm:$0xff]  }
 0x64b   : > { %v5840_v58 = vpack.c.bf16 %v5814_v50, %v5811_v62  ;;  %6632 = vmatprep.subr.bf16.mxu1 %v8471_v51  ;;  %v8502_v62 = vld [vmem:[%s9436_s16 + $0x40] sm:$0xff]   ;;  %v8505_v50 = vld [vmem:[%s9436_s16 + $0x8] sm:$0xff]  }
 0x64c   : > { %7976 = vmatprep.subr.bf16.mxu0 %v8502_v62 }
 0x64d   : > { %8252 = vmatprep.mubr.msk.bf16.mxu0 %vm4680_vm0, %v5840_v58  ;;  %7977 = vmatpush3.bf16.msra.mxu0 %v8503_v57  ;;  %v8506_v58 = vld [vmem:[%s9436_s16 + $0x50] sm:$0xff]   ;;  %v11368_v57 = vld [vmem:[%s762_s23] ss:$0 sm:$0xff]  ;;  %s11918_s23 = sld [smem:[#allocation65_spill]] }
 0x64e   : > { %6633 = vmatpush1.bf16.msra.mxu1 %v8469_v37 }
 0x64f   : > { %8253 = vmatmul.mubr.msk.bf16.gmra.mrb[52].mxu0 %vm4680_vm0, %v5841_v19  ;;  %6634 = vmatprep.subr.bf16.mxu1 %v8474_v18  ;;  %v8504_v19 = vld [vmem:[%s9436_s16 + $0x48] sm:$0xff]  }
 0x650   : > { %7978 = vmatprep.subr.bf16.mxu0 %v8504_v19 }
 0x651   : > { %7979 = vmatpush3.bf16.msra.mxu0 %v8505_v50 }
 0x652   : > { %6635 = vmatpush1.bf16.msra.mxu1 %v8472_v8  ;;  %7980 = vmatprep.subr.bf16.mxu0 %v8506_v58 }
 0x653   : > { %6636 = vmatprep.subr.bf16.mxu1 %v8477_v25  ;;  %s11919_s20 = scalar_lea.vmem %s11918_s23, %s9394_s19  ;;  %s11922_s19 = sld [smem:[#allocation19_spill]] }
 0x656   : > { %6637 = vmatpush1.bf16.msra.mxu1 %v8475_v41 }
 0x657   : > { %6695 = vmatprep.subr.bf16.mxu1 %v8480_v5 }
 0x71a   : > { %v8250_v35 = vpop.f32.mrb[48].mxu0 }
 0x71b   : > { %v6183_v47 = vpop.f32.mrb[49].mxu0  ;;  %v6247_v17 = vadd.f32 %v8250_v35, %v7797_v31  ;;  %v8508_v35 = vld [vmem:[%s9436_s16 + $0x58] sm:$0xff]  }
 0x71c   : > { %v6245_v54 = vadd.f32 %v7797_v31, %v6183_v47  ;;  %v8251_v55 = vpop.f32.mrb[50].mxu0  ;;  %v8509_v47 = vld [vmem:[%s9436_s16 + $0x18] sm:$0xff]  }
 0x71d   : > { %v6186_v9 = vpop.f32.mrb[51].mxu0  ;;  %v6248_v43 = vadd.f32 %v8251_v55, %v7797_v31  ;;  %v11288_v49 = vadd.f32 %v8696_v12, %v6247_v17  ;;  %v8511_v55 = vld [vmem:[%s9436_s16 + $0x20] sm:$0xff]  }
 0x71e   : > { %v11278_v63 = vadd.f32 %v8694_v16, %v6245_v54  ;;  %v6246_v20 = vadd.f32 %v7797_v31, %v6186_v9  ;;  %v8510_v54 = vld [vmem:[%s9436_s16 + $0x60] sm:$0xff]   ;;  %v8512_v9 = vld [vmem:[%s9436_s16 + $0x68] sm:$0xff]  }
 0x71f   : > { %v11290_v27 = vadd.f32 %v8697_v7, %v6248_v43  ;;  %v6290_v21 = vmul.f32 %v11288_v49, %v11288_v49 }
 0x720   : > { %v11280_v33 = vadd.f32 %v8695_v32, %v6246_v20  ;;  %6263 = vadd.xlane.f32.xlu1 %v11278_v63  ;;  %v6288_v59 = vmul.f32 %v11278_v63, %v11278_v63 }
 0x721   : > { %v6291_v11 = vmul.f32 %v11290_v27, %v11290_v27 }
 0x722   : > { %6265 = vadd.xlane.f32.xlu0 %v11280_v33  ;;  %v8254_v60 = vpop.f32.mrb[52].mxu0  ;;  %v6289_v0 = vmul.f32 %v11280_v33, %v11280_v33 }
 0x723   : > { %v6199_v1 = vpop.f32.mrb[53].mxu0  ;;  %v6251_v48 = vadd.f32 %v8254_v60, %v7797_v31 }
 0x724   : > { %6296 = vadd.xlane.f32.xlu1 %v6288_v59  ;;  %v8255_v3 = vpop.f32.mrb[54].mxu0  ;;  %v6249_v39 = vadd.f32 %v7797_v31, %v6199_v1 }
 0x725   : > { %v6202_v34 = vpop.f32.mrb[55].mxu0  ;;  %v6252_v4 = vadd.f32 %v8255_v3, %v7797_v31  ;;  %v11310_v15 = vadd.f32 %v8700_v45, %v6251_v48 }
 0x726   : > { %6298 = vadd.xlane.f32.xlu0 %v6289_v0  ;;  %v6250_v53 = vadd.f32 %v7797_v31, %v6202_v34  ;;  %v11298_v14 = vadd.f32 %v8698_v2, %v6249_v39  ;;  %v8507_v31 = vld [vmem:[%s9436_s16 + $0x10] sm:$0xff]  }
 0x727   : > { %v11312_v6 = vadd.f32 %v8701_v38, %v6252_v4  ;;  %v6294_v42 = vmul.f32 %v11310_v15, %v11310_v15  ;;  %7981 = vmatpush3.bf16.msra.mxu0 %v8507_v31 }
 0x728   : > { %6267 = vadd.xlane.f32.xlu1 %v11288_v49  ;;  %v11300_v46 = vadd.f32 %v8699_v22, %v6250_v53  ;;  %v6292_v61 = vmul.f32 %v11298_v14, %v11298_v14  ;;  %7982 = vmatprep.subr.bf16.mxu0 %v8508_v35 }
 0x729   : > { %v6295_v36 = vmul.f32 %v11312_v6, %v11312_v6 }
 0x72a   : > { %6269 = vadd.xlane.f32.xlu0 %v11290_v27  ;;  %v6293_v28 = vmul.f32 %v11300_v46, %v11300_v46 }
 0x72b   : > { %7983 = vmatpush3.bf16.msra.mxu0 %v8509_v47 }
 0x72c   : > { %6300 = vadd.xlane.f32.xlu1 %v6290_v21  ;;  %7984 = vmatprep.subr.bf16.mxu0 %v8510_v54 }
 0x72e   : > { %6302 = vadd.xlane.f32.xlu0 %v6291_v11 }
 0x72f   : > { %7985 = vmatpush3.bf16.msra.mxu0 %v8511_v55 }
 0x730   : > { %6271 = vadd.xlane.f32.xlu1 %v11298_v14  ;;  %7986 = vmatprep.subr.bf16.mxu0 %v8512_v9 }
 0x732   : > { %6273 = vadd.xlane.f32.xlu0 %v11300_v46 }
 0x734   : > { %6304 = vadd.xlane.f32.xlu1 %v6292_v61 }
 0x736   : > { %6306 = vadd.xlane.f32.xlu0 %v6293_v28 }
 0x738   : > { %6275 = vadd.xlane.f32.xlu1 %v11310_v15 }
 0x73a   : > { %6277 = vadd.xlane.f32.xlu0 %v11312_v6 }
 0x73c   : > { %6308 = vadd.xlane.f32.xlu1 %v6294_v42 }
 0x73e   : > { %6310 = vadd.xlane.f32.xlu0 %v6295_v36 }
 0x7ad   : > { %v6264_v16 = vpop.xlane.xlu1 %6263 }
 0x7ae   : > { %v6280_v20 = vmul.f32 0.0078125, %v6264_v16 }
 0x7af   : > { %v6266_v32 = vpop.xlane.xlu0 %6265 }
 0x7b0   : > { %v6281_v17 = vmul.f32 0.0078125, %v6266_v32  ;;  %v6320_v59 = vmul.f32 %v6280_v20, %v6280_v20  ;;  %v6344_v18 = vsub.f32 %v11278_v63, %v6280_v20  ;;  %v11379_v32 = vld [vmem:[%s765_s8] ss:$0 sm:$0xff] }
 0x7b1   : > { %v6297_v60 = vpop.xlane.xlu1 %6296 }
 0x7b2   : > { %v6312_v1 = vmul.f32 0.0078125, %v6297_v60  ;;  %v6321_v3 = vmul.f32 %v6281_v17, %v6281_v17  ;;  %v6345_v19 = vsub.f32 %v11280_v33, %v6281_v17 }
 0x7b3   : > { %v6299_v43 = vpop.xlane.xlu0 %6298 }
 0x7b4   : > { %v6328_v0 = vsub.f32 %v6312_v1, %v6320_v59  ;;  %v6313_v34 = vmul.f32 0.0078125, %v6299_v43 }
 0x7b5   : > { %v6268_v12 = vpop.xlane.xlu1 %6267 }
 0x7b6   : > { %v6336_v7 = vmax.f32 %v6328_v0, 0.0  ;;  %v6329_v39 = vsub.f32 %v6313_v34, %v6321_v3  ;;  %v11346_v21 = vmul.f32 0.0078125, %v6268_v12 }
 0x7b7   : > { %v6270_v53 = vpop.xlane.xlu0 %6269 }
 0x7b8   : > { %v6352_v11 = vadd.f32 1e-05, %v6336_v7  ;;  %v6337_v2 = vmax.f32 %v6329_v39, 0.0  ;;  %v11348_v22 = vmul.f32 0.0078125, %v6270_v53  ;;  %v6322_v48 = vmul.f32 %v11346_v21, %v11346_v21 }
 0x7b9   : > { %v6301_v10 = vpop.xlane.xlu1 %6300  ;;  %v6346_v3 = vsub.f32 %v11288_v49, %v11346_v21  ;;  %v8483_v21 = vld [vmem:[%s9434_s25 + $0x2c] ss:$16 sps:$4 sm:$0xff]  }
 0x7ba   : > { %8662 = vrsqrt.f32 %v6352_v11  ;;  %v6353_v29 = vadd.f32 1e-05, %v6337_v2  ;;  %v6314_v61 = vmul.f32 0.0078125, %v6301_v10  ;;  %v6323_v28 = vmul.f32 %v11348_v22, %v11348_v22  ;;  %v8478_v2 = vld [vmem:[%s9434_s25 + $0x8] ss:$16 sps:$4 sm:$0xff]  }
 0x7bb   : > { %v6303_v4 = vpop.xlane.xlu0 %6302  ;;  %v6347_v10 = vsub.f32 %v11290_v27, %v11348_v22  ;;  %v8481_v27 = vld [vmem:[%s9434_s25 + $0x28] ss:$16 sps:$4 sm:$0xff]   ;;  %v8486_v22 = vld [vmem:[%s9434_s25 + $0x4c] ss:$16 sps:$4 sm:$0xff]  }
 0x7bc   : > { %8664 = vrsqrt.f32 %v6353_v29  ;;  %v6330_v45 = vsub.f32 %v6314_v61, %v6322_v48  ;;  %v6315_v38 = vmul.f32 0.0078125, %v6303_v4 }
 0x7bd   : > { %v6272_v42 = vpop.xlane.xlu1 %6271 }
 0x7be   : > { %v6338_v36 = vmax.f32 %v6330_v45, 0.0  ;;  %v6331_v40 = vsub.f32 %v6315_v38, %v6323_v28  ;;  %v11354_v13 = vmul.f32 0.0078125, %v6272_v42 }
 0x7bf   : > { %v6274_v52 = vpop.xlane.xlu0 %6273 }
 0x7c0   : > { %v6354_v23 = vadd.f32 1e-05, %v6338_v36  ;;  %v6339_v44 = vmax.f32 %v6331_v40, 0.0  ;;  %v11356_v26 = vmul.f32 0.0078125, %v6274_v52  ;;  %v6324_v51 = vmul.f32 %v11354_v13, %v11354_v13 }
 0x7c1   : > { %v6305_v30 = vpop.xlane.xlu1 %6304  ;;  %v6348_v52 = vsub.f32 %v11298_v14, %v11354_v13  ;;  %v8489_v14 = vld [vmem:[%s9434_s25 + $0x6c] ss:$16 sps:$4 sm:$0xff]  }
 0x7c2   : > { %8666 = vrsqrt.f32 %v6354_v23  ;;  %v6355_v56 = vadd.f32 1e-05, %v6339_v44  ;;  %v6316_v37 = vmul.f32 0.0078125, %v6305_v30  ;;  %v6325_v41 = vmul.f32 %v11356_v26, %v11356_v26 }
 0x7c3   : > { %v6307_v8 = vpop.xlane.xlu0 %6306 }
 0x7c4   : > { %v8663_v25 = vpop.eup %8662  ;;  %8668 = vrsqrt.f32 %v6355_v56  ;;  %v6332_v5 = vsub.f32 %v6316_v37, %v6324_v51  ;;  %v6317_v62 = vmul.f32 0.0078125, %v6307_v8  ;;  %v8484_v56 = vld [vmem:[%s9434_s25 + $0x48] ss:$16 sps:$4 sm:$0xff]   ;;  %v6349_v51 = vsub.f32 %v11300_v46, %v11356_v26 }
 0x7c5   : > { %v6368_v50 = vmul.f32 %v8663_v25, %v6344_v18  ;;  %v6276_v58 = vpop.xlane.xlu1 %6275 }
 0x7c6   : > { %v8665_v63 = vpop.eup %8664  ;;  %v6340_v31 = vmax.f32 %v6332_v5, 0.0  ;;  %v6333_v35 = vsub.f32 %v6317_v62, %v6325_v41  ;;  %v11371_v47 = vmul.f32 0.0078125, %v6276_v58  ;;  %v8487_v41 = vld [vmem:[%s9434_s25 + $0x68] ss:$16 sps:$4 sm:$0xff]   ;;  %v8492_v5 = vld [vmem:[%s9434_s25 + $0x8c] ss:$16 sps:$4 sm:$0xff]  }
 0x7c7   : > { %v6369_v54 = vmul.f32 %v8665_v63, %v6345_v19  ;;  %v6278_v55 = vpop.xlane.xlu0 %6277  ;;  %v6382_v9 = vmul.f32 %v11368_v57, %v6368_v50  ;;  %v8490_v58 = vld [vmem:[%s9434_s25 + $0x88] ss:$16 sps:$4 sm:$0xff]  }
 0x7c8   : > { %v6356_v16 = vadd.f32 1e-05, %v6340_v31  ;;  %v6341_v20 = vmax.f32 %v6333_v35, 0.0  ;;  %v11381_v33 = vmul.f32 0.0078125, %v6278_v55  ;;  %v6326_v1 = vmul.f32 %v11371_v47, %v11371_v47 }
 0x7c9   : > { %v6309_v17 = vpop.xlane.xlu1 %6308  ;;  %v6383_v60 = vmul.f32 %v11368_v57, %v6369_v54  ;;  %v11389_v34 = vadd.f32 %v11379_v32, %v6382_v9  ;;  %v6350_v26 = vsub.f32 %v11310_v15, %v11371_v47  ;;  %v8495_v15 = vld [vmem:[%s9434_s25 + $0xac] ss:$16 sps:$4 sm:$0xff]   ;;  %v8493_v9 = vld [vmem:[%s9434_s25 + $0xa8] ss:$16 sps:$4 sm:$0xff]  }
 0x7ca   : > { %8670 = vrsqrt.f32 %v6356_v16  ;;  %v6357_v59 = vadd.f32 1e-05, %v6341_v20  ;;  %v6318_v43 = vmul.f32 0.0078125, %v6309_v17  ;;  %v6327_v39 = vmul.f32 %v11381_v33, %v11381_v33  ;;  %v8496_v17 = vld [vmem:[%s9434_s25 + $0xc8] ss:$16 sps:$4 sm:$0xff]  }
 0x7cb   : > { %v6311_v0 = vpop.xlane.xlu0 %6310  ;;  %v11392_v12 = vadd.f32 %v11379_v32, %v6383_v60  ;;  %v6351_v63 = vsub.f32 %v11312_v6, %v11381_v33  ;;  %v8498_v6 = vld [vmem:[%s9434_s25 + $0xcc] ss:$16 sps:$4 sm:$0xff]  }
 0x7cc   : > { %v8667_v7 = vpop.eup %8666  ;;  %8672 = vrsqrt.f32 %v6357_v59  ;;  %v6334_v53 = vsub.f32 %v6318_v43, %v6326_v1  ;;  %v6319_v11 = vmul.f32 0.0078125, %v6311_v0  ;;  %v8501_v59 = vld [vmem:[%s9434_s25 + $0xec] ss:$16 sps:$4 sm:$0xff]   ;;  %v8514_v1 = vld [vmem:[%s9436_s16 + $0x70] sm:$0xff]  }
 0x7cd   : > { %v11401_v49 = vpack.c.bf16 %v11392_v12, %v11389_v34  ;;  %v6370_v29 = vmul.f32 %v8667_v7, %v6346_v3  ;;  %v8515_v43 = vld [vmem:[%s9436_s16 + $0x30] sm:$0xff]   ;;  %v8516_v3 = vld [vmem:[%s9436_s16 + $0x78] sm:$0xff]   ;;  %v8518_v7 = vld [vmem:[%s9436_s16 + $0xc0] sm:$0xff]  }
 0x7ce   : > { %v8669_v48 = vpop.eup %8668  ;;  %v6342_v61 = vmax.f32 %v6334_v53, 0.0  ;;  %v6335_v4 = vsub.f32 %v6319_v11, %v6327_v39  ;;  %v8517_v0 = vld [vmem:[%s9436_s16 + $0x38] sm:$0xff]   ;;  %v8519_v39 = vld [vmem:[%s9436_s16 + $0x80] sm:$0xff]   ;;  %v8521_v53 = vld [vmem:[%s9436_s16 + $0x88] sm:$0xff]  }
 0x7cf   : > { %6655 = vmatmul.mubr.bf16.vlgmr.msra.gmra.mrb[40].mxu1 %v11401_v49  ;;  %v6371_v28 = vmul.f32 %v8669_v48, %v6347_v10  ;;  %v6384_v45 = vmul.f32 %v11368_v57, %v6370_v29  ;;  %v8522_v11 = vld [vmem:[%s9436_s16 + $0xd0] sm:$0xff]   ;;  %v8524_v10 = vld [vmem:[%s9436_s16 + $0xd8] sm:$0xff]   ;;  %v8527_v29 = vld [vmem:[%s9436_s16 + $0xa0] sm:$0xff]  }
 0x7d0   : > { %v6358_v38 = vadd.f32 1e-05, %v6342_v61  ;;  %v6343_v42 = vmax.f32 %v6335_v4, 0.0  ;;  %6696 = vmatpush1.bf16.msra.mxu1 %v8478_v2  ;;  %6664 = vmatprep.mubr.bf16.mxu1 %v11909_v24  ;;  %v8523_v2 = vld [vmem:[%s9436_s16 + $0x90] sm:$0xff]   ;;  %v8528_v48 = vld [vmem:[%s9436_s16 + $0xe8] sm:$0xff]  }
 0x7d1   : > { %6697 = vmatprep.subr.bf16.mxu1 %v8483_v21  ;;  %v6385_v36 = vmul.f32 %v11368_v57, %v6371_v28  ;;  %v11413_v23 = vadd.f32 %v11379_v32, %v6384_v45  ;;  %v8526_v21 = vld [vmem:[%s9436_s16 + $0xe0] sm:$0xff]   ;;  %v8529_v61 = vld [vmem:[%s9436_s16 + $0xa8] sm:$0xff]   ;;  %v8530_v4 = vld [vmem:[%s9436_s16 + $0xf0] sm:$0xff]  }
 0x7d2   : > { %8674 = vrsqrt.f32 %v6358_v38  ;;  %v6359_v40 = vadd.f32 1e-05, %v6343_v42  ;;  %v8531_v28 = vld [vmem:[%s9436_s16 + $0xb0] sm:$0xff]   ;;  %v8532_v45 = vld [vmem:[%s9436_s16 + $0xf8] sm:$0xff]   ;;  %v11486_v42 = vld [vmem:[%s9414_s21] sm:$0xf] }
 0x7d3   : > { %v11416_v44 = vadd.f32 %v11379_v32, %v6385_v36  ;;  %v8533_v38 = vld [vmem:[%s9436_s16 + $0xb8] sm:$0xff]  }
 0x7d4   : > { %v8671_v30 = vpop.eup %8670  ;;  %8676 = vrsqrt.f32 %v6359_v40  ;;  %6698 = vmatpush1.bf16.msra.mxu1 %v8481_v27  ;;  %v11914_v27 = vld [vmem:[#allocation25_spill] sm:$0xff] }
 0x7d5   : > { %6699 = vmatprep.subr.bf16.mxu1 %v8486_v22  ;;  %v6405_v37 = vpack.c.bf16 %v11416_v44, %v11413_v23  ;;  %v6372_v13 = vmul.f32 %v8671_v30, %v6348_v52  ;;  %v11915_v22 = vsub.s32 0, %v11914_v27  ;;  %v11916_v40 = vsub.s32 1, %v11914_v27 }
 0x7d6   : > { %v8673_v18 = vpop.eup %8672 }
 0x7d7   : > { %6665 = vmatmul.mubr.bf16.gmra.mrb[44].mxu1 %v6405_v37  ;;  %v6373_v8 = vmul.f32 %v8673_v18, %v6349_v51  ;;  %v6386_v25 = vmul.f32 %v11368_v57, %v6372_v13  ;;  %v6445_v36 = vrot.slane %v11486_v42, %v11915_v22  ;;  %v6449_v52 = vrot.slane %v11486_v42, %v11916_v40 }
 0x7d8   : > { %6700 = vmatpush1.bf16.msra.mxu1 %v8484_v56  ;;  %6674 = vmatprep.mubr.bf16.mxu1 %v11909_v24 }
 0x7d9   : > { %6701 = vmatprep.subr.bf16.mxu1 %v8489_v14  ;;  %v6387_v46 = vmul.f32 %v11368_v57, %v6373_v8  ;;  %v11432_v62 = vadd.f32 %v11379_v32, %v6386_v25 }
 0x7db   : > { %v11435_v19 = vadd.f32 %v11379_v32, %v6387_v46 }
 0x7dc   : > { %v8675_v50 = vpop.eup %8674  ;;  %6702 = vmatpush1.bf16.msra.mxu1 %v8487_v41 }
 0x7dd   : > { %6703 = vmatprep.subr.bf16.mxu1 %v8492_v5  ;;  %v6406_v31 = vpack.c.bf16 %v11435_v19, %v11432_v62  ;;  %v6374_v35 = vmul.f32 %v8675_v50, %v6350_v26 }
 0x7de   : > { %v8677_v47 = vpop.eup %8676 }
 0x7df   : > { %6675 = vmatmul.mubr.bf16.gmra.mrb[48].mxu1 %v6406_v31  ;;  %v6375_v54 = vmul.f32 %v8677_v47, %v6351_v63  ;;  %v6388_v55 = vmul.f32 %v11368_v57, %v6374_v35 }
 0x7e0   : > { %6704 = vmatpush1.bf16.msra.mxu1 %v8490_v58  ;;  %6684 = vmatprep.mubr.bf16.mxu1 %v11909_v24 }
 0x7e1   : > { %6705 = vmatprep.subr.bf16.mxu1 %v8495_v15  ;;  %v6389_v16 = vmul.f32 %v11368_v57, %v6375_v54  ;;  %v11449_v20 = vadd.f32 %v11379_v32, %v6388_v55  ;;  %v8499_v57 = vld [vmem:[%s9434_s25 + $0xe8] ss:$16 sps:$4 sm:$0xff]  }
 0x7e3   : > { %v11452_v33 = vadd.f32 %v11379_v32, %v6389_v16  ;;  %v8513_v32 = vld [vmem:[%s9436_s16 + $0x28] sm:$0xff]  }
 0x7e4   : > { %6706 = vmatpush1.bf16.msra.mxu1 %v8493_v9  ;;  %7987 = vmatpush3.bf16.msra.mxu0 %v8513_v32 }
 0x7e5   : > { %6707 = vmatprep.subr.bf16.mxu1 %v8498_v6  ;;  %v6407_v60 = vpack.c.bf16 %v11452_v33, %v11449_v20  ;;  %7988 = vmatprep.subr.bf16.mxu0 %v8514_v1 }
 0x7e7   : > { %6685 = vmatmul.mubr.bf16.gmra.mrb[52].mxu1 %v6407_v60 }
 0x7e8   : > { %6708 = vmatpush1.bf16.msra.mxu1 %v8496_v17  ;;  %6727 = vmatprep.mubr.bf16.mxu1 %v11909_v24 }
 0x7e9   : > { %6709 = vmatprep.subr.bf16.mxu1 %v8501_v59  ;;  %7989 = vmatpush3.bf16.msra.mxu0 %v8515_v43 }
 0x7ea   : > { %7990 = vmatprep.subr.bf16.mxu0 %v8516_v3 }
 0x7ec   : > { %6710 = vmatpush1.bf16.msra.mxu1 %v8499_v57 }
 0x7ed   : > { %7991 = vmatpush3.bf16.msra.mxu0 %v8517_v0  ;;  %8016 = vmatprep.subr.bf16.mxu1 %v8518_v7 }
 0x7ef   : > { %6728 = vmatmul.mubr.bf16.vlgmr.msra.gmra.mrb[56].mxu1 %v11401_v49  ;;  %v8525_v49 = vld [vmem:[%s9436_s16 + $0x98] sm:$0xff]  }
 0x7f0   : > { %6737 = vmatprep.mubr.bf16.mxu1 %v11909_v24  ;;  %8017 = vmatpush3.bf16.msra.mxu1 %v8519_v39 }
 0x7f7   : > { %6738 = vmatmul.mubr.bf16.gmra.mrb[60].mxu1 %v6405_v37 }
 0x7f8   : > { %6747 = vmatprep.mubr.bf16.mxu1 %v11909_v24 }
 0x7ff   : > { %6748 = vmatmul.mubr.bf16.gmra.mrb[64].mxu1 %v6406_v31 }
 0x800   : > { %6757 = vmatprep.mubr.bf16.mxu1 %v11909_v24  ;;  %v8520_v24 = vld [vmem:[%s9436_s16 + $0xc8] sm:$0xff]   ;;  %s7391_s16 = sshll.u32 %s9438_s0, 4  ;;  %s11627_s16 = int_to_ptr.vmem [resolvable:$true] %s7391_s16 }
 0x801   : > { %8018 = vmatprep.subr.bf16.mxu1 %v8520_v24  ;;  %s8878_s22 = scalar_lea.vmem %s11627_s16, 1024  ;;  %p8885_p2 = scmp.lt.s32.totalorder %s11627_s16, %s8883_s24 }
 0x802   : > { %8019 = vmatpush3.bf16.msra.mxu1 %v8521_v53  ;;  %p8879_p7 = scmp.ne.s32.totalorder %s11627_s16, %s8878_s22  ;;  %p8886_p6 = scmp.lt.s32.totalorder %s8884_s10, %s8878_s22 }
 0x803   : > { %8020 = vmatprep.subr.bf16.mxu1 %v8522_v11 }
 0x804   : > { %p8887_p8 = por %p8886_p6, %p8885_p2 }
 0x806   : > { %8021 = vmatpush3.bf16.msra.mxu1 %v8523_v2 }
 0x807   : > { %6758 = vmatmul.mubr.bf16.gmra.mrb[68].mxu1 %v6407_v60  ;;  %8022 = vmatprep.subr.bf16.mxu1 %v8524_v10 }
 0x80a   : > { %8023 = vmatpush3.bf16.msra.mxu1 %v8525_v49 }
 0x80b   : > { %8024 = vmatprep.subr.bf16.mxu1 %v8526_v21 }
 0x80e   : > { %8025 = vmatpush3.bf16.msra.mxu1 %v8527_v29 }
 0x80f   : > { %8026 = vmatprep.subr.bf16.mxu1 %v8528_v48 }
 0x812   : > { %8027 = vmatpush3.bf16.msra.mxu1 %v8529_v61 }
 0x813   : > { %8028 = vmatprep.subr.bf16.mxu1 %v8530_v4 }
 0x816   : > { %8029 = vmatpush3.bf16.msra.mxu1 %v8531_v28  ;;  %v6456_v28 = vsub.s32 3, %v11914_v27 }
 0x817   : > { %8030 = vmatprep.subr.bf16.mxu1 %v8532_v45 }
 0x81a   : > { %8031 = vmatpush3.bf16.msra.mxu1 %v8533_v38 }
 0x8a2   : > { %v6656_v30 = vpop.f32.mrb[40].mxu1 }
 0x8a3   : > { %v6657_v56 = vadd.f32 %v6656_v30, %v6445_v36  ;;  %v6658_v51 = vpop.f32.mrb[41].mxu1 }
 0x8a4   : > { %v6659_v37 = vadd.f32 %v6658_v51, %v6449_v52  ;;  %v6660_v14 = vpop.f32.mrb[42].mxu1 }
 0x8a5   : > { %v6661_v13 = vadd.f32 %v6660_v14, %v6445_v36  ;;  %v6662_v18 = vpop.f32.mrb[43].mxu1  ;;  %v6768_v25 = vmax.f32 %v6657_v56, 0.0  ;;  %v11917_v56 = vsub.s32 2, %v11914_v27 }
 0x8a6   : > { %v6663_v8 = vadd.f32 %v6662_v18, %v6449_v52  ;;  %v6769_v5 = vmax.f32 %v6659_v37, 0.0 }
 0x8a7   : > { %v6772_v41 = vmax.f32 %v6661_v13, 0.0  ;;  %v6453_v51 = vrot.slane %v11486_v42, %v11917_v56  ;;  %v6457_v13 = vrot.slane %v11486_v42, %v6456_v28 }
 0x8a8   : > { %v6773_v46 = vmax.f32 %v6663_v8, 0.0 }
 0x8a9   : > { %v6800_v26 = vpack.c.bf16 %v6772_v41, %v6768_v25 }
 0x8aa   : > { %v6801_v50 = vpack.c.bf16 %v6773_v46, %v6769_v5  ;;  %v6666_v58 = vpop.f32.mrb[44].mxu1 }
 0x8ab   : > { %v6667_v63 = vadd.f32 %v6666_v58, %v6445_v36  ;;  %v6668_v31 = vpop.f32.mrb[45].mxu1 }
 0x8ac   : > { %v6669_v15 = vadd.f32 %v6668_v31, %v6449_v52  ;;  %v6670_v35 = vpop.f32.mrb[46].mxu1  ;;  %7111 = vmatprep.mubr.bf16.mxu0 %v6801_v50 }
 0x8ad   : > { %v6671_v47 = vadd.f32 %v6670_v35, %v6445_v36  ;;  %v6672_v54 = vpop.f32.mrb[47].mxu1  ;;  %7112 = vmatmul.mubr.bf16.vlgmr.msra.gmra.mrb[56].mxu0 %v6800_v26  ;;  %v6776_v9 = vmax.f32 %v6667_v63, 0.0 }
 0x8ae   : > { %v6673_v55 = vadd.f32 %v6672_v54, %v6449_v52  ;;  %v6777_v16 = vmax.f32 %v6669_v15, 0.0 }
 0x8af   : > { %v6780_v6 = vmax.f32 %v6671_v47, 0.0 }
 0x8b0   : > { %v6781_v17 = vmax.f32 %v6673_v55, 0.0 }
 0x8b1   : > { %v6804_v60 = vpack.c.bf16 %v6780_v6, %v6776_v9 }
 0x8b2   : > { %v6805_v59 = vpack.c.bf16 %v6781_v17, %v6777_v16  ;;  %v6676_v57 = vpop.f32.mrb[48].mxu1 }
 0x8b3   : > { %v6677_v32 = vadd.f32 %v6676_v57, %v6445_v36  ;;  %v6678_v1 = vpop.f32.mrb[49].mxu1 }
 0x8b4   : > { %v6679_v43 = vadd.f32 %v6678_v1, %v6449_v52  ;;  %v6680_v3 = vpop.f32.mrb[50].mxu1  ;;  %7119 = vmatprep.mubr.bf16.mxu0 %v6805_v59 }
 0x8b5   : > { %v6681_v0 = vadd.f32 %v6680_v3, %v6445_v36  ;;  %v6682_v7 = vpop.f32.mrb[51].mxu1  ;;  %7120 = vmatmul.mubr.bf16.gmra.mrb[60].mxu0 %v6804_v60  ;;  %v6784_v24 = vmax.f32 %v6677_v32, 0.0 }
 0x8b6   : > { %v6683_v39 = vadd.f32 %v6682_v7, %v6449_v52  ;;  %v6785_v11 = vmax.f32 %v6679_v43, 0.0 }
 0x8b7   : > { %v6788_v53 = vmax.f32 %v6681_v0, 0.0 }
 0x8b8   : > { %v6789_v2 = vmax.f32 %v6683_v39, 0.0 }
 0x8b9   : > { %v6808_v10 = vpack.c.bf16 %v6788_v53, %v6784_v24 }
 0x8ba   : > { %v6809_v49 = vpack.c.bf16 %v6789_v2, %v6785_v11  ;;  %v6686_v21 = vpop.f32.mrb[52].mxu1 }
 0x8bb   : > { %v6687_v29 = vadd.f32 %v6686_v21, %v6445_v36  ;;  %v6688_v48 = vpop.f32.mrb[53].mxu1 }
 0x8bc   : > { %v6689_v61 = vadd.f32 %v6688_v48, %v6449_v52  ;;  %v6690_v4 = vpop.f32.mrb[54].mxu1  ;;  %7127 = vmatprep.mubr.bf16.mxu0 %v6809_v49 }
 0x8bd   : > { %v6691_v45 = vadd.f32 %v6690_v4, %v6445_v36  ;;  %v6692_v38 = vpop.f32.mrb[55].mxu1  ;;  %7128 = vmatmul.mubr.bf16.gmra.mrb[64].mxu0 %v6808_v10  ;;  %v6792_v40 = vmax.f32 %v6687_v29, 0.0 }
 0x8be   : > { %v6693_v22 = vadd.f32 %v6692_v38, %v6449_v52  ;;  %v6793_v37 = vmax.f32 %v6689_v61, 0.0 }
 0x8bf   : > { %v6796_v30 = vmax.f32 %v6691_v45, 0.0 }
 0x8c0   : > { %v6797_v14 = vmax.f32 %v6693_v22, 0.0 }
 0x8c1   : > { %v6812_v18 = vpack.c.bf16 %v6796_v30, %v6792_v40 }
 0x8c2   : > { %v6813_v8 = vpack.c.bf16 %v6797_v14, %v6793_v37  ;;  %v6729_v25 = vpop.f32.mrb[56].mxu1 }
 0x8c3   : > { %v6730_v41 = vadd.f32 %v6729_v25, %v6453_v51  ;;  %v6731_v5 = vpop.f32.mrb[57].mxu1 }
 0x8c4   : > { %v6732_v46 = vadd.f32 %v6731_v5, %v6457_v13  ;;  %v6733_v36 = vpop.f32.mrb[58].mxu1  ;;  %7135 = vmatprep.mubr.bf16.mxu0 %v6813_v8 }
 0x8c5   : > { %v6734_v26 = vadd.f32 %v6733_v36, %v6453_v51  ;;  %v6735_v52 = vpop.f32.mrb[59].mxu1  ;;  %7136 = vmatmul.mubr.bf16.gmra.mrb[68].mxu0 %v6812_v18  ;;  %v6770_v58 = vmax.f32 %v6730_v41, 0.0 }
 0x8c6   : > { %v6736_v50 = vadd.f32 %v6735_v52, %v6457_v13  ;;  %v6771_v63 = vmax.f32 %v6732_v46, 0.0 }
 0x8c7   : > { %v6774_v27 = vmax.f32 %v6734_v26, 0.0 }
 0x8c8   : > { %v6775_v31 = vmax.f32 %v6736_v50, 0.0 }
 0x8c9   : > { %v6802_v15 = vpack.c.bf16 %v6774_v27, %v6770_v58 }
 0x8ca   : > { %v6803_v35 = vpack.c.bf16 %v6775_v31, %v6771_v63  ;;  %v6739_v47 = vpop.f32.mrb[60].mxu1 }
 0x8cb   : > { %v6740_v42 = vadd.f32 %v6739_v47, %v6453_v51  ;;  %v6741_v54 = vpop.f32.mrb[61].mxu1 }
 0x8cc   : > { %v6742_v55 = vadd.f32 %v6741_v54, %v6457_v13  ;;  %v6743_v9 = vpop.f32.mrb[62].mxu1  ;;  %7176 = vmatprep.mubr.bf16.mxu1 %v6803_v35 }
 0x8cd   : > { %v6744_v6 = vadd.f32 %v6743_v9, %v6453_v51  ;;  %v6745_v16 = vpop.f32.mrb[63].mxu1  ;;  %7177 = vmatmul.mubr.bf16.vlgmr.msra.gmra.mrb[72].mxu1 %v6802_v15  ;;  %v6778_v60 = vmax.f32 %v6740_v42, 0.0 }
 0x8ce   : > { %v6746_v17 = vadd.f32 %v6745_v16, %v6457_v13  ;;  %v6779_v57 = vmax.f32 %v6742_v55, 0.0 }
 0x8cf   : > { %v6782_v59 = vmax.f32 %v6744_v6, 0.0 }
 0x8d0   : > { %v6783_v32 = vmax.f32 %v6746_v17, 0.0 }
 0x8d1   : > { %v6806_v1 = vpack.c.bf16 %v6782_v59, %v6778_v60 }
 0x8d2   : > { %v6807_v43 = vpack.c.bf16 %v6783_v32, %v6779_v57  ;;  %v6749_v3 = vpop.f32.mrb[64].mxu1  ;;  %v7832_v57 = vld [vmem:[%s11919_s20] ss:$0 sm:$0xff] }
 0x8d3   : > { %v6750_v0 = vadd.f32 %v6749_v3, %v6453_v51  ;;  %v6751_v7 = vpop.f32.mrb[65].mxu1 }
 0x8d4   : > { %v6752_v39 = vadd.f32 %v6751_v7, %v6457_v13  ;;  %v6753_v24 = vpop.f32.mrb[66].mxu1  ;;  %7184 = vmatprep.mubr.bf16.mxu1 %v6807_v43 }
 0x8d5   : > { %v6754_v53 = vadd.f32 %v6753_v24, %v6453_v51  ;;  %v6755_v11 = vpop.f32.mrb[67].mxu1  ;;  %7185 = vmatmul.mubr.bf16.gmra.mrb[76].mxu1 %v6806_v1  ;;  %v6786_v10 = vmax.f32 %v6750_v0, 0.0 }
 0x8d6   : > { %v6756_v2 = vadd.f32 %v6755_v11, %v6457_v13  ;;  %v6787_v21 = vmax.f32 %v6752_v39, 0.0 }
 0x8d7   : > { %v6790_v49 = vmax.f32 %v6754_v53, 0.0 }
 0x8d8   : > { %v6791_v29 = vmax.f32 %v6756_v2, 0.0 }
 0x8d9   : > { %v6810_v48 = vpack.c.bf16 %v6790_v49, %v6786_v10 }
 0x8da   : > { %v6811_v61 = vpack.c.bf16 %v6791_v29, %v6787_v21  ;;  %v6759_v4 = vpop.f32.mrb[68].mxu1 }
 0x8db   : > { %v6760_v28 = vadd.f32 %v6759_v4, %v6453_v51  ;;  %v6761_v45 = vpop.f32.mrb[69].mxu1 }
 0x8dc   : > { %v6762_v38 = vadd.f32 %v6761_v45, %v6457_v13  ;;  %v6763_v22 = vpop.f32.mrb[70].mxu1  ;;  %7192 = vmatprep.mubr.bf16.mxu1 %v6811_v61 }
 0x8dd   : > { %v6764_v40 = vadd.f32 %v6763_v22, %v6453_v51  ;;  %v6765_v30 = vpop.f32.mrb[71].mxu1  ;;  %7193 = vmatmul.mubr.bf16.gmra.mrb[80].mxu1 %v6810_v48  ;;  %v6794_v37 = vmax.f32 %v6760_v28, 0.0 }
 0x8de   : > { %v6766_v56 = vadd.f32 %v6765_v30, %v6457_v13  ;;  %v6795_v18 = vmax.f32 %v6762_v38, 0.0 }
 0x8df   : > { %v6798_v14 = vmax.f32 %v6764_v40, 0.0 }
 0x8e0   : > { %v6799_v8 = vmax.f32 %v6766_v56, 0.0 }
 0x8e1   : > { %v6814_v25 = vpack.c.bf16 %v6798_v14, %v6794_v37 }
 0x8e2   : > { %v6815_v41 = vpack.c.bf16 %v6799_v8, %v6795_v18 }
 0x8e4   : > { %7200 = vmatprep.mubr.bf16.mxu1 %v6815_v41 }
 0x8e5   : > { %7201 = vmatmul.mubr.bf16.gmra.mrb[84].mxu1 %v6814_v25 }
 0x980   : > { %v7992_v5 = vpop.f32.mrb[56].mxu0 }
 0x981   : > { %v7993_v46 = vpop.f32.mrb[57].mxu0 }
 0x982   : > { %v7994_v36 = vadd.f32 %v7993_v46, %v7992_v5  ;;  %v7995_v26 = vpop.f32.mrb[58].mxu0 }
 0x983   : > { %v7996_v52 = vpop.f32.mrb[59].mxu0 }
 0x984   : > { %v7997_v50 = vadd.f32 %v7996_v52, %v7995_v26  ;;  %v7114_v43 = vadd.f32 %v7994_v36, %v7832_v57 }
 0x986   : > { %v7117_v39 = vadd.f32 %v7997_v50, %v7832_v57 }
 0x988   : > { %v7998_v58 = vpop.f32.mrb[60].mxu0 }
 0x989   : > { %v7999_v27 = vpop.f32.mrb[61].mxu0 }
 0x98a   : > { %v8000_v51 = vadd.f32 %v7999_v27, %v7998_v58  ;;  %v8001_v63 = vpop.f32.mrb[62].mxu0 }
 0x98b   : > { %v8002_v13 = vpop.f32.mrb[63].mxu0 }
 0x98c   : > { %v8003_v31 = vadd.f32 %v8002_v13, %v8001_v63  ;;  %v7122_v29 = vadd.f32 %v8000_v51, %v7832_v57 }
 0x98e   : > { %v7125_v45 = vadd.f32 %v8003_v31, %v7832_v57 }
 0x990   : > { %v8004_v15 = vpop.f32.mrb[64].mxu0 }
 0x991   : > { %v8005_v35 = vpop.f32.mrb[65].mxu0 }
 0x992   : > { %v8006_v47 = vadd.f32 %v8005_v35, %v8004_v15  ;;  %v8007_v42 = vpop.f32.mrb[66].mxu0 }
 0x993   : > { %v8008_v54 = vpop.f32.mrb[67].mxu0 }
 0x994   : > { %v8009_v55 = vadd.f32 %v8008_v54, %v8007_v42  ;;  %v7130_v14 = vadd.f32 %v8006_v47, %v7832_v57 }
 0x996   : > { %v7133_v5 = vadd.f32 %v8009_v55, %v7832_v57 }
 0x998   : > { %v8010_v9 = vpop.f32.mrb[68].mxu0 }
 0x999   : > { %v8011_v6 = vpop.f32.mrb[69].mxu0 }
 0x99a   : > { %v8012_v16 = vadd.f32 %v8011_v6, %v8010_v9  ;;  %v8013_v17 = vpop.f32.mrb[70].mxu0 }
 0x99b   : > { %v8014_v60 = vpop.f32.mrb[71].mxu0 }
 0x99c   : > { %v8015_v59 = vadd.f32 %v8014_v60, %v8013_v17  ;;  %v7138_v27 = vadd.f32 %v8012_v16, %v7832_v57 }
 0x99e   : > { %v7141_v15 = vadd.f32 %v8015_v59, %v7832_v57 }
 0x9a0   : > { %v8032_v32 = vpop.f32.mrb[72].mxu1 }
 0x9a1   : > { %v8033_v1 = vpop.f32.mrb[73].mxu1 }
 0x9a2   : > { %v8034_v3 = vadd.f32 %v8033_v1, %v8032_v32  ;;  %v8035_v0 = vpop.f32.mrb[74].mxu1 }
 0x9a3   : > { %v8036_v7 = vpop.f32.mrb[75].mxu1 }
 0x9a4   : > { %v7179_v24 = vadd.f32 %v8034_v3, %v7114_v43  ;;  %v8037_v53 = vadd.f32 %v8036_v7, %v8035_v0 }
 0x9a6   : > { %v7182_v11 = vadd.f32 %v8037_v53, %v7117_v39  ;;  %v11505_v2 = vadd.f32 %v7179_v24, %v11389_v34 }
 0x9a8   : > { %v8038_v10 = vpop.f32.mrb[76].mxu1  ;;  %7219 = vadd.xlane.f32.xlu1 %v11505_v2  ;;  %v11509_v49 = vadd.f32 %v7182_v11, %v11392_v12  ;;  %v7243_v4 = vmul.f32 %v11505_v2, %v11505_v2 }
 0x9a9   : > { %v8039_v21 = vpop.f32.mrb[77].mxu1 }
 0x9aa   : > { %v8040_v48 = vadd.f32 %v8039_v21, %v8038_v10  ;;  %v8041_v61 = vpop.f32.mrb[78].mxu1  ;;  %7221 = vadd.xlane.f32.xlu0 %v11509_v49  ;;  %v7244_v22 = vmul.f32 %v11509_v49, %v11509_v49 }
 0x9ab   : > { %v8042_v28 = vpop.f32.mrb[79].mxu1 }
 0x9ac   : > { %v7187_v38 = vadd.f32 %v8040_v48, %v7122_v29  ;;  %v8043_v34 = vadd.f32 %v8042_v28, %v8041_v61  ;;  %7251 = vadd.xlane.f32.xlu1 %v7243_v4 }
 0x9ae   : > { %v7190_v40 = vadd.f32 %v8043_v34, %v7125_v45  ;;  %7253 = vadd.xlane.f32.xlu0 %v7244_v22  ;;  %v11517_v12 = vadd.f32 %v7187_v38, %v11413_v23 }
 0x9b0   : > { %v8044_v30 = vpop.f32.mrb[80].mxu1  ;;  %7223 = vadd.xlane.f32.xlu1 %v11517_v12  ;;  %v11521_v56 = vadd.f32 %v7190_v40, %v11416_v44  ;;  %v7245_v25 = vmul.f32 %v11517_v12, %v11517_v12 }
 0x9b1   : > { %v8045_v37 = vpop.f32.mrb[81].mxu1 }
 0x9b2   : > { %v8046_v18 = vadd.f32 %v8045_v37, %v8044_v30  ;;  %v8047_v8 = vpop.f32.mrb[82].mxu1  ;;  %7225 = vadd.xlane.f32.xlu0 %v11521_v56  ;;  %v7246_v36 = vmul.f32 %v11521_v56, %v11521_v56 }
 0x9b3   : > { %v8048_v41 = vpop.f32.mrb[83].mxu1 }
 0x9b4   : > { %v7195_v46 = vadd.f32 %v8046_v18, %v7130_v14  ;;  %v8049_v23 = vadd.f32 %v8048_v41, %v8047_v8  ;;  %7255 = vadd.xlane.f32.xlu1 %v7245_v25 }
 0x9b6   : > { %v7198_v26 = vadd.f32 %v8049_v23, %v7133_v5  ;;  %7257 = vadd.xlane.f32.xlu0 %v7246_v36  ;;  %v11529_v44 = vadd.f32 %v7195_v46, %v11432_v62 }
 0x9b8   : > { %v8050_v52 = vpop.f32.mrb[84].mxu1  ;;  %7227 = vadd.xlane.f32.xlu1 %v11529_v44  ;;  %v11533_v50 = vadd.f32 %v7198_v26, %v11435_v19  ;;  %v7247_v13 = vmul.f32 %v11529_v44, %v11529_v44 }
 0x9b9   : > { %v8051_v58 = vpop.f32.mrb[85].mxu1 }
 0x9ba   : > { %v8052_v51 = vadd.f32 %v8051_v58, %v8050_v52  ;;  %v8053_v63 = vpop.f32.mrb[86].mxu1  ;;  %7229 = vadd.xlane.f32.xlu0 %v11533_v50  ;;  %v7248_v47 = vmul.f32 %v11533_v50, %v11533_v50  ;;  %v11572_v52 = vld [vmem:[%s768_s5] ss:$0 sm:$0xff]  ;;  %s11923_s5 = sld [smem:[#allocation21_spill]] }
 0x9bb   : > { %v8054_v31 = vpop.f32.mrb[87].mxu1 }
 0x9bc   : > { %v7203_v35 = vadd.f32 %v8052_v51, %v7138_v27  ;;  %v8055_v62 = vadd.f32 %v8054_v31, %v8053_v63  ;;  %7259 = vadd.xlane.f32.xlu1 %v7247_v13 }
 0x9be   : > { %v7206_v42 = vadd.f32 %v8055_v62, %v7141_v15  ;;  %7261 = vadd.xlane.f32.xlu0 %v7248_v47  ;;  %v11541_v19 = vadd.f32 %v7203_v35, %v11449_v20 }
 0x9c0   : > { %7231 = vadd.xlane.f32.xlu1 %v11541_v19  ;;  %v11545_v54 = vadd.f32 %v7206_v42, %v11452_v33  ;;  %v7249_v55 = vmul.f32 %v11541_v19, %v11541_v19  ;;  %p11925_p0 = scmp.ne.s32.totalorder %s11923_s5, 0 }
 0x9c2   : > { %7233 = vadd.xlane.f32.xlu0 %v11545_v54  ;;  %v7250_v9 = vmul.f32 %v11545_v54, %v11545_v54  ;;  %p8880_p4 = pnand %p8879_p7, %p11925_p0 }
 0x9c4   : > { %7263 = vadd.xlane.f32.xlu1 %v7249_v55  ;;  %p8881_p5 = pneg %p8880_p4 }
 0x9c6   : > { %7265 = vadd.xlane.f32.xlu0 %v7250_v9  ;;  %p8888_p11 = pnand %p8887_p8, %p8881_p5 }
 0xa35   : > { %v7220_v6 = vpop.xlane.xlu1 %7219 }
 0xa36   : > { %v7235_v16 = vmul.f32 0.0078125, %v7220_v6 }
 0xa37   : > { %v7222_v17 = vpop.xlane.xlu0 %7221 }
 0xa38   : > { %v7236_v20 = vmul.f32 0.0078125, %v7222_v17  ;;  %v7275_v59 = vmul.f32 %v7235_v16, %v7235_v16  ;;  %v7299_v23 = vsub.f32 %v11505_v2, %v7235_v16  ;;  %v11582_v2 = vld [vmem:[%s771_s12] ss:$0 sm:$0xff]  ;;  %s7875_s12 = sshll.u32 %s11922_s19, 10 }
 0xa39   : > { %v7252_v60 = vpop.xlane.xlu1 %7251  ;;  %s11625_s17 = scalar_lea.hbm %s11924_s27, %s7875_s12 }
 0xa3a   : > { %v7267_v57 = vmul.f32 0.0078125, %v7252_v60  ;;  %v7276_v33 = vmul.f32 %v7236_v20, %v7236_v20  ;;  %v7300_v63 = vsub.f32 %v11509_v49, %v7236_v20 }
 0xa3b   : > { %v7254_v32 = vpop.xlane.xlu0 %7253 }
 0xa3c   : > { %v7283_v1 = vsub.f32 %v7267_v57, %v7275_v59  ;;  %v7268_v43 = vmul.f32 0.0078125, %v7254_v32 }
 0xa3d   : > { %v7224_v3 = vpop.xlane.xlu1 %7223 }
 0xa3e   : > { %v7291_v0 = vmax.f32 %v7283_v1, 0.0  ;;  %v7284_v7 = vsub.f32 %v7268_v43, %v7276_v33  ;;  %v11552_v39 = vmul.f32 0.0078125, %v7224_v3 }
 0xa3f   : > { %v7226_v24 = vpop.xlane.xlu0 %7225 }
 0xa40   : > { %v7307_v53 = vadd.f32 1e-05, %v7291_v0  ;;  %v7292_v11 = vmax.f32 %v7284_v7, 0.0  ;;  %v11554_v10 = vmul.f32 0.0078125, %v7226_v24  ;;  %v7277_v48 = vmul.f32 %v11552_v39, %v11552_v39 }
 0xa41   : > { %v7256_v21 = vpop.xlane.xlu1 %7255  ;;  %v7301_v1 = vsub.f32 %v11517_v12, %v11552_v39 }
 0xa42   : > { %8678 = vrsqrt.f32 %v7307_v53  ;;  %v7308_v29 = vadd.f32 1e-05, %v7292_v11  ;;  %v7269_v61 = vmul.f32 0.0078125, %v7256_v21  ;;  %v7278_v28 = vmul.f32 %v11554_v10, %v11554_v10 }
 0xa43   : > { %v7258_v4 = vpop.xlane.xlu0 %7257  ;;  %v7302_v53 = vsub.f32 %v11521_v56, %v11554_v10 }
 0xa44   : > { %8680 = vrsqrt.f32 %v7308_v29  ;;  %v7285_v45 = vsub.f32 %v7269_v61, %v7277_v48  ;;  %v7270_v38 = vmul.f32 0.0078125, %v7258_v4 }
 0xa45   : > { %v7228_v34 = vpop.xlane.xlu1 %7227 }
 0xa46   : > { %v7293_v22 = vmax.f32 %v7285_v45, 0.0  ;;  %v7286_v40 = vsub.f32 %v7270_v38, %v7278_v28  ;;  %v11560_v30 = vmul.f32 0.0078125, %v7228_v34 }
 0xa47   : > { %v7230_v37 = vpop.xlane.xlu0 %7229 }
 0xa48   : > { %v7309_v14 = vadd.f32 1e-05, %v7293_v22  ;;  %v7294_v18 = vmax.f32 %v7286_v40, 0.0  ;;  %v11562_v8 = vmul.f32 0.0078125, %v7230_v37  ;;  %v7279_v5 = vmul.f32 %v11560_v30, %v11560_v30 }
 0xa49   : > { %v7260_v25 = vpop.xlane.xlu1 %7259  ;;  %v7303_v10 = vsub.f32 %v11529_v44, %v11560_v30 }
 0xa4a   : > { %8682 = vrsqrt.f32 %v7309_v14  ;;  %v7310_v41 = vadd.f32 1e-05, %v7294_v18  ;;  %v7271_v46 = vmul.f32 0.0078125, %v7260_v25  ;;  %v7280_v58 = vmul.f32 %v11562_v8, %v11562_v8 }
 0xa4b   : > { %v7262_v36 = vpop.xlane.xlu0 %7261  ;;  %v7304_v22 = vsub.f32 %v11533_v50, %v11562_v8 }
 0xa4c   : > { %v8679_v26 = vpop.eup %8678  ;;  %8684 = vrsqrt.f32 %v7310_v41  ;;  %v7287_v27 = vsub.f32 %v7271_v46, %v7279_v5  ;;  %v7272_v51 = vmul.f32 0.0078125, %v7262_v36 }
 0xa4d   : > { %v7323_v13 = vmul.f32 %v8679_v26, %v7299_v23  ;;  %v7232_v31 = vpop.xlane.xlu1 %7231 }
 0xa4e   : > { %v8681_v15 = vpop.eup %8680  ;;  %v7295_v35 = vmax.f32 %v7287_v27, 0.0  ;;  %v7288_v62 = vsub.f32 %v7272_v51, %v7280_v58  ;;  %v11584_v47 = vmul.f32 0.0078125, %v7232_v31 }
 0xa4f   : > { %v7337_v42 = vmul.f32 %v11572_v52, %v7323_v13  ;;  %v7324_v55 = vmul.f32 %v8681_v15, %v7300_v63  ;;  %v7234_v9 = vpop.xlane.xlu0 %7233 }
 0xa50   : > { %v7311_v6 = vadd.f32 1e-05, %v7295_v35  ;;  %v7296_v49 = vmax.f32 %v7288_v62, 0.0  ;;  %v7242_v20 = vmul.f32 0.0078125, %v7234_v9  ;;  %v7281_v57 = vmul.f32 %v11584_v47, %v11584_v47 }
 0xa51   : > { %v7351_v16 = vadd.f32 %v11582_v2, %v7337_v42  ;;  %v7338_v17 = vmul.f32 %v11572_v52, %v7324_v55  ;;  %v7264_v60 = vpop.xlane.xlu1 %7263  ;;  %v7305_v30 = vsub.f32 %v11541_v19, %v11584_v47 }
 0xa52   : > { %8686 = vrsqrt.f32 %v7311_v6  ;;  %v7312_v59 = vadd.f32 1e-05, %v7296_v49  ;;  %v7273_v32 = vmul.f32 0.0078125, %v7264_v60  ;;  %v7282_v0 = vmul.f32 %v7242_v20, %v7242_v20 }
 0xa53   : > { %7359 = vst [vmem:[#allocation2] sm:$0xff] %v7351_v16  ;;  %7367 = vst [vmem:[%s9438_s0] sm:$0xff] %v7351_v16  ;;  %v7352_v33 = vadd.f32 %v11582_v2, %v7338_v17  ;;  %v7266_v43 = vpop.xlane.xlu0 %7265  ;;  %v7306_v8 = vsub.f32 %v11545_v54, %v7242_v20 }
 0xa54   : > { %v8683_v3 = vpop.eup %8682  ;;  %8688 = vrsqrt.f32 %v7312_v59  ;;  %v7289_v7 = vsub.f32 %v7273_v32, %v7281_v57  ;;  %v7274_v24 = vmul.f32 0.0078125, %v7266_v43 }
 0xa55   : > { %7360 = vst [vmem:[#allocation2 + $0x8] sm:$0xff] %v7352_v33  ;;  %7368 = vst [vmem:[%s9438_s0 + $0x8] sm:$0xff] %v7352_v33  ;;  %v7325_v11 = vmul.f32 %v8683_v3, %v7301_v1 }
 0xa56   : > { %v8685_v21 = vpop.eup %8684  ;;  %v7297_v29 = vmax.f32 %v7289_v7, 0.0  ;;  %v7290_v48 = vsub.f32 %v7274_v24, %v7282_v0 }
 0xa57   : > { %v7339_v61 = vmul.f32 %v11572_v52, %v7325_v11  ;;  %v7326_v12 = vmul.f32 %v8685_v21, %v7302_v53 }
 0xa58   : > { %v7313_v39 = vadd.f32 1e-05, %v7297_v29  ;;  %v7298_v4 = vmax.f32 %v7290_v48, 0.0 }
 0xa59   : > { %v7353_v28 = vadd.f32 %v11582_v2, %v7339_v61  ;;  %v7340_v45 = vmul.f32 %v11572_v52, %v7326_v12 }
 0xa5a   : > { %8690 = vrsqrt.f32 %v7313_v39  ;;  %v7314_v38 = vadd.f32 1e-05, %v7298_v4 }
 0xa5b   : > { %7361 = vst [vmem:[#allocation2 + $0x10] sm:$0xff] %v7353_v28  ;;  %7369 = vst [vmem:[%s9438_s0 + $0x10] sm:$0xff] %v7353_v28  ;;  %v7354_v56 = vadd.f32 %v11582_v2, %v7340_v45 }
 0xa5c   : > { %v8687_v34 = vpop.eup %8686  ;;  %8692 = vrsqrt.f32 %v7314_v38 }
 0xa5d   : > { %7362 = vst [vmem:[#allocation2 + $0x18] sm:$0xff] %v7354_v56  ;;  %7370 = vst [vmem:[%s9438_s0 + $0x18] sm:$0xff] %v7354_v56  ;;  %v7327_v40 = vmul.f32 %v8687_v34, %v7303_v10 }
 0xa5e   : > { %v8689_v37 = vpop.eup %8688 }
 0xa5f   : > { %v7341_v14 = vmul.f32 %v11572_v52, %v7327_v40  ;;  %v7328_v18 = vmul.f32 %v8689_v37, %v7304_v22 }
 0xa61   : > { %v7355_v25 = vadd.f32 %v11582_v2, %v7341_v14  ;;  %v7342_v41 = vmul.f32 %v11572_v52, %v7328_v18 }
 0xa63   : > { %7363 = vst [vmem:[#allocation2 + $0x20] sm:$0xff] %v7355_v25  ;;  %7371 = vst [vmem:[%s9438_s0 + $0x20] sm:$0xff] %v7355_v25  ;;  %v7356_v44 = vadd.f32 %v11582_v2, %v7342_v41 }
 0xa64   : > { %v8691_v50 = vpop.eup %8690 }
 0xa65   : > { %7364 = vst [vmem:[#allocation2 + $0x28] sm:$0xff] %v7356_v44  ;;  %7372 = vst [vmem:[%s9438_s0 + $0x28] sm:$0xff] %v7356_v44  ;;  %v7329_v5 = vmul.f32 %v8691_v50, %v7305_v30 }
 0xa66   : > { %v8693_v46 = vpop.eup %8692 }
 0xa67   : > { %v7343_v23 = vmul.f32 %v11572_v52, %v7329_v5  ;;  %v7330_v36 = vmul.f32 %v8693_v46, %v7306_v8 }
 0xa69   : > { %v7357_v26 = vadd.f32 %v11582_v2, %v7343_v23  ;;  %v7344_v19 = vmul.f32 %v11572_v52, %v7330_v36 }
 0xa6b   : > { %7365 = vst [vmem:[#allocation2 + $0x30] sm:$0xff] %v7357_v26  ;;  %7373 = vst [vmem:[%s9438_s0 + $0x30] sm:$0xff] %v7357_v26  ;;  %v7358_v54 = vadd.f32 %v11582_v2, %v7344_v19 }
 0xa6d   : > { %7366 = vst [vmem:[#allocation2 + $0x38] sm:$0xff] %v7358_v54  ;;  %7374 = vst [vmem:[%s9438_s0 + $0x38] sm:$0xff] %v7358_v54 }
 0xa6e   : > { %8891 = shalt.err (!%p8888_p11)
}
 0xa6f   : > { %s8892_s0 = scalar_lea.hbm %s11625_s17, 1024  ;;  %s8896_s6 = scalar_lea.hbm %s11924_s27, 2048 }
 0xa70   : > { %p8893_p13 = scmp.ne.s32.totalorder %s11625_s17, %s8892_s0  ;;  %p8897_p9 = scmp.lt.u32.totalorder %s11625_s17, %s11924_s27 }
 0xa71   : > { %p8898_p10 = scmp.lt.u32.totalorder %s8896_s6, %s8892_s0  ;;  %p8900_p7 = scmp.lt.u32.totalorder %s8892_s0, %s11625_s17 }
 0xa72   : > { %p8894_p1 = pnand %p8893_p13, %p11925_p0 }
 0xa73   : > { %p8899_p3 = por %p8898_p10, %p8897_p9 }
 0xa74   : > { %p8895_p12 = pneg %p8894_p1 }
 0xa75   : > { %p8901_p4 = por %p8900_p7, %p8899_p3 }
 0xa77   : > { %p8902_p5 = pnand %p8901_p4, %p8895_p12 }
 0xa79   : > { %8905 = shalt.err (!%p8902_p5)
}
 0xa7a   : > { %s8991_s21 = smov 128   ;;  %s8992_s23 = smov 8  }
 0xa7b   : > { %8316 = dma.vmem_to_hbm [thread:$0]  (%p11925_p0), %s11627_s16, 1024, %s11625_s17, %s7376_s28, %s8991_s21, %s8991_s21, %s8992_s23  }
 0xa7c PF: > { %s11926_s20 = sld [smem:[#allocation17_spill]]  ;;  %s11927_s13 = sld [smem:[#allocation22_spill]] }
 0xa7d   : > { %p11929_p6 = scmp.ge.s32.totalorder %s8968_s18, 2 }
 0xa82   : > { %s7406_s14 = sand.u32 1, %s11926_s20   ;;  %p11928_p2 = scmp.ne.s32.totalorder %s11927_s13, 0 }
 0xa83   : > { %s7407_s7 = scalar_lea.sflag [#allocation5], %s7406_s14 }
 0xa84   : > { %p8339_p8 = pnand %p11929_p6, %p11928_p2 }
 0xa86   : > { %8943 = dma.done.wait (!%p8339_p8), %s7407_s7, 1024  }
 0xa87   : > { %8945 = vsyncadd (!%p8339_p8), %s7407_s7, 4294966272  ;;  %s29_s18 = sadd.s32 1, %s8968_s18   ;;  %s11930_s4 = sld [smem:[#allocation18_spill]] }
 0xa88   : > { %p26_p11 = scmp.ge.s32.totalorder %s29_s18, 4   ;;  %s11931_s15 = sld [smem:[#allocation24_spill]] }
 0xa89   : > { %s11932_s16 = sld [smem:[#allocation20_spill]]  ;;  %s11933_s17 = sld [smem:[#allocation23_spill]] }
 0xa8a   : > { %s11934_s29 = smov %s8952_s30  ;;  %28 = sbr.rel (!%p26_p11) target bundleno = 22 (0x16), region = 191 }
 0xa8d   : > { %s11935_s30 = smov %s11930_s4 }
 0xa91   :  { %7412 = vsyncpa [#allocation4], 1 }
 0xa92   :  { %7414 = vsyncpa [#allocation4 + $0x1], 1 }
 0xa93   :  { %7415 = vsyncpa [#allocation7], 1 }
 0xa94   :  { %7416 = vsyncpa [#allocation5], 1 }
 0xa95   :  { %7418 = vsyncpa [#allocation5 + $0x1], 1 }

</bundles_post_ra>
